<compile_context>
chip_gen: v7x
topology: tpu7x:2x2x1
jax: 0.10.0
libtpu: 0.0.40
codegen_flags: <defaults>
</compile_context>

<pallas_src>
import numpy as np
import jax
import jax.numpy as jnp
from jax import lax
from jax.experimental import pallas as pl
from jax.experimental.pallas import tpu as pltpu

KSIZE, STRIDE, PAD = 4, 2, 1


# ---------------------------------------------------------------------------
# One-time setup: gather matrices + weight/bias reshapes (hoisted out of forward)
# ---------------------------------------------------------------------------
def _make_selection(hin, win, ksize=KSIZE, stride=STRIDE, pad=PAD):
    """0/1 gather matrices S[p, r, q]: output position r reads input pixel q for kernel
    offset p; zero padding is folded in as all-zero entries."""
    ho = (hin + 2 * pad - ksize) // stride + 1
    wo = (win + 2 * pad - ksize) // stride + 1
    s = np.zeros((ksize * ksize, ho * wo, hin * win), np.float32)
    for kh in range(ksize):
        for kw in range(ksize):
            p = kh * ksize + kw
            for oh in range(ho):
                ih = oh * stride + kh - pad
                if not (0 <= ih < hin):
                    continue
                for ow in range(wo):
                    iw = ow * stride + kw - pad
                    if 0 <= iw < win:
                        s[p, oh * wo + ow, ih * win + iw] = 1.0
    return s, ho, wo


def make_params(key):
    """Deterministic init matching nn.Conv2d shapes (PyTorch OIHW layout + uniform init)."""
    shapes = [((32, 3, 4, 4), (32,)), ((64, 32, 4, 4), (64,)), ((4, 64, 4, 4), (4,))]
    params = []
    for wshape, bshape in shapes:
        key, kw_, kb_ = jax.random.split(key, 3)
        fan_in = wshape[1] * wshape[2] * wshape[3]
        scale = 1.0 / jnp.sqrt(float(fan_in))
        w = jax.random.uniform(kw_, wshape, jnp.float32, -scale, scale)
        b = jax.random.uniform(kb_, bshape, jnp.float32, -scale, scale)
        params.append((w, b))
    return params


def prepare_params(params, h, w):
    """OIHW weights -> (KH*KW, Cin, Cout); bias -> (1, Cout); per-layer gather matrices."""
    prepped = []
    hin, win = h, w
    for (wgt, bias) in params:
        cout, cin, kh, kw = wgt.shape
        s_np, ho, wo = _make_selection(hin, win)
        w_r = jnp.transpose(wgt, (2, 3, 1, 0)).reshape(kh * kw, cin, cout).astype(jnp.float32)
        prepped += [jnp.asarray(s_np), w_r, bias.reshape(1, cout).astype(jnp.float32)]
        hin, win = ho, wo
    return tuple(prepped)


# ---------------------------------------------------------------------------
# Fused Pallas kernel: all three conv layers, activations VMEM/vreg-resident
# ---------------------------------------------------------------------------
def _conv_layer(a, s_ref, w_ref, b_ref):
    # a: (Hin*Win, Cin) f32 value.  s_ref: (16, Ho*Wo, Hin*Win) gather, VMEM-resident.
    # w_ref: (16, Cin, Cout).  b_ref: (1, Cout).
    n_pos, m = s_ref.shape[0], s_ref.shape[1]
    cout = w_ref.shape[2]
    acc = jnp.zeros((m, cout), jnp.float32)
    for p in range(n_pos):  # static unroll: tiny MXU ops on fully resident operands
        g = jnp.dot(s_ref[p], a, preferred_element_type=jnp.float32)        # patch gather
        acc = acc + jnp.dot(g, w_ref[p], preferred_element_type=jnp.float32)  # contraction
    return jnp.maximum(acc + b_ref[...], 0.0)


def _encoder_kernel(x_ref, s1, w1, b1, s2, w2, b2, s3, w3, b3, o_ref):
    a = x_ref[0]                        # (H*W, 3) for this batch element
    a = _conv_layer(a, s1, w1, b1)      # (H/2*W/2, 32)
    a = _conv_layer(a, s2, w2, b2)      # (H/4*W/4, 64)
    a = _conv_layer(a, s3, w3, b3)      # (H/8*W/8, 4)
    o_ref[0] = a.astype(o_ref.dtype)


def cloth_encoder_forward(x_nchw, prepped):
    n, c, h, w = x_nchw.shape
    s1, w1, b1, s2, w2, b2, s3, w3, b3 = prepped
    # NCHW -> (N, H*W, C): rows are spatial positions (h-major, w-minor), lanes are channels.
    x2d = jnp.transpose(x_nchw, (0, 2, 3, 1)).reshape(n, h * w, c)

    m_out, cout = s3.shape[1], w3.shape[2]
    flops = 0
    for s_, wl_ in ((s1, w1), (s2, w2), (s3, w3)):
        p_, m_, k_ = s_.shape
        cin_, cout_ = wl_.shape[1], wl_.shape[2]
        flops += 2 * p_ * (m_ * k_ * cin_ + m_ * cin_ * cout_)
    flops *= n
    bytes_accessed = int(sum(int(a.size) * a.dtype.itemsize for a in (x2d, *prepped))
                         + n * m_out * cout * 4)

    const3 = lambda b: (0, 0, 0)   # constant block index -> DMA'd once, VMEM-resident
    const2 = lambda b: (0, 0)

    out = pl.pallas_call(
        _encoder_kernel,
        out_shape=jax.ShapeDtypeStruct((n, m_out, cout), jnp.float32),
        grid=(n,),
        in_specs=[
            pl.BlockSpec((1, h * w, c), lambda b: (b, 0, 0)),    # streamed per batch element
            pl.BlockSpec(s1.shape, const3), pl.BlockSpec(w1.shape, const3), pl.BlockSpec(b1.shape, const2),
            pl.BlockSpec(s2.shape, const3), pl.BlockSpec(w2.shape, const3), pl.BlockSpec(b2.shape, const2),
            pl.BlockSpec(s3.shape, const3), pl.BlockSpec(w3.shape, const3), pl.BlockSpec(b3.shape, const2),
        ],
        out_specs=pl.BlockSpec((1, m_out, cout), lambda b: (b, 0, 0)),
        compiler_params=pltpu.CompilerParams(
            dimension_semantics=("parallel",),      # batch elements shard across v7x's 2 TCs
            vmem_limit_bytes=32 * 1024 * 1024,      # explicit budget; footprint is ~2.5 MiB
        ),
        cost_estimate=pl.CostEstimate(flops=int(flops), transcendentals=0,
                                      bytes_accessed=bytes_accessed),
    )(x2d, s1, w1, b1, s2, w2, b2, s3, w3, b3)

    ho, wo = h // 8, w // 8
    return jnp.transpose(out.reshape(n, ho, wo, cout), (0, 3, 1, 2))   # -> NCHW


# ---------------------------------------------------------------------------
# Pure-XLA reference (f32) for a tolerance check
# ---------------------------------------------------------------------------
def reference_forward(x, params):
    y = x
    for wgt, bias in params:
        y = lax.conv_general_dilated(
            y, wgt, window_strides=(STRIDE, STRIDE), padding=((PAD, PAD), (PAD, PAD)),
            dimension_numbers=("NCHW", "OIHW", "NCHW"), precision=lax.Precision.HIGHEST)
        y = jnp.maximum(y + bias.reshape(1, -1, 1, 1), 0.0)
    return y


if __name__ == "__main__":
    key = jax.random.PRNGKey(0)
    kx, kp = jax.random.split(key)
    # Input consistent with Conv2d(3, ...): (N=2, C=3, H=16, W=16)
    x = jax.random.normal(kx, (2, 3, 16, 16), dtype=jnp.float32)
    params = make_params(kp)
    prepped = prepare_params(params, 16, 16)

    fwd = jax.jit(cloth_encoder_forward)
    out = jax.block_until_ready(fwd(x, prepped))

    # Shape sanity: 16 -> 8 -> 4 -> 2 spatially, final channels = 4; ReLU output.
    assert out.shape == (2, 4, 2, 2), out.shape
    assert out.dtype == jnp.float32
    assert bool(jnp.all(out >= 0.0))

    ref = jax.block_until_ready(reference_forward(x, params))
    err = float(jnp.max(jnp.abs(out - ref)))
    assert err < 2e-2, f"max abs error vs XLA conv reference: {err}"
    print("KERNEL_OK")
</pallas_src>

<mosaic_0001>
module attributes {stable_mosaic.version = 11 : i64} {
  func.func @_encoder_kernel(%arg0: i32, %arg1: memref<1x256x3xf32, #tpu.memory_space<vmem>>, %arg2: memref<16x64x256xf32, #tpu.memory_space<vmem>>, %arg3: memref<16x3x32xf32, #tpu.memory_space<vmem>>, %arg4: memref<1x32xf32, #tpu.memory_space<vmem>>, %arg5: memref<16x16x64xf32, #tpu.memory_space<vmem>>, %arg6: memref<16x32x64xf32, #tpu.memory_space<vmem>>, %arg7: memref<1x64xf32, #tpu.memory_space<vmem>>, %arg8: memref<16x4x16xf32, #tpu.memory_space<vmem>>, %arg9: memref<16x64x4xf32, #tpu.memory_space<vmem>>, %arg10: memref<1x4xf32, #tpu.memory_space<vmem>>, %arg11: memref<1x4x4xf32, #tpu.memory_space<vmem>>) attributes {dimension_semantics = [#tpu.dimension_semantics<parallel>], iteration_bounds = array<i64: 2>, scalar_prefetch = 0 : i64, scratch_operands = 0 : i64, tpu.core_type = #tpu.core_type<tc>, window_params = [{transform_indices = @transform_0, window_bounds = array<i64: 1, 256, 3>}, {pipeline_mode = #tpu.pipeline_mode<synchronous>, transform_indices = @transform_1, window_bounds = array<i64: 16, 64, 256>}, {pipeline_mode = #tpu.pipeline_mode<synchronous>, transform_indices = @transform_2, window_bounds = array<i64: 16, 3, 32>}, {pipeline_mode = #tpu.pipeline_mode<synchronous>, transform_indices = @transform_3, window_bounds = array<i64: 1, 32>}, {pipeline_mode = #tpu.pipeline_mode<synchronous>, transform_indices = @transform_4, window_bounds = array<i64: 16, 16, 64>}, {pipeline_mode = #tpu.pipeline_mode<synchronous>, transform_indices = @transform_5, window_bounds = array<i64: 16, 32, 64>}, {pipeline_mode = #tpu.pipeline_mode<synchronous>, transform_indices = @transform_6, window_bounds = array<i64: 1, 64>}, {pipeline_mode = #tpu.pipeline_mode<synchronous>, transform_indices = @transform_7, window_bounds = array<i64: 16, 4, 16>}, {pipeline_mode = #tpu.pipeline_mode<synchronous>, transform_indices = @transform_8, window_bounds = array<i64: 16, 64, 4>}, {pipeline_mode = #tpu.pipeline_mode<synchronous>, transform_indices = @transform_9, window_bounds = array<i64: 1, 4>}, {transform_indices = @transform_10, window_bounds = array<i64: 1, 4, 4>}]} {
    %c0 = arith.constant 0 : index
    %c0_0 = arith.constant 0 : index
    %c0_1 = arith.constant 0 : index
    %0 = vector.load %arg1[%c0, %c0_0, %c0_1] : memref<1x256x3xf32, #tpu.memory_space<vmem>>, vector<1x256x3xf32>
    %1 = vector.shape_cast %0 : vector<1x256x3xf32> to vector<256x3xf32>
    %cst = arith.constant 0.000000e+00 : f32
    %2 = vector.broadcast %cst : f32 to vector<64x32xf32>
    %c0_2 = arith.constant 0 : index
    %c0_3 = arith.constant 0 : index
    %c0_4 = arith.constant 0 : index
    %3 = vector.load %arg2[%c0_2, %c0_3, %c0_4] : memref<16x64x256xf32, #tpu.memory_space<vmem>>, vector<1x64x256xf32>
    %4 = vector.shape_cast %3 : vector<1x64x256xf32> to vector<64x256xf32>
    %cst_5 = arith.constant dense<0.000000e+00> : vector<64x3xf32>
    %5 = tpu.matmul %4, %1, %cst_5 {dimension_numbers = #tpu.dot_dimension_numbers<[1], [0], [0], [1], [0, 0, 1, 1], [], []>} : vector<64x256xf32>, vector<256x3xf32>, vector<64x3xf32> -> vector<64x3xf32>
    %c0_6 = arith.constant 0 : index
    %c0_7 = arith.constant 0 : index
    %c0_8 = arith.constant 0 : index
    %6 = vector.load %arg3[%c0_6, %c0_7, %c0_8] : memref<16x3x32xf32, #tpu.memory_space<vmem>>, vector<1x3x32xf32>
    %7 = vector.shape_cast %6 : vector<1x3x32xf32> to vector<3x32xf32>
    %cst_9 = arith.constant dense<0.000000e+00> : vector<64x32xf32>
    %8 = tpu.matmul %5, %7, %cst_9 {dimension_numbers = #tpu.dot_dimension_numbers<[1], [0], [0], [1], [0, 0, 1, 1], [], []>} : vector<64x3xf32>, vector<3x32xf32>, vector<64x32xf32> -> vector<64x32xf32>
    %9 = arith.addf %2, %8 : vector<64x32xf32>
    %c1 = arith.constant 1 : index
    %c0_10 = arith.constant 0 : index
    %c0_11 = arith.constant 0 : index
    %10 = vector.load %arg2[%c1, %c0_10, %c0_11] : memref<16x64x256xf32, #tpu.memory_space<vmem>>, vector<1x64x256xf32>
    %11 = vector.shape_cast %10 : vector<1x64x256xf32> to vector<64x256xf32>
    %cst_12 = arith.constant dense<0.000000e+00> : vector<64x3xf32>
    %12 = tpu.matmul %11, %1, %cst_12 {dimension_numbers = #tpu.dot_dimension_numbers<[1], [0], [0], [1], [0, 0, 1, 1], [], []>} : vector<64x256xf32>, vector<256x3xf32>, vector<64x3xf32> -> vector<64x3xf32>
    %c1_13 = arith.constant 1 : index
    %c0_14 = arith.constant 0 : index
    %c0_15 = arith.constant 0 : index
    %13 = vector.load %arg3[%c1_13, %c0_14, %c0_15] : memref<16x3x32xf32, #tpu.memory_space<vmem>>, vector<1x3x32xf32>
    %14 = vector.shape_cast %13 : vector<1x3x32xf32> to vector<3x32xf32>
    %cst_16 = arith.constant dense<0.000000e+00> : vector<64x32xf32>
    %15 = tpu.matmul %12, %14, %cst_16 {dimension_numbers = #tpu.dot_dimension_numbers<[1], [0], [0], [1], [0, 0, 1, 1], [], []>} : vector<64x3xf32>, vector<3x32xf32>, vector<64x32xf32> -> vector<64x32xf32>
    %16 = arith.addf %9, %15 : vector<64x32xf32>
    %c2 = arith.constant 2 : index
    %c0_17 = arith.constant 0 : index
    %c0_18 = arith.constant 0 : index
    %17 = vector.load %arg2[%c2, %c0_17, %c0_18] : memref<16x64x256xf32, #tpu.memory_space<vmem>>, vector<1x64x256xf32>
    %18 = vector.shape_cast %17 : vector<1x64x256xf32> to vector<64x256xf32>
    %cst_19 = arith.constant dense<0.000000e+00> : vector<64x3xf32>
    %19 = tpu.matmul %18, %1, %cst_19 {dimension_numbers = #tpu.dot_dimension_numbers<[1], [0], [0], [1], [0, 0, 1, 1], [], []>} : vector<64x256xf32>, vector<256x3xf32>, vector<64x3xf32> -> vector<64x3xf32>
    %c2_20 = arith.constant 2 : index
    %c0_21 = arith.constant 0 : index
    %c0_22 = arith.constant 0 : index
    %20 = vector.load %arg3[%c2_20, %c0_21, %c0_22] : memref<16x3x32xf32, #tpu.memory_space<vmem>>, vector<1x3x32xf32>
    %21 = vector.shape_cast %20 : vector<1x3x32xf32> to vector<3x32xf32>
    %cst_23 = arith.constant dense<0.000000e+00> : vector<64x32xf32>
    %22 = tpu.matmul %19, %21, %cst_23 {dimension_numbers = #tpu.dot_dimension_numbers<[1], [0], [0], [1], [0, 0, 1, 1], [], []>} : vector<64x3xf32>, vector<3x32xf32>, vector<64x32xf32> -> vector<64x32xf32>
    %23 = arith.addf %16, %22 : vector<64x32xf32>
    %c3 = arith.constant 3 : index
    %c0_24 = arith.constant 0 : index
    %c0_25 = arith.constant 0 : index
    %24 = vector.load %arg2[%c3, %c0_24, %c0_25] : memref<16x64x256xf32, #tpu.memory_space<vmem>>, vector<1x64x256xf32>
    %25 = vector.shape_cast %24 : vector<1x64x256xf32> to vector<64x256xf32>
    %cst_26 = arith.constant dense<0.000000e+00> : vector<64x3xf32>
    %26 = tpu.matmul %25, %1, %cst_26 {dimension_numbers = #tpu.dot_dimension_numbers<[1], [0], [0], [1], [0, 0, 1, 1], [], []>} : vector<64x256xf32>, vector<256x3xf32>, vector<64x3xf32> -> vector<64x3xf32>
    %c3_27 = arith.constant 3 : index
    %c0_28 = arith.constant 0 : index
    %c0_29 = arith.constant 0 : index
    %27 = vector.load %arg3[%c3_27, %c0_28, %c0_29] : memref<16x3x32xf32, #tpu.memory_space<vmem>>, vector<1x3x32xf32>
    %28 = vector.shape_cast %27 : vector<1x3x32xf32> to vector<3x32xf32>
    %cst_30 = arith.constant dense<0.000000e+00> : vector<64x32xf32>
    %29 = tpu.matmul %26, %28, %cst_30 {dimension_numbers = #tpu.dot_dimension_numbers<[1], [0], [0], [1], [0, 0, 1, 1], [], []>} : vector<64x3xf32>, vector<3x32xf32>, vector<64x32xf32> -> vector<64x32xf32>
    %30 = arith.addf %23, %29 : vector<64x32xf32>
    %c4 = arith.constant 4 : index
    %c0_31 = arith.constant 0 : index
    %c0_32 = arith.constant 0 : index
    %31 = vector.load %arg2[%c4, %c0_31, %c0_32] : memref<16x64x256xf32, #tpu.memory_space<vmem>>, vector<1x64x256xf32>
    %32 = vector.shape_cast %31 : vector<1x64x256xf32> to vector<64x256xf32>
    %cst_33 = arith.constant dense<0.000000e+00> : vector<64x3xf32>
    %33 = tpu.matmul %32, %1, %cst_33 {dimension_numbers = #tpu.dot_dimension_numbers<[1], [0], [0], [1], [0, 0, 1, 1], [], []>} : vector<64x256xf32>, vector<256x3xf32>, vector<64x3xf32> -> vector<64x3xf32>
    %c4_34 = arith.constant 4 : index
    %c0_35 = arith.constant 0 : index
    %c0_36 = arith.constant 0 : index
    %34 = vector.load %arg3[%c4_34, %c0_35, %c0_36] : memref<16x3x32xf32, #tpu.memory_space<vmem>>, vector<1x3x32xf32>
    %35 = vector.shape_cast %34 : vector<1x3x32xf32> to vector<3x32xf32>
    %cst_37 = arith.constant dense<0.000000e+00> : vector<64x32xf32>
    %36 = tpu.matmul %33, %35, %cst_37 {dimension_numbers = #tpu.dot_dimension_numbers<[1], [0], [0], [1], [0, 0, 1, 1], [], []>} : vector<64x3xf32>, vector<3x32xf32>, vector<64x32xf32> -> vector<64x32xf32>
    %37 = arith.addf %30, %36 : vector<64x32xf32>
    %c5 = arith.constant 5 : index
    %c0_38 = arith.constant 0 : index
    %c0_39 = arith.constant 0 : index
    %38 = vector.load %arg2[%c5, %c0_38, %c0_39] : memref<16x64x256xf32, #tpu.memory_space<vmem>>, vector<1x64x256xf32>
    %39 = vector.shape_cast %38 : vector<1x64x256xf32> to vector<64x256xf32>
    %cst_40 = arith.constant dense<0.000000e+00> : vector<64x3xf32>
    %40 = tpu.matmul %39, %1, %cst_40 {dimension_numbers = #tpu.dot_dimension_numbers<[1], [0], [0], [1], [0, 0, 1, 1], [], []>} : vector<64x256xf32>, vector<256x3xf32>, vector<64x3xf32> -> vector<64x3xf32>
    %c5_41 = arith.constant 5 : index
    %c0_42 = arith.constant 0 : index
    %c0_43 = arith.constant 0 : index
    %41 = vector.load %arg3[%c5_41, %c0_42, %c0_43] : memref<16x3x32xf32, #tpu.memory_space<vmem>>, vector<1x3x32xf32>
    %42 = vector.shape_cast %41 : vector<1x3x32xf32> to vector<3x32xf32>
    %cst_44 = arith.constant dense<0.000000e+00> : vector<64x32xf32>
    %43 = tpu.matmul %40, %42, %cst_44 {dimension_numbers = #tpu.dot_dimension_numbers<[1], [0], [0], [1], [0, 0, 1, 1], [], []>} : vector<64x3xf32>, vector<3x32xf32>, vector<64x32xf32> -> vector<64x32xf32>
    %44 = arith.addf %37, %43 : vector<64x32xf32>
    %c6 = arith.constant 6 : index
    %c0_45 = arith.constant 0 : index
    %c0_46 = arith.constant 0 : index
    %45 = vector.load %arg2[%c6, %c0_45, %c0_46] : memref<16x64x256xf32, #tpu.memory_space<vmem>>, vector<1x64x256xf32>
    %46 = vector.shape_cast %45 : vector<1x64x256xf32> to vector<64x256xf32>
    %cst_47 = arith.constant dense<0.000000e+00> : vector<64x3xf32>
    %47 = tpu.matmul %46, %1, %cst_47 {dimension_numbers = #tpu.dot_dimension_numbers<[1], [0], [0], [1], [0, 0, 1, 1], [], []>} : vector<64x256xf32>, vector<256x3xf32>, vector<64x3xf32> -> vector<64x3xf32>
    %c6_48 = arith.constant 6 : index
    %c0_49 = arith.constant 0 : index
    %c0_50 = arith.constant 0 : index
    %48 = vector.load %arg3[%c6_48, %c0_49, %c0_50] : memref<16x3x32xf32, #tpu.memory_space<vmem>>, vector<1x3x32xf32>
    %49 = vector.shape_cast %48 : vector<1x3x32xf32> to vector<3x32xf32>
    %cst_51 = arith.constant dense<0.000000e+00> : vector<64x32xf32>
    %50 = tpu.matmul %47, %49, %cst_51 {dimension_numbers = #tpu.dot_dimension_numbers<[1], [0], [0], [1], [0, 0, 1, 1], [], []>} : vector<64x3xf32>, vector<3x32xf32>, vector<64x32xf32> -> vector<64x32xf32>
    %51 = arith.addf %44, %50 : vector<64x32xf32>
    %c7 = arith.constant 7 : index
    %c0_52 = arith.constant 0 : index
    %c0_53 = arith.constant 0 : index
    %52 = vector.load %arg2[%c7, %c0_52, %c0_53] : memref<16x64x256xf32, #tpu.memory_space<vmem>>, vector<1x64x256xf32>
    %53 = vector.shape_cast %52 : vector<1x64x256xf32> to vector<64x256xf32>
    %cst_54 = arith.constant dense<0.000000e+00> : vector<64x3xf32>
    %54 = tpu.matmul %53, %1, %cst_54 {dimension_numbers = #tpu.dot_dimension_numbers<[1], [0], [0], [1], [0, 0, 1, 1], [], []>} : vector<64x256xf32>, vector<256x3xf32>, vector<64x3xf32> -> vector<64x3xf32>
    %c7_55 = arith.constant 7 : index
    %c0_56 = arith.constant 0 : index
    %c0_57 = arith.constant 0 : index
    %55 = vector.load %arg3[%c7_55, %c0_56, %c0_57] : memref<16x3x32xf32, #tpu.memory_space<vmem>>, vector<1x3x32xf32>
    %56 = vector.shape_cast %55 : vector<1x3x32xf32> to vector<3x32xf32>
    %cst_58 = arith.constant dense<0.000000e+00> : vector<64x32xf32>
    %57 = tpu.matmul %54, %56, %cst_58 {dimension_numbers = #tpu.dot_dimension_numbers<[1], [0], [0], [1], [0, 0, 1, 1], [], []>} : vector<64x3xf32>, vector<3x32xf32>, vector<64x32xf32> -> vector<64x32xf32>
    %58 = arith.addf %51, %57 : vector<64x32xf32>
    %c8 = arith.constant 8 : index
    %c0_59 = arith.constant 0 : index
    %c0_60 = arith.constant 0 : index
    %59 = vector.load %arg2[%c8, %c0_59, %c0_60] : memref<16x64x256xf32, #tpu.memory_space<vmem>>, vector<1x64x256xf32>
    %60 = vector.shape_cast %59 : vector<1x64x256xf32> to vector<64x256xf32>
    %cst_61 = arith.constant dense<0.000000e+00> : vector<64x3xf32>
    %61 = tpu.matmul %60, %1, %cst_61 {dimension_numbers = #tpu.dot_dimension_numbers<[1], [0], [0], [1], [0, 0, 1, 1], [], []>} : vector<64x256xf32>, vector<256x3xf32>, vector<64x3xf32> -> vector<64x3xf32>
    %c8_62 = arith.constant 8 : index
    %c0_63 = arith.constant 0 : index
    %c0_64 = arith.constant 0 : index
    %62 = vector.load %arg3[%c8_62, %c0_63, %c0_64] : memref<16x3x32xf32, #tpu.memory_space<vmem>>, vector<1x3x32xf32>
    %63 = vector.shape_cast %62 : vector<1x3x32xf32> to vector<3x32xf32>
    %cst_65 = arith.constant dense<0.000000e+00> : vector<64x32xf32>
    %64 = tpu.matmul %61, %63, %cst_65 {dimension_numbers = #tpu.dot_dimension_numbers<[1], [0], [0], [1], [0, 0, 1, 1], [], []>} : vector<64x3xf32>, vector<3x32xf32>, vector<64x32xf32> -> vector<64x32xf32>
    %65 = arith.addf %58, %64 : vector<64x32xf32>
    %c9 = arith.constant 9 : index
    %c0_66 = arith.constant 0 : index
    %c0_67 = arith.constant 0 : index
    %66 = vector.load %arg2[%c9, %c0_66, %c0_67] : memref<16x64x256xf32, #tpu.memory_space<vmem>>, vector<1x64x256xf32>
    %67 = vector.shape_cast %66 : vector<1x64x256xf32> to vector<64x256xf32>
    %cst_68 = arith.constant dense<0.000000e+00> : vector<64x3xf32>
    %68 = tpu.matmul %67, %1, %cst_68 {dimension_numbers = #tpu.dot_dimension_numbers<[1], [0], [0], [1], [0, 0, 1, 1], [], []>} : vector<64x256xf32>, vector<256x3xf32>, vector<64x3xf32> -> vector<64x3xf32>
    %c9_69 = arith.constant 9 : index
    %c0_70 = arith.constant 0 : index
    %c0_71 = arith.constant 0 : index
    %69 = vector.load %arg3[%c9_69, %c0_70, %c0_71] : memref<16x3x32xf32, #tpu.memory_space<vmem>>, vector<1x3x32xf32>
    %70 = vector.shape_cast %69 : vector<1x3x32xf32> to vector<3x32xf32>
    %cst_72 = arith.constant dense<0.000000e+00> : vector<64x32xf32>
    %71 = tpu.matmul %68, %70, %cst_72 {dimension_numbers = #tpu.dot_dimension_numbers<[1], [0], [0], [1], [0, 0, 1, 1], [], []>} : vector<64x3xf32>, vector<3x32xf32>, vector<64x32xf32> -> vector<64x32xf32>
    %72 = arith.addf %65, %71 : vector<64x32xf32>
    %c10 = arith.constant 10 : index
    %c0_73 = arith.constant 0 : index
    %c0_74 = arith.constant 0 : index
    %73 = vector.load %arg2[%c10, %c0_73, %c0_74] : memref<16x64x256xf32, #tpu.memory_space<vmem>>, vector<1x64x256xf32>
    %74 = vector.shape_cast %73 : vector<1x64x256xf32> to vector<64x256xf32>
    %cst_75 = arith.constant dense<0.000000e+00> : vector<64x3xf32>
    %75 = tpu.matmul %74, %1, %cst_75 {dimension_numbers = #tpu.dot_dimension_numbers<[1], [0], [0], [1], [0, 0, 1, 1], [], []>} : vector<64x256xf32>, vector<256x3xf32>, vector<64x3xf32> -> vector<64x3xf32>
    %c10_76 = arith.constant 10 : index
    %c0_77 = arith.constant 0 : index
    %c0_78 = arith.constant 0 : index
    %76 = vector.load %arg3[%c10_76, %c0_77, %c0_78] : memref<16x3x32xf32, #tpu.memory_space<vmem>>, vector<1x3x32xf32>
    %77 = vector.shape_cast %76 : vector<1x3x32xf32> to vector<3x32xf32>
    %cst_79 = arith.constant dense<0.000000e+00> : vector<64x32xf32>
    %78 = tpu.matmul %75, %77, %cst_79 {dimension_numbers = #tpu.dot_dimension_numbers<[1], [0], [0], [1], [0, 0, 1, 1], [], []>} : vector<64x3xf32>, vector<3x32xf32>, vector<64x32xf32> -> vector<64x32xf32>
    %79 = arith.addf %72, %78 : vector<64x32xf32>
    %c11 = arith.constant 11 : index
    %c0_80 = arith.constant 0 : index
    %c0_81 = arith.constant 0 : index
    %80 = vector.load %arg2[%c11, %c0_80, %c0_81] : memref<16x64x256xf32, #tpu.memory_space<vmem>>, vector<1x64x256xf32>
    %81 = vector.shape_cast %80 : vector<1x64x256xf32> to vector<64x256xf32>
    %cst_82 = arith.constant dense<0.000000e+00> : vector<64x3xf32>
    %82 = tpu.matmul %81, %1, %cst_82 {dimension_numbers = #tpu.dot_dimension_numbers<[1], [0], [0], [1], [0, 0, 1, 1], [], []>} : vector<64x256xf32>, vector<256x3xf32>, vector<64x3xf32> -> vector<64x3xf32>
    %c11_83 = arith.constant 11 : index
    %c0_84 = arith.constant 0 : index
    %c0_85 = arith.constant 0 : index
    %83 = vector.load %arg3[%c11_83, %c0_84, %c0_85] : memref<16x3x32xf32, #tpu.memory_space<vmem>>, vector<1x3x32xf32>
    %84 = vector.shape_cast %83 : vector<1x3x32xf32> to vector<3x32xf32>
    %cst_86 = arith.constant dense<0.000000e+00> : vector<64x32xf32>
    %85 = tpu.matmul %82, %84, %cst_86 {dimension_numbers = #tpu.dot_dimension_numbers<[1], [0], [0], [1], [0, 0, 1, 1], [], []>} : vector<64x3xf32>, vector<3x32xf32>, vector<64x32xf32> -> vector<64x32xf32>
    %86 = arith.addf %79, %85 : vector<64x32xf32>
    %c12 = arith.constant 12 : index
    %c0_87 = arith.constant 0 : index
    %c0_88 = arith.constant 0 : index
    %87 = vector.load %arg2[%c12, %c0_87, %c0_88] : memref<16x64x256xf32, #tpu.memory_space<vmem>>, vector<1x64x256xf32>
    %88 = vector.shape_cast %87 : vector<1x64x256xf32> to vector<64x256xf32>
    %cst_89 = arith.constant dense<0.000000e+00> : vector<64x3xf32>
    %89 = tpu.matmul %88, %1, %cst_89 {dimension_numbers = #tpu.dot_dimension_numbers<[1], [0], [0], [1], [0, 0, 1, 1], [], []>} : vector<64x256xf32>, vector<256x3xf32>, vector<64x3xf32> -> vector<64x3xf32>
    %c12_90 = arith.constant 12 : index
    %c0_91 = arith.constant 0 : index
    %c0_92 = arith.constant 0 : index
    %90 = vector.load %arg3[%c12_90, %c0_91, %c0_92] : memref<16x3x32xf32, #tpu.memory_space<vmem>>, vector<1x3x32xf32>
    %91 = vector.shape_cast %90 : vector<1x3x32xf32> to vector<3x32xf32>
    %cst_93 = arith.constant dense<0.000000e+00> : vector<64x32xf32>
    %92 = tpu.matmul %89, %91, %cst_93 {dimension_numbers = #tpu.dot_dimension_numbers<[1], [0], [0], [1], [0, 0, 1, 1], [], []>} : vector<64x3xf32>, vector<3x32xf32>, vector<64x32xf32> -> vector<64x32xf32>
    %93 = arith.addf %86, %92 : vector<64x32xf32>
    %c13 = arith.constant 13 : index
    %c0_94 = arith.constant 0 : index
    %c0_95 = arith.constant 0 : index
    %94 = vector.load %arg2[%c13, %c0_94, %c0_95] : memref<16x64x256xf32, #tpu.memory_space<vmem>>, vector<1x64x256xf32>
    %95 = vector.shape_cast %94 : vector<1x64x256xf32> to vector<64x256xf32>
    %cst_96 = arith.constant dense<0.000000e+00> : vector<64x3xf32>
    %96 = tpu.matmul %95, %1, %cst_96 {dimension_numbers = #tpu.dot_dimension_numbers<[1], [0], [0], [1], [0, 0, 1, 1], [], []>} : vector<64x256xf32>, vector<256x3xf32>, vector<64x3xf32> -> vector<64x3xf32>
    %c13_97 = arith.constant 13 : index
    %c0_98 = arith.constant 0 : index
    %c0_99 = arith.constant 0 : index
    %97 = vector.load %arg3[%c13_97, %c0_98, %c0_99] : memref<16x3x32xf32, #tpu.memory_space<vmem>>, vector<1x3x32xf32>
    %98 = vector.shape_cast %97 : vector<1x3x32xf32> to vector<3x32xf32>
    %cst_100 = arith.constant dense<0.000000e+00> : vector<64x32xf32>
    %99 = tpu.matmul %96, %98, %cst_100 {dimension_numbers = #tpu.dot_dimension_numbers<[1], [0], [0], [1], [0, 0, 1, 1], [], []>} : vector<64x3xf32>, vector<3x32xf32>, vector<64x32xf32> -> vector<64x32xf32>
    %100 = arith.addf %93, %99 : vector<64x32xf32>
    %c14 = arith.constant 14 : index
    %c0_101 = arith.constant 0 : index
    %c0_102 = arith.constant 0 : index
    %101 = vector.load %arg2[%c14, %c0_101, %c0_102] : memref<16x64x256xf32, #tpu.memory_space<vmem>>, vector<1x64x256xf32>
    %102 = vector.shape_cast %101 : vector<1x64x256xf32> to vector<64x256xf32>
    %cst_103 = arith.constant dense<0.000000e+00> : vector<64x3xf32>
    %103 = tpu.matmul %102, %1, %cst_103 {dimension_numbers = #tpu.dot_dimension_numbers<[1], [0], [0], [1], [0, 0, 1, 1], [], []>} : vector<64x256xf32>, vector<256x3xf32>, vector<64x3xf32> -> vector<64x3xf32>
    %c14_104 = arith.constant 14 : index
    %c0_105 = arith.constant 0 : index
    %c0_106 = arith.constant 0 : index
    %104 = vector.load %arg3[%c14_104, %c0_105, %c0_106] : memref<16x3x32xf32, #tpu.memory_space<vmem>>, vector<1x3x32xf32>
    %105 = vector.shape_cast %104 : vector<1x3x32xf32> to vector<3x32xf32>
    %cst_107 = arith.constant dense<0.000000e+00> : vector<64x32xf32>
    %106 = tpu.matmul %103, %105, %cst_107 {dimension_numbers = #tpu.dot_dimension_numbers<[1], [0], [0], [1], [0, 0, 1, 1], [], []>} : vector<64x3xf32>, vector<3x32xf32>, vector<64x32xf32> -> vector<64x32xf32>
    %107 = arith.addf %100, %106 : vector<64x32xf32>
    %c15 = arith.constant 15 : index
    %c0_108 = arith.constant 0 : index
    %c0_109 = arith.constant 0 : index
    %108 = vector.load %arg2[%c15, %c0_108, %c0_109] : memref<16x64x256xf32, #tpu.memory_space<vmem>>, vector<1x64x256xf32>
    %109 = vector.shape_cast %108 : vector<1x64x256xf32> to vector<64x256xf32>
    %cst_110 = arith.constant dense<0.000000e+00> : vector<64x3xf32>
    %110 = tpu.matmul %109, %1, %cst_110 {dimension_numbers = #tpu.dot_dimension_numbers<[1], [0], [0], [1], [0, 0, 1, 1], [], []>} : vector<64x256xf32>, vector<256x3xf32>, vector<64x3xf32> -> vector<64x3xf32>
    %c15_111 = arith.constant 15 : index
    %c0_112 = arith.constant 0 : index
    %c0_113 = arith.constant 0 : index
    %111 = vector.load %arg3[%c15_111, %c0_112, %c0_113] : memref<16x3x32xf32, #tpu.memory_space<vmem>>, vector<1x3x32xf32>
    %112 = vector.shape_cast %111 : vector<1x3x32xf32> to vector<3x32xf32>
    %cst_114 = arith.constant dense<0.000000e+00> : vector<64x32xf32>
    %113 = tpu.matmul %110, %112, %cst_114 {dimension_numbers = #tpu.dot_dimension_numbers<[1], [0], [0], [1], [0, 0, 1, 1], [], []>} : vector<64x3xf32>, vector<3x32xf32>, vector<64x32xf32> -> vector<64x32xf32>
    %114 = arith.addf %107, %113 : vector<64x32xf32>
    %c0_115 = arith.constant 0 : index
    %c0_116 = arith.constant 0 : index
    %115 = vector.load %arg4[%c0_115, %c0_116] : memref<1x32xf32, #tpu.memory_space<vmem>>, vector<1x32xf32>
    %116 = vector.broadcast %115 : vector<1x32xf32> to vector<64x32xf32>
    %117 = arith.addf %114, %116 : vector<64x32xf32>
    %cst_117 = arith.constant 0.000000e+00 : f32
    %118 = vector.broadcast %cst_117 : f32 to vector<64x32xf32>
    %119 = arith.maximumf %117, %118 : vector<64x32xf32>
    %cst_118 = arith.constant 0.000000e+00 : f32
    %120 = vector.broadcast %cst_118 : f32 to vector<16x64xf32>
    %c0_119 = arith.constant 0 : index
    %c0_120 = arith.constant 0 : index
    %c0_121 = arith.constant 0 : index
    %121 = vector.load %arg5[%c0_119, %c0_120, %c0_121] : memref<16x16x64xf32, #tpu.memory_space<vmem>>, vector<1x16x64xf32>
    %122 = vector.shape_cast %121 : vector<1x16x64xf32> to vector<16x64xf32>
    %cst_122 = arith.constant dense<0.000000e+00> : vector<16x32xf32>
    %123 = tpu.matmul %122, %119, %cst_122 {dimension_numbers = #tpu.dot_dimension_numbers<[1], [0], [0], [1], [0, 0, 1, 1], [], []>} : vector<16x64xf32>, vector<64x32xf32>, vector<16x32xf32> -> vector<16x32xf32>
    %c0_123 = arith.constant 0 : index
    %c0_124 = arith.constant 0 : index
    %c0_125 = arith.constant 0 : index
    %124 = vector.load %arg6[%c0_123, %c0_124, %c0_125] : memref<16x32x64xf32, #tpu.memory_space<vmem>>, vector<1x32x64xf32>
    %125 = vector.shape_cast %124 : vector<1x32x64xf32> to vector<32x64xf32>
    %cst_126 = arith.constant dense<0.000000e+00> : vector<16x64xf32>
    %126 = tpu.matmul %123, %125, %cst_126 {dimension_numbers = #tpu.dot_dimension_numbers<[1], [0], [0], [1], [0, 0, 1, 1], [], []>} : vector<16x32xf32>, vector<32x64xf32>, vector<16x64xf32> -> vector<16x64xf32>
    %127 = arith.addf %120, %126 : vector<16x64xf32>
    %c1_127 = arith.constant 1 : index
    %c0_128 = arith.constant 0 : index
    %c0_129 = arith.constant 0 : index
    %128 = vector.load %arg5[%c1_127, %c0_128, %c0_129] : memref<16x16x64xf32, #tpu.memory_space<vmem>>, vector<1x16x64xf32>
    %129 = vector.shape_cast %128 : vector<1x16x64xf32> to vector<16x64xf32>
    %cst_130 = arith.constant dense<0.000000e+00> : vector<16x32xf32>
    %130 = tpu.matmul %129, %119, %cst_130 {dimension_numbers = #tpu.dot_dimension_numbers<[1], [0], [0], [1], [0, 0, 1, 1], [], []>} : vector<16x64xf32>, vector<64x32xf32>, vector<16x32xf32> -> vector<16x32xf32>
    %c1_131 = arith.constant 1 : index
    %c0_132 = arith.constant 0 : index
    %c0_133 = arith.constant 0 : index
    %131 = vector.load %arg6[%c1_131, %c0_132, %c0_133] : memref<16x32x64xf32, #tpu.memory_space<vmem>>, vector<1x32x64xf32>
    %132 = vector.shape_cast %131 : vector<1x32x64xf32> to vector<32x64xf32>
    %cst_134 = arith.constant dense<0.000000e+00> : vector<16x64xf32>
    %133 = tpu.matmul %130, %132, %cst_134 {dimension_numbers = #tpu.dot_dimension_numbers<[1], [0], [0], [1], [0, 0, 1, 1], [], []>} : vector<16x32xf32>, vector<32x64xf32>, vector<16x64xf32> -> vector<16x64xf32>
    %134 = arith.addf %127, %133 : vector<16x64xf32>
    %c2_135 = arith.constant 2 : index
    %c0_136 = arith.constant 0 : index
    %c0_137 = arith.constant 0 : index
    %135 = vector.load %arg5[%c2_135, %c0_136, %c0_137] : memref<16x16x64xf32, #tpu.memory_space<vmem>>, vector<1x16x64xf32>
    %136 = vector.shape_cast %135 : vector<1x16x64xf32> to vector<16x64xf32>
    %cst_138 = arith.constant dense<0.000000e+00> : vector<16x32xf32>
    %137 = tpu.matmul %136, %119, %cst_138 {dimension_numbers = #tpu.dot_dimension_numbers<[1], [0], [0], [1], [0, 0, 1, 1], [], []>} : vector<16x64xf32>, vector<64x32xf32>, vector<16x32xf32> -> vector<16x32xf32>
    %c2_139 = arith.constant 2 : index
    %c0_140 = arith.constant 0 : index
    %c0_141 = arith.constant 0 : index
    %138 = vector.load %arg6[%c2_139, %c0_140, %c0_141] : memref<16x32x64xf32, #tpu.memory_space<vmem>>, vector<1x32x64xf32>
    %139 = vector.shape_cast %138 : vector<1x32x64xf32> to vector<32x64xf32>
    %cst_142 = arith.constant dense<0.000000e+00> : vector<16x64xf32>
    %140 = tpu.matmul %137, %139, %cst_142 {dimension_numbers = #tpu.dot_dimension_numbers<[1], [0], [0], [1], [0, 0, 1, 1], [], []>} : vector<16x32xf32>, vector<32x64xf32>, vector<16x64xf32> -> vector<16x64xf32>
    %141 = arith.addf %134, %140 : vector<16x64xf32>
    %c3_143 = arith.constant 3 : index
    %c0_144 = arith.constant 0 : index
    %c0_145 = arith.constant 0 : index
    %142 = vector.load %arg5[%c3_143, %c0_144, %c0_145] : memref<16x16x64xf32, #tpu.memory_space<vmem>>, vector<1x16x64xf32>
    %143 = vector.shape_cast %142 : vector<1x16x64xf32> to vector<16x64xf32>
    %cst_146 = arith.constant dense<0.000000e+00> : vector<16x32xf32>
    %144 = tpu.matmul %143, %119, %cst_146 {dimension_numbers = #tpu.dot_dimension_numbers<[1], [0], [0], [1], [0, 0, 1, 1], [], []>} : vector<16x64xf32>, vector<64x32xf32>, vector<16x32xf32> -> vector<16x32xf32>
    %c3_147 = arith.constant 3 : index
    %c0_148 = arith.constant 0 : index
    %c0_149 = arith.constant 0 : index
    %145 = vector.load %arg6[%c3_147, %c0_148, %c0_149] : memref<16x32x64xf32, #tpu.memory_space<vmem>>, vector<1x32x64xf32>
    %146 = vector.shape_cast %145 : vector<1x32x64xf32> to vector<32x64xf32>
    %cst_150 = arith.constant dense<0.000000e+00> : vector<16x64xf32>
    %147 = tpu.matmul %144, %146, %cst_150 {dimension_numbers = #tpu.dot_dimension_numbers<[1], [0], [0], [1], [0, 0, 1, 1], [], []>} : vector<16x32xf32>, vector<32x64xf32>, vector<16x64xf32> -> vector<16x64xf32>
    %148 = arith.addf %141, %147 : vector<16x64xf32>
    %c4_151 = arith.constant 4 : index
    %c0_152 = arith.constant 0 : index
    %c0_153 = arith.constant 0 : index
    %149 = vector.load %arg5[%c4_151, %c0_152, %c0_153] : memref<16x16x64xf32, #tpu.memory_space<vmem>>, vector<1x16x64xf32>
    %150 = vector.shape_cast %149 : vector<1x16x64xf32> to vector<16x64xf32>
    %cst_154 = arith.constant dense<0.000000e+00> : vector<16x32xf32>
    %151 = tpu.matmul %150, %119, %cst_154 {dimension_numbers = #tpu.dot_dimension_numbers<[1], [0], [0], [1], [0, 0, 1, 1], [], []>} : vector<16x64xf32>, vector<64x32xf32>, vector<16x32xf32> -> vector<16x32xf32>
    %c4_155 = arith.constant 4 : index
    %c0_156 = arith.constant 0 : index
    %c0_157 = arith.constant 0 : index
    %152 = vector.load %arg6[%c4_155, %c0_156, %c0_157] : memref<16x32x64xf32, #tpu.memory_space<vmem>>, vector<1x32x64xf32>
    %153 = vector.shape_cast %152 : vector<1x32x64xf32> to vector<32x64xf32>
    %cst_158 = arith.constant dense<0.000000e+00> : vector<16x64xf32>
    %154 = tpu.matmul %151, %153, %cst_158 {dimension_numbers = #tpu.dot_dimension_numbers<[1], [0], [0], [1], [0, 0, 1, 1], [], []>} : vector<16x32xf32>, vector<32x64xf32>, vector<16x64xf32> -> vector<16x64xf32>
    %155 = arith.addf %148, %154 : vector<16x64xf32>
    %c5_159 = arith.constant 5 : index
    %c0_160 = arith.constant 0 : index
    %c0_161 = arith.constant 0 : index
    %156 = vector.load %arg5[%c5_159, %c0_160, %c0_161] : memref<16x16x64xf32, #tpu.memory_space<vmem>>, vector<1x16x64xf32>
    %157 = vector.shape_cast %156 : vector<1x16x64xf32> to vector<16x64xf32>
    %cst_162 = arith.constant dense<0.000000e+00> : vector<16x32xf32>
    %158 = tpu.matmul %157, %119, %cst_162 {dimension_numbers = #tpu.dot_dimension_numbers<[1], [0], [0], [1], [0, 0, 1, 1], [], []>} : vector<16x64xf32>, vector<64x32xf32>, vector<16x32xf32> -> vector<16x32xf32>
    %c5_163 = arith.constant 5 : index
    %c0_164 = arith.constant 0 : index
    %c0_165 = arith.constant 0 : index
    %159 = vector.load %arg6[%c5_163, %c0_164, %c0_165] : memref<16x32x64xf32, #tpu.memory_space<vmem>>, vector<1x32x64xf32>
    %160 = vector.shape_cast %159 : vector<1x32x64xf32> to vector<32x64xf32>
    %cst_166 = arith.constant dense<0.000000e+00> : vector<16x64xf32>
    %161 = tpu.matmul %158, %160, %cst_166 {dimension_numbers = #tpu.dot_dimension_numbers<[1], [0], [0], [1], [0, 0, 1, 1], [], []>} : vector<16x32xf32>, vector<32x64xf32>, vector<16x64xf32> -> vector<16x64xf32>
    %162 = arith.addf %155, %161 : vector<16x64xf32>
    %c6_167 = arith.constant 6 : index
    %c0_168 = arith.constant 0 : index
    %c0_169 = arith.constant 0 : index
    %163 = vector.load %arg5[%c6_167, %c0_168, %c0_169] : memref<16x16x64xf32, #tpu.memory_space<vmem>>, vector<1x16x64xf32>
    %164 = vector.shape_cast %163 : vector<1x16x64xf32> to vector<16x64xf32>
    %cst_170 = arith.constant dense<0.000000e+00> : vector<16x32xf32>
    %165 = tpu.matmul %164, %119, %cst_170 {dimension_numbers = #tpu.dot_dimension_numbers<[1], [0], [0], [1], [0, 0, 1, 1], [], []>} : vector<16x64xf32>, vector<64x32xf32>, vector<16x32xf32> -> vector<16x32xf32>
    %c6_171 = arith.constant 6 : index
    %c0_172 = arith.constant 0 : index
    %c0_173 = arith.constant 0 : index
    %166 = vector.load %arg6[%c6_171, %c0_172, %c0_173] : memref<16x32x64xf32, #tpu.memory_space<vmem>>, vector<1x32x64xf32>
    %167 = vector.shape_cast %166 : vector<1x32x64xf32> to vector<32x64xf32>
    %cst_174 = arith.constant dense<0.000000e+00> : vector<16x64xf32>
    %168 = tpu.matmul %165, %167, %cst_174 {dimension_numbers = #tpu.dot_dimension_numbers<[1], [0], [0], [1], [0, 0, 1, 1], [], []>} : vector<16x32xf32>, vector<32x64xf32>, vector<16x64xf32> -> vector<16x64xf32>
    %169 = arith.addf %162, %168 : vector<16x64xf32>
    %c7_175 = arith.constant 7 : index
    %c0_176 = arith.constant 0 : index
    %c0_177 = arith.constant 0 : index
    %170 = vector.load %arg5[%c7_175, %c0_176, %c0_177] : memref<16x16x64xf32, #tpu.memory_space<vmem>>, vector<1x16x64xf32>
    %171 = vector.shape_cast %170 : vector<1x16x64xf32> to vector<16x64xf32>
    %cst_178 = arith.constant dense<0.000000e+00> : vector<16x32xf32>
    %172 = tpu.matmul %171, %119, %cst_178 {dimension_numbers = #tpu.dot_dimension_numbers<[1], [0], [0], [1], [0, 0, 1, 1], [], []>} : vector<16x64xf32>, vector<64x32xf32>, vector<16x32xf32> -> vector<16x32xf32>
    %c7_179 = arith.constant 7 : index
    %c0_180 = arith.constant 0 : index
    %c0_181 = arith.constant 0 : index
    %173 = vector.load %arg6[%c7_179, %c0_180, %c0_181] : memref<16x32x64xf32, #tpu.memory_space<vmem>>, vector<1x32x64xf32>
    %174 = vector.shape_cast %173 : vector<1x32x64xf32> to vector<32x64xf32>
    %cst_182 = arith.constant dense<0.000000e+00> : vector<16x64xf32>
    %175 = tpu.matmul %172, %174, %cst_182 {dimension_numbers = #tpu.dot_dimension_numbers<[1], [0], [0], [1], [0, 0, 1, 1], [], []>} : vector<16x32xf32>, vector<32x64xf32>, vector<16x64xf32> -> vector<16x64xf32>
    %176 = arith.addf %169, %175 : vector<16x64xf32>
    %c8_183 = arith.constant 8 : index
    %c0_184 = arith.constant 0 : index
    %c0_185 = arith.constant 0 : index
    %177 = vector.load %arg5[%c8_183, %c0_184, %c0_185] : memref<16x16x64xf32, #tpu.memory_space<vmem>>, vector<1x16x64xf32>
    %178 = vector.shape_cast %177 : vector<1x16x64xf32> to vector<16x64xf32>
    %cst_186 = arith.constant dense<0.000000e+00> : vector<16x32xf32>
    %179 = tpu.matmul %178, %119, %cst_186 {dimension_numbers = #tpu.dot_dimension_numbers<[1], [0], [0], [1], [0, 0, 1, 1], [], []>} : vector<16x64xf32>, vector<64x32xf32>, vector<16x32xf32> -> vector<16x32xf32>
    %c8_187 = arith.constant 8 : index
    %c0_188 = arith.constant 0 : index
    %c0_189 = arith.constant 0 : index
    %180 = vector.load %arg6[%c8_187, %c0_188, %c0_189] : memref<16x32x64xf32, #tpu.memory_space<vmem>>, vector<1x32x64xf32>
    %181 = vector.shape_cast %180 : vector<1x32x64xf32> to vector<32x64xf32>
    %cst_190 = arith.constant dense<0.000000e+00> : vector<16x64xf32>
    %182 = tpu.matmul %179, %181, %cst_190 {dimension_numbers = #tpu.dot_dimension_numbers<[1], [0], [0], [1], [0, 0, 1, 1], [], []>} : vector<16x32xf32>, vector<32x64xf32>, vector<16x64xf32> -> vector<16x64xf32>
    %183 = arith.addf %176, %182 : vector<16x64xf32>
    %c9_191 = arith.constant 9 : index
    %c0_192 = arith.constant 0 : index
    %c0_193 = arith.constant 0 : index
    %184 = vector.load %arg5[%c9_191, %c0_192, %c0_193] : memref<16x16x64xf32, #tpu.memory_space<vmem>>, vector<1x16x64xf32>
    %185 = vector.shape_cast %184 : vector<1x16x64xf32> to vector<16x64xf32>
    %cst_194 = arith.constant dense<0.000000e+00> : vector<16x32xf32>
    %186 = tpu.matmul %185, %119, %cst_194 {dimension_numbers = #tpu.dot_dimension_numbers<[1], [0], [0], [1], [0, 0, 1, 1], [], []>} : vector<16x64xf32>, vector<64x32xf32>, vector<16x32xf32> -> vector<16x32xf32>
    %c9_195 = arith.constant 9 : index
    %c0_196 = arith.constant 0 : index
    %c0_197 = arith.constant 0 : index
    %187 = vector.load %arg6[%c9_195, %c0_196, %c0_197] : memref<16x32x64xf32, #tpu.memory_space<vmem>>, vector<1x32x64xf32>
    %188 = vector.shape_cast %187 : vector<1x32x64xf32> to vector<32x64xf32>
    %cst_198 = arith.constant dense<0.000000e+00> : vector<16x64xf32>
    %189 = tpu.matmul %186, %188, %cst_198 {dimension_numbers = #tpu.dot_dimension_numbers<[1], [0], [0], [1], [0, 0, 1, 1], [], []>} : vector<16x32xf32>, vector<32x64xf32>, vector<16x64xf32> -> vector<16x64xf32>
    %190 = arith.addf %183, %189 : vector<16x64xf32>
    %c10_199 = arith.constant 10 : index
    %c0_200 = arith.constant 0 : index
    %c0_201 = arith.constant 0 : index
    %191 = vector.load %arg5[%c10_199, %c0_200, %c0_201] : memref<16x16x64xf32, #tpu.memory_space<vmem>>, vector<1x16x64xf32>
    %192 = vector.shape_cast %191 : vector<1x16x64xf32> to vector<16x64xf32>
    %cst_202 = arith.constant dense<0.000000e+00> : vector<16x32xf32>
    %193 = tpu.matmul %192, %119, %cst_202 {dimension_numbers = #tpu.dot_dimension_numbers<[1], [0], [0], [1], [0, 0, 1, 1], [], []>} : vector<16x64xf32>, vector<64x32xf32>, vector<16x32xf32> -> vector<16x32xf32>
    %c10_203 = arith.constant 10 : index
    %c0_204 = arith.constant 0 : index
    %c0_205 = arith.constant 0 : index
    %194 = vector.load %arg6[%c10_203, %c0_204, %c0_205] : memref<16x32x64xf32, #tpu.memory_space<vmem>>, vector<1x32x64xf32>
    %195 = vector.shape_cast %194 : vector<1x32x64xf32> to vector<32x64xf32>
    %cst_206 = arith.constant dense<0.000000e+00> : vector<16x64xf32>
    %196 = tpu.matmul %193, %195, %cst_206 {dimension_numbers = #tpu.dot_dimension_numbers<[1], [0], [0], [1], [0, 0, 1, 1], [], []>} : vector<16x32xf32>, vector<32x64xf32>, vector<16x64xf32> -> vector<16x64xf32>
    %197 = arith.addf %190, %196 : vector<16x64xf32>
    %c11_207 = arith.constant 11 : index
    %c0_208 = arith.constant 0 : index
    %c0_209 = arith.constant 0 : index
    %198 = vector.load %arg5[%c11_207, %c0_208, %c0_209] : memref<16x16x64xf32, #tpu.memory_space<vmem>>, vector<1x16x64xf32>
    %199 = vector.shape_cast %198 : vector<1x16x64xf32> to vector<16x64xf32>
    %cst_210 = arith.constant dense<0.000000e+00> : vector<16x32xf32>
    %200 = tpu.matmul %199, %119, %cst_210 {dimension_numbers = #tpu.dot_dimension_numbers<[1], [0], [0], [1], [0, 0, 1, 1], [], []>} : vector<16x64xf32>, vector<64x32xf32>, vector<16x32xf32> -> vector<16x32xf32>
    %c11_211 = arith.constant 11 : index
    %c0_212 = arith.constant 0 : index
    %c0_213 = arith.constant 0 : index
    %201 = vector.load %arg6[%c11_211, %c0_212, %c0_213] : memref<16x32x64xf32, #tpu.memory_space<vmem>>, vector<1x32x64xf32>
    %202 = vector.shape_cast %201 : vector<1x32x64xf32> to vector<32x64xf32>
    %cst_214 = arith.constant dense<0.000000e+00> : vector<16x64xf32>
    %203 = tpu.matmul %200, %202, %cst_214 {dimension_numbers = #tpu.dot_dimension_numbers<[1], [0], [0], [1], [0, 0, 1, 1], [], []>} : vector<16x32xf32>, vector<32x64xf32>, vector<16x64xf32> -> vector<16x64xf32>
    %204 = arith.addf %197, %203 : vector<16x64xf32>
    %c12_215 = arith.constant 12 : index
    %c0_216 = arith.constant 0 : index
    %c0_217 = arith.constant 0 : index
    %205 = vector.load %arg5[%c12_215, %c0_216, %c0_217] : memref<16x16x64xf32, #tpu.memory_space<vmem>>, vector<1x16x64xf32>
    %206 = vector.shape_cast %205 : vector<1x16x64xf32> to vector<16x64xf32>
    %cst_218 = arith.constant dense<0.000000e+00> : vector<16x32xf32>
    %207 = tpu.matmul %206, %119, %cst_218 {dimension_numbers = #tpu.dot_dimension_numbers<[1], [0], [0], [1], [0, 0, 1, 1], [], []>} : vector<16x64xf32>, vector<64x32xf32>, vector<16x32xf32> -> vector<16x32xf32>
    %c12_219 = arith.constant 12 : index
    %c0_220 = arith.constant 0 : index
    %c0_221 = arith.constant 0 : index
    %208 = vector.load %arg6[%c12_219, %c0_220, %c0_221] : memref<16x32x64xf32, #tpu.memory_space<vmem>>, vector<1x32x64xf32>
    %209 = vector.shape_cast %208 : vector<1x32x64xf32> to vector<32x64xf32>
    %cst_222 = arith.constant dense<0.000000e+00> : vector<16x64xf32>
    %210 = tpu.matmul %207, %209, %cst_222 {dimension_numbers = #tpu.dot_dimension_numbers<[1], [0], [0], [1], [0, 0, 1, 1], [], []>} : vector<16x32xf32>, vector<32x64xf32>, vector<16x64xf32> -> vector<16x64xf32>
    %211 = arith.addf %204, %210 : vector<16x64xf32>
    %c13_223 = arith.constant 13 : index
    %c0_224 = arith.constant 0 : index
    %c0_225 = arith.constant 0 : index
    %212 = vector.load %arg5[%c13_223, %c0_224, %c0_225] : memref<16x16x64xf32, #tpu.memory_space<vmem>>, vector<1x16x64xf32>
    %213 = vector.shape_cast %212 : vector<1x16x64xf32> to vector<16x64xf32>
    %cst_226 = arith.constant dense<0.000000e+00> : vector<16x32xf32>
    %214 = tpu.matmul %213, %119, %cst_226 {dimension_numbers = #tpu.dot_dimension_numbers<[1], [0], [0], [1], [0, 0, 1, 1], [], []>} : vector<16x64xf32>, vector<64x32xf32>, vector<16x32xf32> -> vector<16x32xf32>
    %c13_227 = arith.constant 13 : index
    %c0_228 = arith.constant 0 : index
    %c0_229 = arith.constant 0 : index
    %215 = vector.load %arg6[%c13_227, %c0_228, %c0_229] : memref<16x32x64xf32, #tpu.memory_space<vmem>>, vector<1x32x64xf32>
    %216 = vector.shape_cast %215 : vector<1x32x64xf32> to vector<32x64xf32>
    %cst_230 = arith.constant dense<0.000000e+00> : vector<16x64xf32>
    %217 = tpu.matmul %214, %216, %cst_230 {dimension_numbers = #tpu.dot_dimension_numbers<[1], [0], [0], [1], [0, 0, 1, 1], [], []>} : vector<16x32xf32>, vector<32x64xf32>, vector<16x64xf32> -> vector<16x64xf32>
    %218 = arith.addf %211, %217 : vector<16x64xf32>
    %c14_231 = arith.constant 14 : index
    %c0_232 = arith.constant 0 : index
    %c0_233 = arith.constant 0 : index
    %219 = vector.load %arg5[%c14_231, %c0_232, %c0_233] : memref<16x16x64xf32, #tpu.memory_space<vmem>>, vector<1x16x64xf32>
    %220 = vector.shape_cast %219 : vector<1x16x64xf32> to vector<16x64xf32>
    %cst_234 = arith.constant dense<0.000000e+00> : vector<16x32xf32>
    %221 = tpu.matmul %220, %119, %cst_234 {dimension_numbers = #tpu.dot_dimension_numbers<[1], [0], [0], [1], [0, 0, 1, 1], [], []>} : vector<16x64xf32>, vector<64x32xf32>, vector<16x32xf32> -> vector<16x32xf32>
    %c14_235 = arith.constant 14 : index
    %c0_236 = arith.constant 0 : index
    %c0_237 = arith.constant 0 : index
    %222 = vector.load %arg6[%c14_235, %c0_236, %c0_237] : memref<16x32x64xf32, #tpu.memory_space<vmem>>, vector<1x32x64xf32>
    %223 = vector.shape_cast %222 : vector<1x32x64xf32> to vector<32x64xf32>
    %cst_238 = arith.constant dense<0.000000e+00> : vector<16x64xf32>
    %224 = tpu.matmul %221, %223, %cst_238 {dimension_numbers = #tpu.dot_dimension_numbers<[1], [0], [0], [1], [0, 0, 1, 1], [], []>} : vector<16x32xf32>, vector<32x64xf32>, vector<16x64xf32> -> vector<16x64xf32>
    %225 = arith.addf %218, %224 : vector<16x64xf32>
    %c15_239 = arith.constant 15 : index
    %c0_240 = arith.constant 0 : index
    %c0_241 = arith.constant 0 : index
    %226 = vector.load %arg5[%c15_239, %c0_240, %c0_241] : memref<16x16x64xf32, #tpu.memory_space<vmem>>, vector<1x16x64xf32>
    %227 = vector.shape_cast %226 : vector<1x16x64xf32> to vector<16x64xf32>
    %cst_242 = arith.constant dense<0.000000e+00> : vector<16x32xf32>
    %228 = tpu.matmul %227, %119, %cst_242 {dimension_numbers = #tpu.dot_dimension_numbers<[1], [0], [0], [1], [0, 0, 1, 1], [], []>} : vector<16x64xf32>, vector<64x32xf32>, vector<16x32xf32> -> vector<16x32xf32>
    %c15_243 = arith.constant 15 : index
    %c0_244 = arith.constant 0 : index
    %c0_245 = arith.constant 0 : index
    %229 = vector.load %arg6[%c15_243, %c0_244, %c0_245] : memref<16x32x64xf32, #tpu.memory_space<vmem>>, vector<1x32x64xf32>
    %230 = vector.shape_cast %229 : vector<1x32x64xf32> to vector<32x64xf32>
    %cst_246 = arith.constant dense<0.000000e+00> : vector<16x64xf32>
    %231 = tpu.matmul %228, %230, %cst_246 {dimension_numbers = #tpu.dot_dimension_numbers<[1], [0], [0], [1], [0, 0, 1, 1], [], []>} : vector<16x32xf32>, vector<32x64xf32>, vector<16x64xf32> -> vector<16x64xf32>
    %232 = arith.addf %225, %231 : vector<16x64xf32>
    %c0_247 = arith.constant 0 : index
    %c0_248 = arith.constant 0 : index
    %233 = vector.load %arg7[%c0_247, %c0_248] : memref<1x64xf32, #tpu.memory_space<vmem>>, vector<1x64xf32>
    %234 = vector.broadcast %233 : vector<1x64xf32> to vector<16x64xf32>
    %235 = arith.addf %232, %234 : vector<16x64xf32>
    %cst_249 = arith.constant 0.000000e+00 : f32
    %236 = vector.broadcast %cst_249 : f32 to vector<16x64xf32>
    %237 = arith.maximumf %235, %236 : vector<16x64xf32>
    %cst_250 = arith.constant 0.000000e+00 : f32
    %238 = vector.broadcast %cst_250 : f32 to vector<4x4xf32>
    %c0_251 = arith.constant 0 : index
    %c0_252 = arith.constant 0 : index
    %c0_253 = arith.constant 0 : index
    %239 = vector.load %arg8[%c0_251, %c0_252, %c0_253] : memref<16x4x16xf32, #tpu.memory_space<vmem>>, vector<1x4x16xf32>
    %240 = vector.shape_cast %239 : vector<1x4x16xf32> to vector<4x16xf32>
    %cst_254 = arith.constant dense<0.000000e+00> : vector<4x64xf32>
    %241 = tpu.matmul %240, %237, %cst_254 {dimension_numbers = #tpu.dot_dimension_numbers<[1], [0], [0], [1], [0, 0, 1, 1], [], []>} : vector<4x16xf32>, vector<16x64xf32>, vector<4x64xf32> -> vector<4x64xf32>
    %c0_255 = arith.constant 0 : index
    %c0_256 = arith.constant 0 : index
    %c0_257 = arith.constant 0 : index
    %242 = vector.load %arg9[%c0_255, %c0_256, %c0_257] : memref<16x64x4xf32, #tpu.memory_space<vmem>>, vector<1x64x4xf32>
    %243 = vector.shape_cast %242 : vector<1x64x4xf32> to vector<64x4xf32>
    %cst_258 = arith.constant dense<0.000000e+00> : vector<4x4xf32>
    %244 = tpu.matmul %241, %243, %cst_258 {dimension_numbers = #tpu.dot_dimension_numbers<[1], [0], [0], [1], [0, 0, 1, 1], [], []>} : vector<4x64xf32>, vector<64x4xf32>, vector<4x4xf32> -> vector<4x4xf32>
    %245 = arith.addf %238, %244 : vector<4x4xf32>
    %c1_259 = arith.constant 1 : index
    %c0_260 = arith.constant 0 : index
    %c0_261 = arith.constant 0 : index
    %246 = vector.load %arg8[%c1_259, %c0_260, %c0_261] : memref<16x4x16xf32, #tpu.memory_space<vmem>>, vector<1x4x16xf32>
    %247 = vector.shape_cast %246 : vector<1x4x16xf32> to vector<4x16xf32>
    %cst_262 = arith.constant dense<0.000000e+00> : vector<4x64xf32>
    %248 = tpu.matmul %247, %237, %cst_262 {dimension_numbers = #tpu.dot_dimension_numbers<[1], [0], [0], [1], [0, 0, 1, 1], [], []>} : vector<4x16xf32>, vector<16x64xf32>, vector<4x64xf32> -> vector<4x64xf32>
    %c1_263 = arith.constant 1 : index
    %c0_264 = arith.constant 0 : index
    %c0_265 = arith.constant 0 : index
    %249 = vector.load %arg9[%c1_263, %c0_264, %c0_265] : memref<16x64x4xf32, #tpu.memory_space<vmem>>, vector<1x64x4xf32>
    %250 = vector.shape_cast %249 : vector<1x64x4xf32> to vector<64x4xf32>
    %cst_266 = arith.constant dense<0.000000e+00> : vector<4x4xf32>
    %251 = tpu.matmul %248, %250, %cst_266 {dimension_numbers = #tpu.dot_dimension_numbers<[1], [0], [0], [1], [0, 0, 1, 1], [], []>} : vector<4x64xf32>, vector<64x4xf32>, vector<4x4xf32> -> vector<4x4xf32>
    %252 = arith.addf %245, %251 : vector<4x4xf32>
    %c2_267 = arith.constant 2 : index
    %c0_268 = arith.constant 0 : index
    %c0_269 = arith.constant 0 : index
    %253 = vector.load %arg8[%c2_267, %c0_268, %c0_269] : memref<16x4x16xf32, #tpu.memory_space<vmem>>, vector<1x4x16xf32>
    %254 = vector.shape_cast %253 : vector<1x4x16xf32> to vector<4x16xf32>
    %cst_270 = arith.constant dense<0.000000e+00> : vector<4x64xf32>
    %255 = tpu.matmul %254, %237, %cst_270 {dimension_numbers = #tpu.dot_dimension_numbers<[1], [0], [0], [1], [0, 0, 1, 1], [], []>} : vector<4x16xf32>, vector<16x64xf32>, vector<4x64xf32> -> vector<4x64xf32>
    %c2_271 = arith.constant 2 : index
    %c0_272 = arith.constant 0 : index
    %c0_273 = arith.constant 0 : index
    %256 = vector.load %arg9[%c2_271, %c0_272, %c0_273] : memref<16x64x4xf32, #tpu.memory_space<vmem>>, vector<1x64x4xf32>
    %257 = vector.shape_cast %256 : vector<1x64x4xf32> to vector<64x4xf32>
    %cst_274 = arith.constant dense<0.000000e+00> : vector<4x4xf32>
    %258 = tpu.matmul %255, %257, %cst_274 {dimension_numbers = #tpu.dot_dimension_numbers<[1], [0], [0], [1], [0, 0, 1, 1], [], []>} : vector<4x64xf32>, vector<64x4xf32>, vector<4x4xf32> -> vector<4x4xf32>
    %259 = arith.addf %252, %258 : vector<4x4xf32>
    %c3_275 = arith.constant 3 : index
    %c0_276 = arith.constant 0 : index
    %c0_277 = arith.constant 0 : index
    %260 = vector.load %arg8[%c3_275, %c0_276, %c0_277] : memref<16x4x16xf32, #tpu.memory_space<vmem>>, vector<1x4x16xf32>
    %261 = vector.shape_cast %260 : vector<1x4x16xf32> to vector<4x16xf32>
    %cst_278 = arith.constant dense<0.000000e+00> : vector<4x64xf32>
    %262 = tpu.matmul %261, %237, %cst_278 {dimension_numbers = #tpu.dot_dimension_numbers<[1], [0], [0], [1], [0, 0, 1, 1], [], []>} : vector<4x16xf32>, vector<16x64xf32>, vector<4x64xf32> -> vector<4x64xf32>
    %c3_279 = arith.constant 3 : index
    %c0_280 = arith.constant 0 : index
    %c0_281 = arith.constant 0 : index
    %263 = vector.load %arg9[%c3_279, %c0_280, %c0_281] : memref<16x64x4xf32, #tpu.memory_space<vmem>>, vector<1x64x4xf32>
    %264 = vector.shape_cast %263 : vector<1x64x4xf32> to vector<64x4xf32>
    %cst_282 = arith.constant dense<0.000000e+00> : vector<4x4xf32>
    %265 = tpu.matmul %262, %264, %cst_282 {dimension_numbers = #tpu.dot_dimension_numbers<[1], [0], [0], [1], [0, 0, 1, 1], [], []>} : vector<4x64xf32>, vector<64x4xf32>, vector<4x4xf32> -> vector<4x4xf32>
    %266 = arith.addf %259, %265 : vector<4x4xf32>
    %c4_283 = arith.constant 4 : index
    %c0_284 = arith.constant 0 : index
    %c0_285 = arith.constant 0 : index
    %267 = vector.load %arg8[%c4_283, %c0_284, %c0_285] : memref<16x4x16xf32, #tpu.memory_space<vmem>>, vector<1x4x16xf32>
    %268 = vector.shape_cast %267 : vector<1x4x16xf32> to vector<4x16xf32>
    %cst_286 = arith.constant dense<0.000000e+00> : vector<4x64xf32>
    %269 = tpu.matmul %268, %237, %cst_286 {dimension_numbers = #tpu.dot_dimension_numbers<[1], [0], [0], [1], [0, 0, 1, 1], [], []>} : vector<4x16xf32>, vector<16x64xf32>, vector<4x64xf32> -> vector<4x64xf32>
    %c4_287 = arith.constant 4 : index
    %c0_288 = arith.constant 0 : index
    %c0_289 = arith.constant 0 : index
    %270 = vector.load %arg9[%c4_287, %c0_288, %c0_289] : memref<16x64x4xf32, #tpu.memory_space<vmem>>, vector<1x64x4xf32>
    %271 = vector.shape_cast %270 : vector<1x64x4xf32> to vector<64x4xf32>
    %cst_290 = arith.constant dense<0.000000e+00> : vector<4x4xf32>
    %272 = tpu.matmul %269, %271, %cst_290 {dimension_numbers = #tpu.dot_dimension_numbers<[1], [0], [0], [1], [0, 0, 1, 1], [], []>} : vector<4x64xf32>, vector<64x4xf32>, vector<4x4xf32> -> vector<4x4xf32>
    %273 = arith.addf %266, %272 : vector<4x4xf32>
    %c5_291 = arith.constant 5 : index
    %c0_292 = arith.constant 0 : index
    %c0_293 = arith.constant 0 : index
    %274 = vector.load %arg8[%c5_291, %c0_292, %c0_293] : memref<16x4x16xf32, #tpu.memory_space<vmem>>, vector<1x4x16xf32>
    %275 = vector.shape_cast %274 : vector<1x4x16xf32> to vector<4x16xf32>
    %cst_294 = arith.constant dense<0.000000e+00> : vector<4x64xf32>
    %276 = tpu.matmul %275, %237, %cst_294 {dimension_numbers = #tpu.dot_dimension_numbers<[1], [0], [0], [1], [0, 0, 1, 1], [], []>} : vector<4x16xf32>, vector<16x64xf32>, vector<4x64xf32> -> vector<4x64xf32>
    %c5_295 = arith.constant 5 : index
    %c0_296 = arith.constant 0 : index
    %c0_297 = arith.constant 0 : index
    %277 = vector.load %arg9[%c5_295, %c0_296, %c0_297] : memref<16x64x4xf32, #tpu.memory_space<vmem>>, vector<1x64x4xf32>
    %278 = vector.shape_cast %277 : vector<1x64x4xf32> to vector<64x4xf32>
    %cst_298 = arith.constant dense<0.000000e+00> : vector<4x4xf32>
    %279 = tpu.matmul %276, %278, %cst_298 {dimension_numbers = #tpu.dot_dimension_numbers<[1], [0], [0], [1], [0, 0, 1, 1], [], []>} : vector<4x64xf32>, vector<64x4xf32>, vector<4x4xf32> -> vector<4x4xf32>
    %280 = arith.addf %273, %279 : vector<4x4xf32>
    %c6_299 = arith.constant 6 : index
    %c0_300 = arith.constant 0 : index
    %c0_301 = arith.constant 0 : index
    %281 = vector.load %arg8[%c6_299, %c0_300, %c0_301] : memref<16x4x16xf32, #tpu.memory_space<vmem>>, vector<1x4x16xf32>
    %282 = vector.shape_cast %281 : vector<1x4x16xf32> to vector<4x16xf32>
    %cst_302 = arith.constant dense<0.000000e+00> : vector<4x64xf32>
    %283 = tpu.matmul %282, %237, %cst_302 {dimension_numbers = #tpu.dot_dimension_numbers<[1], [0], [0], [1], [0, 0, 1, 1], [], []>} : vector<4x16xf32>, vector<16x64xf32>, vector<4x64xf32> -> vector<4x64xf32>
    %c6_303 = arith.constant 6 : index
    %c0_304 = arith.constant 0 : index
    %c0_305 = arith.constant 0 : index
    %284 = vector.load %arg9[%c6_303, %c0_304, %c0_305] : memref<16x64x4xf32, #tpu.memory_space<vmem>>, vector<1x64x4xf32>
    %285 = vector.shape_cast %284 : vector<1x64x4xf32> to vector<64x4xf32>
    %cst_306 = arith.constant dense<0.000000e+00> : vector<4x4xf32>
    %286 = tpu.matmul %283, %285, %cst_306 {dimension_numbers = #tpu.dot_dimension_numbers<[1], [0], [0], [1], [0, 0, 1, 1], [], []>} : vector<4x64xf32>, vector<64x4xf32>, vector<4x4xf32> -> vector<4x4xf32>
    %287 = arith.addf %280, %286 : vector<4x4xf32>
    %c7_307 = arith.constant 7 : index
    %c0_308 = arith.constant 0 : index
    %c0_309 = arith.constant 0 : index
    %288 = vector.load %arg8[%c7_307, %c0_308, %c0_309] : memref<16x4x16xf32, #tpu.memory_space<vmem>>, vector<1x4x16xf32>
    %289 = vector.shape_cast %288 : vector<1x4x16xf32> to vector<4x16xf32>
    %cst_310 = arith.constant dense<0.000000e+00> : vector<4x64xf32>
    %290 = tpu.matmul %289, %237, %cst_310 {dimension_numbers = #tpu.dot_dimension_numbers<[1], [0], [0], [1], [0, 0, 1, 1], [], []>} : vector<4x16xf32>, vector<16x64xf32>, vector<4x64xf32> -> vector<4x64xf32>
    %c7_311 = arith.constant 7 : index
    %c0_312 = arith.constant 0 : index
    %c0_313 = arith.constant 0 : index
    %291 = vector.load %arg9[%c7_311, %c0_312, %c0_313] : memref<16x64x4xf32, #tpu.memory_space<vmem>>, vector<1x64x4xf32>
    %292 = vector.shape_cast %291 : vector<1x64x4xf32> to vector<64x4xf32>
    %cst_314 = arith.constant dense<0.000000e+00> : vector<4x4xf32>
    %293 = tpu.matmul %290, %292, %cst_314 {dimension_numbers = #tpu.dot_dimension_numbers<[1], [0], [0], [1], [0, 0, 1, 1], [], []>} : vector<4x64xf32>, vector<64x4xf32>, vector<4x4xf32> -> vector<4x4xf32>
    %294 = arith.addf %287, %293 : vector<4x4xf32>
    %c8_315 = arith.constant 8 : index
    %c0_316 = arith.constant 0 : index
    %c0_317 = arith.constant 0 : index
    %295 = vector.load %arg8[%c8_315, %c0_316, %c0_317] : memref<16x4x16xf32, #tpu.memory_space<vmem>>, vector<1x4x16xf32>
    %296 = vector.shape_cast %295 : vector<1x4x16xf32> to vector<4x16xf32>
    %cst_318 = arith.constant dense<0.000000e+00> : vector<4x64xf32>
    %297 = tpu.matmul %296, %237, %cst_318 {dimension_numbers = #tpu.dot_dimension_numbers<[1], [0], [0], [1], [0, 0, 1, 1], [], []>} : vector<4x16xf32>, vector<16x64xf32>, vector<4x64xf32> -> vector<4x64xf32>
    %c8_319 = arith.constant 8 : index
    %c0_320 = arith.constant 0 : index
    %c0_321 = arith.constant 0 : index
    %298 = vector.load %arg9[%c8_319, %c0_320, %c0_321] : memref<16x64x4xf32, #tpu.memory_space<vmem>>, vector<1x64x4xf32>
    %299 = vector.shape_cast %298 : vector<1x64x4xf32> to vector<64x4xf32>
    %cst_322 = arith.constant dense<0.000000e+00> : vector<4x4xf32>
    %300 = tpu.matmul %297, %299, %cst_322 {dimension_numbers = #tpu.dot_dimension_numbers<[1], [0], [0], [1], [0, 0, 1, 1], [], []>} : vector<4x64xf32>, vector<64x4xf32>, vector<4x4xf32> -> vector<4x4xf32>
    %301 = arith.addf %294, %300 : vector<4x4xf32>
    %c9_323 = arith.constant 9 : index
    %c0_324 = arith.constant 0 : index
    %c0_325 = arith.constant 0 : index
    %302 = vector.load %arg8[%c9_323, %c0_324, %c0_325] : memref<16x4x16xf32, #tpu.memory_space<vmem>>, vector<1x4x16xf32>
    %303 = vector.shape_cast %302 : vector<1x4x16xf32> to vector<4x16xf32>
    %cst_326 = arith.constant dense<0.000000e+00> : vector<4x64xf32>
    %304 = tpu.matmul %303, %237, %cst_326 {dimension_numbers = #tpu.dot_dimension_numbers<[1], [0], [0], [1], [0, 0, 1, 1], [], []>} : vector<4x16xf32>, vector<16x64xf32>, vector<4x64xf32> -> vector<4x64xf32>
    %c9_327 = arith.constant 9 : index
    %c0_328 = arith.constant 0 : index
    %c0_329 = arith.constant 0 : index
    %305 = vector.load %arg9[%c9_327, %c0_328, %c0_329] : memref<16x64x4xf32, #tpu.memory_space<vmem>>, vector<1x64x4xf32>
    %306 = vector.shape_cast %305 : vector<1x64x4xf32> to vector<64x4xf32>
    %cst_330 = arith.constant dense<0.000000e+00> : vector<4x4xf32>
    %307 = tpu.matmul %304, %306, %cst_330 {dimension_numbers = #tpu.dot_dimension_numbers<[1], [0], [0], [1], [0, 0, 1, 1], [], []>} : vector<4x64xf32>, vector<64x4xf32>, vector<4x4xf32> -> vector<4x4xf32>
    %308 = arith.addf %301, %307 : vector<4x4xf32>
    %c10_331 = arith.constant 10 : index
    %c0_332 = arith.constant 0 : index
    %c0_333 = arith.constant 0 : index
    %309 = vector.load %arg8[%c10_331, %c0_332, %c0_333] : memref<16x4x16xf32, #tpu.memory_space<vmem>>, vector<1x4x16xf32>
    %310 = vector.shape_cast %309 : vector<1x4x16xf32> to vector<4x16xf32>
    %cst_334 = arith.constant dense<0.000000e+00> : vector<4x64xf32>
    %311 = tpu.matmul %310, %237, %cst_334 {dimension_numbers = #tpu.dot_dimension_numbers<[1], [0], [0], [1], [0, 0, 1, 1], [], []>} : vector<4x16xf32>, vector<16x64xf32>, vector<4x64xf32> -> vector<4x64xf32>
    %c10_335 = arith.constant 10 : index
    %c0_336 = arith.constant 0 : index
    %c0_337 = arith.constant 0 : index
    %312 = vector.load %arg9[%c10_335, %c0_336, %c0_337] : memref<16x64x4xf32, #tpu.memory_space<vmem>>, vector<1x64x4xf32>
    %313 = vector.shape_cast %312 : vector<1x64x4xf32> to vector<64x4xf32>
    %cst_338 = arith.constant dense<0.000000e+00> : vector<4x4xf32>
    %314 = tpu.matmul %311, %313, %cst_338 {dimension_numbers = #tpu.dot_dimension_numbers<[1], [0], [0], [1], [0, 0, 1, 1], [], []>} : vector<4x64xf32>, vector<64x4xf32>, vector<4x4xf32> -> vector<4x4xf32>
    %315 = arith.addf %308, %314 : vector<4x4xf32>
    %c11_339 = arith.constant 11 : index
    %c0_340 = arith.constant 0 : index
    %c0_341 = arith.constant 0 : index
    %316 = vector.load %arg8[%c11_339, %c0_340, %c0_341] : memref<16x4x16xf32, #tpu.memory_space<vmem>>, vector<1x4x16xf32>
    %317 = vector.shape_cast %316 : vector<1x4x16xf32> to vector<4x16xf32>
    %cst_342 = arith.constant dense<0.000000e+00> : vector<4x64xf32>
    %318 = tpu.matmul %317, %237, %cst_342 {dimension_numbers = #tpu.dot_dimension_numbers<[1], [0], [0], [1], [0, 0, 1, 1], [], []>} : vector<4x16xf32>, vector<16x64xf32>, vector<4x64xf32> -> vector<4x64xf32>
    %c11_343 = arith.constant 11 : index
    %c0_344 = arith.constant 0 : index
    %c0_345 = arith.constant 0 : index
    %319 = vector.load %arg9[%c11_343, %c0_344, %c0_345] : memref<16x64x4xf32, #tpu.memory_space<vmem>>, vector<1x64x4xf32>
    %320 = vector.shape_cast %319 : vector<1x64x4xf32> to vector<64x4xf32>
    %cst_346 = arith.constant dense<0.000000e+00> : vector<4x4xf32>
    %321 = tpu.matmul %318, %320, %cst_346 {dimension_numbers = #tpu.dot_dimension_numbers<[1], [0], [0], [1], [0, 0, 1, 1], [], []>} : vector<4x64xf32>, vector<64x4xf32>, vector<4x4xf32> -> vector<4x4xf32>
    %322 = arith.addf %315, %321 : vector<4x4xf32>
    %c12_347 = arith.constant 12 : index
    %c0_348 = arith.constant 0 : index
    %c0_349 = arith.constant 0 : index
    %323 = vector.load %arg8[%c12_347, %c0_348, %c0_349] : memref<16x4x16xf32, #tpu.memory_space<vmem>>, vector<1x4x16xf32>
    %324 = vector.shape_cast %323 : vector<1x4x16xf32> to vector<4x16xf32>
    %cst_350 = arith.constant dense<0.000000e+00> : vector<4x64xf32>
    %325 = tpu.matmul %324, %237, %cst_350 {dimension_numbers = #tpu.dot_dimension_numbers<[1], [0], [0], [1], [0, 0, 1, 1], [], []>} : vector<4x16xf32>, vector<16x64xf32>, vector<4x64xf32> -> vector<4x64xf32>
    %c12_351 = arith.constant 12 : index
    %c0_352 = arith.constant 0 : index
    %c0_353 = arith.constant 0 : index
    %326 = vector.load %arg9[%c12_351, %c0_352, %c0_353] : memref<16x64x4xf32, #tpu.memory_space<vmem>>, vector<1x64x4xf32>
    %327 = vector.shape_cast %326 : vector<1x64x4xf32> to vector<64x4xf32>
    %cst_354 = arith.constant dense<0.000000e+00> : vector<4x4xf32>
    %328 = tpu.matmul %325, %327, %cst_354 {dimension_numbers = #tpu.dot_dimension_numbers<[1], [0], [0], [1], [0, 0, 1, 1], [], []>} : vector<4x64xf32>, vector<64x4xf32>, vector<4x4xf32> -> vector<4x4xf32>
    %329 = arith.addf %322, %328 : vector<4x4xf32>
    %c13_355 = arith.constant 13 : index
    %c0_356 = arith.constant 0 : index
    %c0_357 = arith.constant 0 : index
    %330 = vector.load %arg8[%c13_355, %c0_356, %c0_357] : memref<16x4x16xf32, #tpu.memory_space<vmem>>, vector<1x4x16xf32>
    %331 = vector.shape_cast %330 : vector<1x4x16xf32> to vector<4x16xf32>
    %cst_358 = arith.constant dense<0.000000e+00> : vector<4x64xf32>
    %332 = tpu.matmul %331, %237, %cst_358 {dimension_numbers = #tpu.dot_dimension_numbers<[1], [0], [0], [1], [0, 0, 1, 1], [], []>} : vector<4x16xf32>, vector<16x64xf32>, vector<4x64xf32> -> vector<4x64xf32>
    %c13_359 = arith.constant 13 : index
    %c0_360 = arith.constant 0 : index
    %c0_361 = arith.constant 0 : index
    %333 = vector.load %arg9[%c13_359, %c0_360, %c0_361] : memref<16x64x4xf32, #tpu.memory_space<vmem>>, vector<1x64x4xf32>
    %334 = vector.shape_cast %333 : vector<1x64x4xf32> to vector<64x4xf32>
    %cst_362 = arith.constant dense<0.000000e+00> : vector<4x4xf32>
    %335 = tpu.matmul %332, %334, %cst_362 {dimension_numbers = #tpu.dot_dimension_numbers<[1], [0], [0], [1], [0, 0, 1, 1], [], []>} : vector<4x64xf32>, vector<64x4xf32>, vector<4x4xf32> -> vector<4x4xf32>
    %336 = arith.addf %329, %335 : vector<4x4xf32>
    %c14_363 = arith.constant 14 : index
    %c0_364 = arith.constant 0 : index
    %c0_365 = arith.constant 0 : index
    %337 = vector.load %arg8[%c14_363, %c0_364, %c0_365] : memref<16x4x16xf32, #tpu.memory_space<vmem>>, vector<1x4x16xf32>
    %338 = vector.shape_cast %337 : vector<1x4x16xf32> to vector<4x16xf32>
    %cst_366 = arith.constant dense<0.000000e+00> : vector<4x64xf32>
    %339 = tpu.matmul %338, %237, %cst_366 {dimension_numbers = #tpu.dot_dimension_numbers<[1], [0], [0], [1], [0, 0, 1, 1], [], []>} : vector<4x16xf32>, vector<16x64xf32>, vector<4x64xf32> -> vector<4x64xf32>
    %c14_367 = arith.constant 14 : index
    %c0_368 = arith.constant 0 : index
    %c0_369 = arith.constant 0 : index
    %340 = vector.load %arg9[%c14_367, %c0_368, %c0_369] : memref<16x64x4xf32, #tpu.memory_space<vmem>>, vector<1x64x4xf32>
    %341 = vector.shape_cast %340 : vector<1x64x4xf32> to vector<64x4xf32>
    %cst_370 = arith.constant dense<0.000000e+00> : vector<4x4xf32>
    %342 = tpu.matmul %339, %341, %cst_370 {dimension_numbers = #tpu.dot_dimension_numbers<[1], [0], [0], [1], [0, 0, 1, 1], [], []>} : vector<4x64xf32>, vector<64x4xf32>, vector<4x4xf32> -> vector<4x4xf32>
    %343 = arith.addf %336, %342 : vector<4x4xf32>
    %c15_371 = arith.constant 15 : index
    %c0_372 = arith.constant 0 : index
    %c0_373 = arith.constant 0 : index
    %344 = vector.load %arg8[%c15_371, %c0_372, %c0_373] : memref<16x4x16xf32, #tpu.memory_space<vmem>>, vector<1x4x16xf32>
    %345 = vector.shape_cast %344 : vector<1x4x16xf32> to vector<4x16xf32>
    %cst_374 = arith.constant dense<0.000000e+00> : vector<4x64xf32>
    %346 = tpu.matmul %345, %237, %cst_374 {dimension_numbers = #tpu.dot_dimension_numbers<[1], [0], [0], [1], [0, 0, 1, 1], [], []>} : vector<4x16xf32>, vector<16x64xf32>, vector<4x64xf32> -> vector<4x64xf32>
    %c15_375 = arith.constant 15 : index
    %c0_376 = arith.constant 0 : index
    %c0_377 = arith.constant 0 : index
    %347 = vector.load %arg9[%c15_375, %c0_376, %c0_377] : memref<16x64x4xf32, #tpu.memory_space<vmem>>, vector<1x64x4xf32>
    %348 = vector.shape_cast %347 : vector<1x64x4xf32> to vector<64x4xf32>
    %cst_378 = arith.constant dense<0.000000e+00> : vector<4x4xf32>
    %349 = tpu.matmul %346, %348, %cst_378 {dimension_numbers = #tpu.dot_dimension_numbers<[1], [0], [0], [1], [0, 0, 1, 1], [], []>} : vector<4x64xf32>, vector<64x4xf32>, vector<4x4xf32> -> vector<4x4xf32>
    %350 = arith.addf %343, %349 : vector<4x4xf32>
    %c0_379 = arith.constant 0 : index
    %c0_380 = arith.constant 0 : index
    %351 = vector.load %arg10[%c0_379, %c0_380] : memref<1x4xf32, #tpu.memory_space<vmem>>, vector<1x4xf32>
    %352 = vector.broadcast %351 : vector<1x4xf32> to vector<4x4xf32>
    %353 = arith.addf %350, %352 : vector<4x4xf32>
    %cst_381 = arith.constant 0.000000e+00 : f32
    %354 = vector.broadcast %cst_381 : f32 to vector<4x4xf32>
    %355 = arith.maximumf %353, %354 : vector<4x4xf32>
    %c0_382 = arith.constant 0 : index
    %c0_383 = arith.constant 0 : index
    %c0_384 = arith.constant 0 : index
    %356 = vector.load %arg11[%c0_382, %c0_383, %c0_384] : memref<1x4x4xf32, #tpu.memory_space<vmem>>, vector<1x4x4xf32>
    %357 = vector.shape_cast %356 : vector<1x4x4xf32> to vector<4x4xf32>
    %358 = vector.shape_cast %355 : vector<4x4xf32> to vector<1x4x4xf32>
    tpu.vector_store %arg11[%c0_382, %c0_383, %c0_384], %358 {strides = array<i32>} : memref<1x4x4xf32, #tpu.memory_space<vmem>>, vector<1x4x4xf32>,
    return
  }
  func.func @transform_0(%arg0: i32) -> (i32, i32, i32) {
    %c0_i32 = arith.constant 0 : i32
    %c0_i32_0 = arith.constant 0 : i32
    %c0_i32_1 = arith.constant 0 : i32
    return %arg0, %c0_i32, %c0_i32_0 : i32, i32, i32
  }
  func.func @transform_1(%arg0: i32) -> (i32, i32, i32) {
    %c0_i32 = arith.constant 0 : i32
    %c0_i32_0 = arith.constant 0 : i32
    %c0_i32_1 = arith.constant 0 : i32
    %c0_i32_2 = arith.constant 0 : i32
    return %c0_i32, %c0_i32_0, %c0_i32_1 : i32, i32, i32
  }
  func.func @transform_2(%arg0: i32) -> (i32, i32, i32) {
    %c0_i32 = arith.constant 0 : i32
    %c0_i32_0 = arith.constant 0 : i32
    %c0_i32_1 = arith.constant 0 : i32
    %c0_i32_2 = arith.constant 0 : i32
    return %c0_i32, %c0_i32_0, %c0_i32_1 : i32, i32, i32
  }
  func.func @transform_3(%arg0: i32) -> (i32, i32) {
    %c0_i32 = arith.constant 0 : i32
    %c0_i32_0 = arith.constant 0 : i32
    %c0_i32_1 = arith.constant 0 : i32
    return %c0_i32, %c0_i32_0 : i32, i32
  }
  func.func @transform_4(%arg0: i32) -> (i32, i32, i32) {
    %c0_i32 = arith.constant 0 : i32
    %c0_i32_0 = arith.constant 0 : i32
    %c0_i32_1 = arith.constant 0 : i32
    %c0_i32_2 = arith.constant 0 : i32
    return %c0_i32, %c0_i32_0, %c0_i32_1 : i32, i32, i32
  }
  func.func @transform_5(%arg0: i32) -> (i32, i32, i32) {
    %c0_i32 = arith.constant 0 : i32
    %c0_i32_0 = arith.constant 0 : i32
    %c0_i32_1 = arith.constant 0 : i32
    %c0_i32_2 = arith.constant 0 : i32
    return %c0_i32, %c0_i32_0, %c0_i32_1 : i32, i32, i32
  }
  func.func @transform_6(%arg0: i32) -> (i32, i32) {
    %c0_i32 = arith.constant 0 : i32
    %c0_i32_0 = arith.constant 0 : i32
    %c0_i32_1 = arith.constant 0 : i32
    return %c0_i32, %c0_i32_0 : i32, i32
  }
  func.func @transform_7(%arg0: i32) -> (i32, i32, i32) {
    %c0_i32 = arith.constant 0 : i32
    %c0_i32_0 = arith.constant 0 : i32
    %c0_i32_1 = arith.constant 0 : i32
    %c0_i32_2 = arith.constant 0 : i32
    return %c0_i32, %c0_i32_0, %c0_i32_1 : i32, i32, i32
  }
  func.func @transform_8(%arg0: i32) -> (i32, i32, i32) {
    %c0_i32 = arith.constant 0 : i32
    %c0_i32_0 = arith.constant 0 : i32
    %c0_i32_1 = arith.constant 0 : i32
    %c0_i32_2 = arith.constant 0 : i32
    return %c0_i32, %c0_i32_0, %c0_i32_1 : i32, i32, i32
  }
  func.func @transform_9(%arg0: i32) -> (i32, i32) {
    %c0_i32 = arith.constant 0 : i32
    %c0_i32_0 = arith.constant 0 : i32
    %c0_i32_1 = arith.constant 0 : i32
    return %c0_i32, %c0_i32_0 : i32, i32
  }
  func.func @transform_10(%arg0: i32) -> (i32, i32, i32) {
    %c0_i32 = arith.constant 0 : i32
    %c0_i32_0 = arith.constant 0 : i32
    %c0_i32_1 = arith.constant 0 : i32
    return %arg0, %c0_i32, %c0_i32_0 : i32, i32, i32
  }
}

</mosaic_0001>

<bundles_post_ra>
// kernel: cloth_encoder_forward.1
= control target key start
LH: loop header
LB: loop body
LE: loop exit
PB: predicated region body
PF: predicated region fallthrough
CT: control target
= control target key end

     0   :  { %15 = vsyncpa [#allocation3], 0  ;;  %s16657_s0 = inlined_call_operand.vmem [shape: f32[2,256,3], index: 0, kind: input, shape index: {}]   ;;  %s16658_s1 = inlined_call_operand.hbm [shape: f32[16,64,256], index: 1, kind: input, shape index: {}]   ;;  %s16659_s2 = inlined_call_operand.vmem [shape: f32[16,3,32], index: 2, kind: input, shape index: {}]   ;;  %s16660_s3 = inlined_call_operand.vmem [shape: f32[1,32], index: 3, kind: input, shape index: {}]   ;;  %s16661_s4 = inlined_call_operand.vmem [shape: f32[16,16,64], index: 4, kind: input, shape index: {}]   ;;  %s16662_s5 = inlined_call_operand.vmem [shape: f32[16,32,64], index: 5, kind: input, shape index: {}]   ;;  %s16663_s6 = inlined_call_operand.vmem [shape: f32[1,64], index: 6, kind: input, shape index: {}]   ;;  %s16664_s7 = inlined_call_operand.vmem [shape: f32[16,4,16], index: 7, kind: input, shape index: {}]   ;;  %s16665_s8 = inlined_call_operand.vmem [shape: f32[16,64,4], index: 8, kind: input, shape index: {}]   ;;  %s16666_s9 = inlined_call_operand.vmem [shape: f32[1,4], index: 9, kind: input, shape index: {}]   ;;  %s16667_s10 = inlined_call_operand.hbm [shape: f32[2,4,4], index: 10, kind: output, shape index: {}]  }
   0x1   :  { %16 = vsyncpa [#allocation4], 0 }
   0x2   :  { %18 = vsyncpa [#allocation4 + $0x1], 0  ;;  %s14620_s13 = smov 0   ;;  %s14622_s14 = smov 0  }
   0x3   :  { %s14624_s15 = smov 0   ;;  %s14626_s16 = smov 0  }
   0x4 LB: > { %s14641_s17 = sadd.s32 4294967295, %s14556_s16   ;;  %s10016_s18 = sadd.s32 4294967294, %s14556_s16   ;;  %s14556_s16 = sphi %s14626_s16, %s16683_s16   ;;  %s14552_s15 = sphi %s14624_s15, %s16682_s15   ;;  %s14548_s14 = sphi %s14622_s14, %s16681_s14   ;;  %s14544_s13 = sphi %s14620_s13, %s16680_s13  }
   0x5   : > { %s14645_s19 = sadd.s32 1, %s14556_s16   ;;  %s246_s20 = sadd.s32 1, %s14552_s15 }
   0x6   : > { %s243_s21 = ssub.s32 %s14556_s16, %s14645_s19  ;;  %p256_p0 = scmp.ne.s32.totalorder %s14552_s15, %s14548_s14 }
   0x7   : > { %p244_p1 = scmp.eq.s32.totalorder %s243_s21, 0  ;;  %p257_p2 = scmp.eq.s32.totalorder %s14641_s17, 1 }
   0x8   : > { %p262_p3 = scmp.ne.s32.totalorder %s14548_s14, %s14544_s13  ;;  %p263_p4 = scmp.eq.s32.totalorder %s10016_s18, 1 }
   0x9   : > { %s14656_s22 = scalar_select %p244_p1, %s14552_s15, %s246_s20  }
   0xa   : > { %p14658_p5 = por %p257_p2, %p256_p0  ;;  %p14662_p6 = por %p263_p4, %p262_p3 }
   0xb   : > { %p10017_p7 = scmp.ge.s32.totalorder %s14556_s16, 1  ;;  %p270_p8 = scmp.lt.s32.totalorder %s14556_s16, 3 }
   0xc   : > { %s16671_s23 = scalar_select %p14658_p5, 1, 0 }
   0xd   : > { %s16672_s24 = scalar_select %p14662_p6, 1, 0 }
   0xe   : > { %p16668_p9 = scmp.eq.s32.totalorder %s14641_s17, 0  ;;  %p14669_p10 = pnand %p10017_p7, %p270_p8 }
   0xf   : > { %s14558_s26 = smov [#allocation2]   ;;  %s14462_s11 = scalar_lea.hbm %s16658_s1, 32768 }
  0x10   : > { %s16673_s25 = scalar_select %p14669_p10, 1, 0 }
  0x11   : > { %s282_s27 = sshll.u32 %s14558_s26, 4  ;;  %p14413_p11 = pneg %p14669_p10  ;;  %s283_s27 = int_to_ptr.vmem [resolvable:$true] %s282_s27 }
  0x12   : > { %p14463_p13 = scmp.ne.s32.totalorder %s16658_s1, %s14462_s11  ;;  %p14469_p3 = scmp.lt.u32.totalorder %s14462_s11, %s16658_s1 }
  0x13   : > { %p14677_p12 = pnand %p16668_p9, %p14413_p11 }
  0x15   : > { %p14464_p0 = pneg %p14677_p12 }
  0x17   : > { %p14465_p1 = pnand %p14464_p0, %p14463_p13 }
  0x19   : > { %p14466_p2 = pneg %p14465_p1 }
  0x1b   : > { %p14471_p4 = pnand %p14469_p3, %p14466_p2 }
  0x1d   : > { %14474 = shalt.err (!%p14471_p4)
}
  0x1e   : > { %s14475_s26 = scalar_lea.vmem %s283_s27, 32768  ;;  %p14483_p9 = scmp.lt.s32.totalorder %s283_s27, %s283_s27 }
  0x1f   : > { %p14476_p7 = scmp.ne.s32.totalorder %s283_s27, %s14475_s26  ;;  %p14484_p6 = scmp.lt.s32.totalorder %s14475_s26, %s14475_s26 }
  0x21   : > { %p14478_p8 = pnand %p14476_p7, %p14464_p0  ;;  %p14485_p5 = por %p14484_p6, %p14483_p9 }
  0x23   : > { %p14479_p11 = pneg %p14478_p8 }
  0x25   : > { %p14486_p10 = pnand %p14485_p5, %p14479_p11 }
  0x27   : > { %14489 = shalt.err (!%p14486_p10)
}
  0x28   : > { %s14559_s29 = smov 256   ;;  %s14560_s30 = smov 16  }
  0x29   : > { %14416 = dma.hbm_to_vmem [thread:$0]  (!%p14677_p12), %s16658_s1, 32768, %s283_s27, [#allocation3], %s14559_s29, %s14559_s29, %s14560_s30  }
  0x2a   : > { %p16675_p13 = scmp.ne.s32.totalorder %s16673_s25, 0 }
  0x2b   : > { %p16676_p1 = scmp.eq.s32.totalorder (!%p16675_p13), %s14641_s17, 0 }
  0x2c   : > { %330 = sbr.rel (%p16675_p13) target bundleno = 5196 (0x144c), region = 60 }
  0x33   : > { %14535 = dma.done.wait (%p16676_p1), [#allocation3], 32768   ;;  %p16677_p0 = pmov %p16676_p1 }
  0x34   : > { %p368_p5 = scmp.lt.s32.totalorder %s14641_s17, 1  ;;  %v529_v25 = vld [vmem:[#allocation2 + $0x88] sm:$0xff]  ;;  %v528_v50 = vld [vmem:[#allocation2 + $0x80] sm:$0xff]  ;;  %v531_v52 = vld [vmem:[#allocation2 + $0x98] sm:$0xff]  ;;  %vm676_vm0 = vcmask 1042432   ;;  %vm651_vm1 = vcmask 23552  }
  0x35   : > { %14537 = vsyncadd (%p16677_p0), [#allocation3], 4294934528  ;;  %608 = vmatprep.mubr.f32.mxu1 %v529_v25  ;;  %v406_v30 = vld [vmem:[#allocation2 + $0x8] sm:$0xff]  ;;  %v405_v51 = vld [vmem:[#allocation2] sm:$0xff]  ;;  %vm4638_vm2 = vcmask 523264   ;;  %vm4813_vm3 = vcmask 261120  }
  0x36   : > { %s369_s11 = scalar_select %p368_p5, %s14641_s17, 1  ;;  %485 = vmatprep.mubr.f32.mxu0 %v406_v30  ;;  %v408_v53 = vld [vmem:[#allocation2 + $0x18] sm:$0xff]  ;;  %v530_v54 = vld [vmem:[#allocation2 + $0x90] sm:$0xff]  ;;  %v533_v56 = vld [vmem:[#allocation2 + $0xa8] sm:$0xff]  ;;  %vm14562_vm4 = vmmov 0   ;;  %vm7396_vm5 = vcmask 130048  }
  0x37   : > { %v407_v55 = vld [vmem:[#allocation2 + $0x10] sm:$0xff]  ;;  %v410_v57 = vld [vmem:[#allocation2 + $0x28] sm:$0xff]  ;;  %v532_v58 = vld [vmem:[#allocation2 + $0xa0] sm:$0xff]  ;;  %s10509_s30 = sshll.u32 %s14641_s17, 6  ;;  %vm9929_vm6 = vcmask 27648   ;;  %p16678_p9 = scmp.ne.s32.totalorder %s16671_s23, 0 }
  0x38   : > { %s10512_s20 = sshll.u32 %s369_s11, 8  ;;  %v409_v59 = vld [vmem:[#allocation2 + $0x20] sm:$0xff]  ;;  %v535_v60 = vld [vmem:[#allocation2 + $0xb8] sm:$0xff]  ;;  %v534_v62 = vld [vmem:[#allocation2 + $0xb0] sm:$0xff]  ;;  %s16615_s21 = scalar_lea.hbm %s16667_s10, %s10509_s30 }
  0x39   : > { %s14708_s26 = scalar_lea.vmem %s16657_s0, %s10512_s20  ;;  %v412_v61 = vld [vmem:[#allocation2 + $0x38] sm:$0xff]  ;;  %v411_v63 = vld [vmem:[#allocation2 + $0x30] sm:$0xff]  ;;  %v922_v30 = vld [vmem:[#allocation2 + $0x120] sm:$0xff]  ;;  %s14564_s17 = smov [#allocation5]  }
  0x3a   : > { %v389_v0 = vld [vmem:[%s14708_s26 + $0x80] sm:$0xff]  ;;  %v390_v1 = vld [vmem:[%s14708_s26 + $0x88] sm:$0xff]  ;;  %v391_v5 = vld [vmem:[%s14708_s26 + $0x90] sm:$0xff] }
  0x3b   : > { %v373_v2 = vld [vmem:[%s14708_s26] sm:$0xff]  ;;  %v14713_v3 = vpack.c.bf16 %v390_v1, %v389_v0  ;;  %v374_v4 = vld [vmem:[%s14708_s26 + $0x8] sm:$0xff]  ;;  %v392_v6 = vld [vmem:[%s14708_s26 + $0x98] sm:$0xff] }
  0x3c   : > { %v14718_v7 = vpack.c.bf16 %v374_v4, %v373_v2  ;;  %v14720_v8 = vpack.c.bf16 %v392_v6, %v391_v5  ;;  %v375_v9 = vld [vmem:[%s14708_s26 + $0x10] sm:$0xff]  ;;  %v376_v10 = vld [vmem:[%s14708_s26 + $0x18] sm:$0xff]  ;;  %v393_v11 = vld [vmem:[%s14708_s26 + $0xa0] sm:$0xff] }
  0x3d   : > { %13154 = vmatprep.subr.bf16.mxu1 %v14713_v3  ;;  %v394_v12 = vld [vmem:[%s14708_s26 + $0xa8] sm:$0xff]  ;;  %13122 = vmatprep.subr.bf16.mxu0 %v14713_v3  ;;  %v14729_v13 = vpack.c.bf16 %v376_v10, %v375_v9  ;;  %v377_v15 = vld [vmem:[%s14708_s26 + $0x20] sm:$0xff]  ;;  %v395_v17 = vld [vmem:[%s14708_s26 + $0xb0] sm:$0xff] }
  0x3e   : > { %13156 = vmatpush3.bf16.msra.mxu1 %v14718_v7  ;;  %13124 = vmatpush3.bf16.msra.mxu0 %v14718_v7  ;;  %v14733_v14 = vpack.c.bf16 %v394_v12, %v393_v11  ;;  %v378_v16 = vld [vmem:[%s14708_s26 + $0x28] sm:$0xff]  ;;  %v396_v18 = vld [vmem:[%s14708_s26 + $0xb8] sm:$0xff]  ;;  %v379_v21 = vld [vmem:[%s14708_s26 + $0x30] sm:$0xff] }
  0x3f   : > { %13158 = vmatprep.subr.bf16.mxu1 %v14720_v8  ;;  %13126 = vmatprep.subr.bf16.mxu0 %v14720_v8  ;;  %v14741_v19 = vpack.c.bf16 %v378_v16, %v377_v15  ;;  %v14745_v20 = vpack.c.bf16 %v396_v18, %v395_v17  ;;  %v380_v22 = vld [vmem:[%s14708_s26 + $0x38] sm:$0xff]  ;;  %v397_v23 = vld [vmem:[%s14708_s26 + $0xc0] sm:$0xff]  ;;  %v398_v24 = vld [vmem:[%s14708_s26 + $0xc8] sm:$0xff] }
  0x40   : > { %v14753_v26 = vpack.c.bf16 %v380_v22, %v379_v21  ;;  %v14757_v27 = vpack.c.bf16 %v398_v24, %v397_v23  ;;  %v381_v28 = vld [vmem:[%s14708_s26 + $0x40] sm:$0xff]  ;;  %v382_v29 = vld [vmem:[%s14708_s26 + $0x48] sm:$0xff]  ;;  %v399_v31 = vld [vmem:[%s14708_s26 + $0xd0] sm:$0xff] }
  0x41   : > { %v400_v32 = vld [vmem:[%s14708_s26 + $0xd8] sm:$0xff]  ;;  %v14765_v33 = vpack.c.bf16 %v382_v29, %v381_v28  ;;  %v383_v35 = vld [vmem:[%s14708_s26 + $0x50] sm:$0xff]  ;;  %v401_v37 = vld [vmem:[%s14708_s26 + $0xe0] sm:$0xff] }
  0x42   : > { %13160 = vmatpush3.bf16.msra.mxu1 %v14729_v13  ;;  %13128 = vmatpush3.bf16.msra.mxu0 %v14729_v13  ;;  %v14769_v34 = vpack.c.bf16 %v400_v32, %v399_v31  ;;  %v384_v36 = vld [vmem:[%s14708_s26 + $0x58] sm:$0xff]  ;;  %v402_v38 = vld [vmem:[%s14708_s26 + $0xe8] sm:$0xff]  ;;  %v385_v41 = vld [vmem:[%s14708_s26 + $0x60] sm:$0xff] }
  0x43   : > { %13162 = vmatprep.subr.bf16.mxu1 %v14733_v14  ;;  %13130 = vmatprep.subr.bf16.mxu0 %v14733_v14  ;;  %v14777_v39 = vpack.c.bf16 %v384_v36, %v383_v35  ;;  %v14781_v40 = vpack.c.bf16 %v402_v38, %v401_v37  ;;  %v386_v42 = vld [vmem:[%s14708_s26 + $0x68] sm:$0xff]  ;;  %v403_v43 = vld [vmem:[%s14708_s26 + $0xf0] sm:$0xff]  ;;  %v404_v44 = vld [vmem:[%s14708_s26 + $0xf8] sm:$0xff] }
  0x44   : > { %v14789_v45 = vpack.c.bf16 %v386_v42, %v385_v41  ;;  %v14793_v46 = vpack.c.bf16 %v404_v44, %v403_v43  ;;  %v387_v47 = vld [vmem:[%s14708_s26 + $0x70] sm:$0xff]  ;;  %v388_v48 = vld [vmem:[%s14708_s26 + $0x78] sm:$0xff]  ;;  %v537_v0 = vld [vmem:[#allocation2 + $0xc8] sm:$0xff]  ;;  %s365_s26 = sand.u32 1, %s14548_s14  }
  0x45   : > { %v14799_v49 = vpack.c.bf16 %v388_v48, %v387_v47  ;;  %v414_v1 = vld [vmem:[#allocation2 + $0x48] sm:$0xff]  ;;  %v536_v2 = vld [vmem:[#allocation2 + $0xc0] sm:$0xff]  ;;  %v539_v5 = vld [vmem:[#allocation2 + $0xd8] sm:$0xff]  ;;  %s10022_s25 = sshll.u32 %s365_s26, 2  ;;  %s9932_s28 = scalar_lea.sflag [#allocation4], %s365_s26 }
  0x46   : > { %13164 = vmatpush3.bf16.msra.mxu1 %v14741_v19  ;;  %13132 = vmatpush3.bf16.msra.mxu0 %v14741_v19  ;;  %v413_v4 = vld [vmem:[#allocation2 + $0x40] sm:$0xff]  ;;  %v416_v6 = vld [vmem:[#allocation2 + $0x58] sm:$0xff]  ;;  %v538_v9 = vld [vmem:[#allocation2 + $0xd0] sm:$0xff]  ;;  %s367_s12 = scalar_lea.vmem [#allocation5], %s10022_s25  ;;  %s14494_s25 = sshll.u32 %s14564_s17, 4  ;;  %s14495_s25 = int_to_ptr.vmem [resolvable:$false] %s14494_s25 }
  0x47   : > { %13166 = vmatprep.subr.bf16.mxu1 %v14745_v20  ;;  %13134 = vmatprep.subr.bf16.mxu0 %v14745_v20  ;;  %v415_v10 = vld [vmem:[#allocation2 + $0x50] sm:$0xff]  ;;  %v541_v11 = vld [vmem:[#allocation2 + $0xe8] sm:$0xff]  ;;  %v540_v15 = vld [vmem:[#allocation2 + $0xe0] sm:$0xff]  ;;  %s9945_s18 = sshll.u32 %s367_s12, 4  ;;  %s14496_s29 = scalar_lea.vmem %s14495_s25, 128  ;;  %s16617_s18 = int_to_ptr.vmem [resolvable:$true] %s9945_s18 }
  0x48   : > { %v418_v12 = vld [vmem:[#allocation2 + $0x68] sm:$0xff]  ;;  %v417_v16 = vld [vmem:[#allocation2 + $0x60] sm:$0xff]  ;;  %v543_v17 = vld [vmem:[#allocation2 + $0xf8] sm:$0xff]  ;;  %s14490_s27 = scalar_lea.vmem %s16617_s18, 64  ;;  %p14497_p2 = scmp.lt.s32.totalorder %s16617_s18, %s14495_s25 }
  0x49   : > { %v420_v18 = vld [vmem:[#allocation2 + $0x78] sm:$0xff]  ;;  %v542_v21 = vld [vmem:[#allocation2 + $0xf0] sm:$0xff]  ;;  %v919_v23 = vld [vmem:[#allocation2 + $0x108] sm:$0xff]  ;;  %p14491_p6 = scmp.ne.s32.totalorder %s16617_s18, %s14490_s27  ;;  %p14498_p3 = scmp.lt.s32.totalorder %s14496_s29, %s14490_s27 }
  0x4a   : > { %13168 = vmatpush3.bf16.msra.mxu1 %v14753_v26  ;;  %13136 = vmatpush3.bf16.msra.mxu0 %v14753_v26  ;;  %v419_v22 = vld [vmem:[#allocation2 + $0x70] sm:$0xff]  ;;  %v918_v24 = vld [vmem:[#allocation2 + $0x100] sm:$0xff]  ;;  %v921_v25 = vld [vmem:[#allocation2 + $0x118] sm:$0xff] }
  0x4b   : > { %13170 = vmatprep.subr.bf16.mxu1 %v14757_v27  ;;  %13138 = vmatprep.subr.bf16.mxu0 %v14757_v27  ;;  %v920_v28 = vld [vmem:[#allocation2 + $0x110] sm:$0xff]  ;;  %v923_v29 = vld [vmem:[#allocation2 + $0x128] sm:$0xff]  ;;  %v925_v31 = vld [vmem:[#allocation2 + $0x138] sm:$0xff]  ;;  %p14492_p10 = pnand %p14491_p6, %p16678_p9  ;;  %p14499_p4 = por %p14498_p3, %p14497_p2 }
  0x4c   : > { %v924_v32 = vld [vmem:[#allocation2 + $0x130] sm:$0xff]  ;;  %v927_v35 = vld [vmem:[#allocation2 + $0x148] sm:$0xff]  ;;  %v926_v36 = vld [vmem:[#allocation2 + $0x140] sm:$0xff] }
  0x4d   : > { %v929_v37 = vld [vmem:[#allocation2 + $0x158] sm:$0xff]  ;;  %v928_v38 = vld [vmem:[#allocation2 + $0x150] sm:$0xff]  ;;  %v931_v41 = vld [vmem:[#allocation2 + $0x168] sm:$0xff]  ;;  %p14493_p12 = pneg %p14492_p10 }
  0x4e   : > { %13172 = vmatpush3.bf16.msra.mxu1 %v14765_v33  ;;  %13140 = vmatpush3.bf16.msra.mxu0 %v14765_v33  ;;  %v930_v42 = vld [vmem:[#allocation2 + $0x160] sm:$0xff]  ;;  %v933_v43 = vld [vmem:[#allocation2 + $0x178] sm:$0xff]  ;;  %v932_v44 = vld [vmem:[#allocation2 + $0x170] sm:$0xff] }
  0x4f   : > { %13174 = vmatprep.subr.bf16.mxu1 %v14769_v34  ;;  %13142 = vmatprep.subr.bf16.mxu0 %v14769_v34  ;;  %v1183_v47 = vld [vmem:[#allocation2 + $0x188] sm:$0xff]  ;;  %v1182_v48 = vld [vmem:[#allocation2 + $0x180] sm:$0xff]  ;;  %p14500_p7 = pnand %p14499_p4, %p14493_p12 }
  0x52   : > { %13176 = vmatpush3.bf16.msra.mxu1 %v14777_v39  ;;  %13144 = vmatpush3.bf16.msra.mxu0 %v14777_v39 }
  0x53   : > { %13178 = vmatprep.subr.bf16.mxu1 %v14781_v40  ;;  %13146 = vmatprep.subr.bf16.mxu0 %v14781_v40 }
  0x56   : > { %13180 = vmatpush3.bf16.msra.mxu1 %v14789_v45  ;;  %13148 = vmatpush3.bf16.msra.mxu0 %v14789_v45 }
  0x57   : > { %13182 = vmatprep.subr.bf16.mxu1 %v14793_v46  ;;  %13150 = vmatprep.subr.bf16.mxu0 %v14793_v46 }
  0x5a   : > { %13184 = vmatpush3.bf16.msra.mxu1 %v14799_v49  ;;  %13152 = vmatpush3.bf16.msra.mxu0 %v14799_v49 }
  0x5b   : > { %13186 = vmatprep.subr.bf16.mxu1 %v14713_v3 }
  0x5d   : > { %609 = vmatmul.mubr.f32.vlgmr.msra.gmra.mrb[0].mxu1 %v528_v50  ;;  %486 = vmatmul.mubr.f32.vlgmr.msra.gmra.mrb[0].mxu0 %v405_v51  ;;  %v1185_v50 = vld [vmem:[#allocation2 + $0x198] sm:$0xff]  ;;  %v1184_v51 = vld [vmem:[#allocation2 + $0x190] sm:$0xff] }
  0x5e   : > { %13188 = vmatpush3.bf16.msra.mxu1 %v14718_v7  ;;  %613 = vmatprep.mubr.f32.mxu1 %v531_v52  ;;  %v1187_v52 = vld [vmem:[#allocation2 + $0x1a8] sm:$0xff] }
  0x5f   : > { %13190 = vmatprep.subr.bf16.mxu1 %v14720_v8  ;;  %490 = vmatprep.mubr.f32.mxu0 %v408_v53  ;;  %v1186_v53 = vld [vmem:[#allocation2 + $0x1a0] sm:$0xff] }
  0x61   : > { %614 = vmatmul.mubr.f32.gmra.mrb[2].mxu1 %v530_v54  ;;  %491 = vmatmul.mubr.f32.gmra.mrb[2].mxu0 %v407_v55  ;;  %v1189_v54 = vld [vmem:[#allocation2 + $0x1b8] sm:$0xff]  ;;  %v1188_v55 = vld [vmem:[#allocation2 + $0x1b0] sm:$0xff] }
  0x62   : > { %13192 = vmatpush3.bf16.msra.mxu1 %v14729_v13  ;;  %618 = vmatprep.mubr.f32.mxu1 %v533_v56  ;;  %v1191_v56 = vld [vmem:[#allocation2 + $0x1c8] sm:$0xff] }
  0x63   : > { %13194 = vmatprep.subr.bf16.mxu1 %v14733_v14  ;;  %495 = vmatprep.mubr.f32.mxu0 %v410_v57  ;;  %v1190_v57 = vld [vmem:[#allocation2 + $0x1c0] sm:$0xff] }
  0x65   : > { %619 = vmatmul.mubr.f32.gmra.mrb[4].mxu1 %v532_v58  ;;  %496 = vmatmul.mubr.f32.gmra.mrb[4].mxu0 %v409_v59  ;;  %v1193_v58 = vld [vmem:[#allocation2 + $0x1d8] sm:$0xff]  ;;  %v1192_v59 = vld [vmem:[#allocation2 + $0x1d0] sm:$0xff] }
  0x66   : > { %13196 = vmatpush3.bf16.msra.mxu1 %v14741_v19  ;;  %623 = vmatprep.mubr.f32.mxu1 %v535_v60  ;;  %v1195_v60 = vld [vmem:[#allocation2 + $0x1e8] sm:$0xff] }
  0x67   : > { %13198 = vmatprep.subr.bf16.mxu1 %v14745_v20  ;;  %500 = vmatprep.mubr.f32.mxu0 %v412_v61  ;;  %v1194_v61 = vld [vmem:[#allocation2 + $0x1e0] sm:$0xff] }
  0x69   : > { %624 = vmatmul.mubr.f32.gmra.mrb[6].mxu1 %v534_v62  ;;  %501 = vmatmul.mubr.f32.gmra.mrb[6].mxu0 %v411_v63  ;;  %v1197_v62 = vld [vmem:[#allocation2 + $0x1f8] sm:$0xff]  ;;  %v10025_v63 = vld [vmem:[%s16659_s2 + $0x4] sm:$0x7] }
  0x6a   : > { %13200 = vmatpush3.bf16.msra.mxu1 %v14753_v26  ;;  %628 = vmatprep.mubr.f32.mxu1 %v537_v0  ;;  %v1196_v0 = vld [vmem:[#allocation2 + $0x1f0] sm:$0xff] }
  0x6b   : > { %13202 = vmatprep.subr.bf16.mxu1 %v14757_v27  ;;  %505 = vmatprep.mubr.f32.mxu0 %v414_v1  ;;  %v1447_v1 = vld [vmem:[#allocation2 + $0x208] sm:$0xff] }
  0x6c   : > { %12001 = vmatprep.subr.msk.mxu0 %vm676_vm0, %v10025_v63 }
  0x6d   : > { %629 = vmatmul.mubr.f32.gmra.mrb[8].mxu1 %v536_v2  ;;  %506 = vmatmul.mubr.f32.gmra.mrb[8].mxu0 %v413_v4  ;;  %v1446_v2 = vld [vmem:[#allocation2 + $0x200] sm:$0xff]  ;;  %v1449_v4 = vld [vmem:[#allocation2 + $0x218] sm:$0xff] }
  0x6e   : > { %13204 = vmatpush3.bf16.msra.mxu1 %v14765_v33  ;;  %633 = vmatprep.mubr.f32.mxu1 %v539_v5  ;;  %v1448_v5 = vld [vmem:[#allocation2 + $0x210] sm:$0xff] }
  0x6f   : > { %13206 = vmatprep.subr.bf16.mxu1 %v14769_v34  ;;  %510 = vmatprep.mubr.f32.mxu0 %v416_v6  ;;  %v1451_v6 = vld [vmem:[#allocation2 + $0x228] sm:$0xff] }
  0x70   : > { %12002 = vmatpush3.msk.msra.mxu0 %vm676_vm0, %v10025_v63 }
  0x71   : > { %634 = vmatmul.mubr.f32.gmra.mrb[10].mxu1 %v538_v9  ;;  %511 = vmatmul.mubr.f32.gmra.mrb[10].mxu0 %v415_v10  ;;  %v1450_v9 = vld [vmem:[#allocation2 + $0x220] sm:$0xff]  ;;  %v1453_v10 = vld [vmem:[#allocation2 + $0x238] sm:$0xff] }
  0x72   : > { %13208 = vmatpush3.bf16.msra.mxu1 %v14777_v39  ;;  %638 = vmatprep.mubr.f32.mxu1 %v541_v11  ;;  %v1452_v11 = vld [vmem:[#allocation2 + $0x230] sm:$0xff] }
  0x73   : > { %13210 = vmatprep.subr.bf16.mxu1 %v14781_v40  ;;  %515 = vmatprep.mubr.f32.mxu0 %v418_v12  ;;  %v1455_v12 = vld [vmem:[#allocation2 + $0x248] sm:$0xff] }
  0x75   : > { %639 = vmatmul.mubr.f32.gmra.mrb[12].mxu1 %v540_v15  ;;  %516 = vmatmul.mubr.f32.gmra.mrb[12].mxu0 %v417_v16  ;;  %v1454_v15 = vld [vmem:[#allocation2 + $0x240] sm:$0xff]  ;;  %v1457_v16 = vld [vmem:[#allocation2 + $0x258] sm:$0xff] }
  0x76   : > { %13212 = vmatpush3.bf16.msra.mxu1 %v14789_v45  ;;  %643 = vmatprep.mubr.f32.mxu1 %v543_v17  ;;  %v1456_v17 = vld [vmem:[#allocation2 + $0x250] sm:$0xff] }
  0x77   : > { %13214 = vmatprep.subr.bf16.mxu1 %v14793_v46  ;;  %520 = vmatprep.mubr.f32.mxu0 %v420_v18  ;;  %v1459_v18 = vld [vmem:[#allocation2 + $0x268] sm:$0xff] }
  0x79   : > { %644 = vmatmul.mubr.f32.gmra.mrb[14].mxu1 %v542_v21  ;;  %521 = vmatmul.mubr.f32.gmra.mrb[14].mxu0 %v419_v22  ;;  %v14873_v21 = vld [vmem:[%s16659_s2] sm:$0x7] }
  0x7a   : > { %13216 = vmatpush3.bf16.msra.mxu1 %v14799_v49  ;;  %998 = vmatprep.mubr.f32.mxu1 %v919_v23  ;;  %v1458_v22 = vld [vmem:[#allocation2 + $0x260] sm:$0xff]  ;;  %v1461_v23 = vld [vmem:[#allocation2 + $0x278] sm:$0xff] }
  0x7b   : > { %13218 = vmatprep.subr.bf16.mxu1 %v14713_v3  ;;  %12015 = vmatprep.subr.msk.mxu0 %vm676_vm0, %v14873_v21 }
  0x7d   : > { %999 = vmatmul.mubr.f32.vlgmr.msra.gmra.mrb[16].mxu1 %v918_v24  ;;  %v1460_v24 = vld [vmem:[#allocation2 + $0x270] sm:$0xff] }
  0x7e   : > { %13220 = vmatpush3.bf16.msra.mxu1 %v14718_v7  ;;  %1003 = vmatprep.mubr.f32.mxu1 %v921_v25  ;;  %v1975_v25 = vld [vmem:[#allocation2 + $0x308] sm:$0xff] }
  0x7f   : > { %13222 = vmatprep.subr.bf16.mxu1 %v14720_v8 }
  0x81   : > { %1004 = vmatmul.mubr.f32.gmra.mrb[18].mxu1 %v920_v28  ;;  %v1974_v28 = vld [vmem:[#allocation2 + $0x300] sm:$0xff] }
  0x82   : > { %13224 = vmatpush3.bf16.msra.mxu1 %v14729_v13  ;;  %1008 = vmatprep.mubr.f32.mxu1 %v923_v29  ;;  %v1977_v29 = vld [vmem:[#allocation2 + $0x318] sm:$0xff] }
  0x83   : > { %13226 = vmatprep.subr.bf16.mxu1 %v14733_v14 }
  0x85   : > { %1009 = vmatmul.mubr.f32.gmra.mrb[20].mxu1 %v922_v30  ;;  %v1976_v30 = vld [vmem:[#allocation2 + $0x310] sm:$0xff] }
  0x86   : > { %13228 = vmatpush3.bf16.msra.mxu1 %v14741_v19  ;;  %1013 = vmatprep.mubr.f32.mxu1 %v925_v31  ;;  %v1979_v31 = vld [vmem:[#allocation2 + $0x328] sm:$0xff] }
  0x87   : > { %13230 = vmatprep.subr.bf16.mxu1 %v14745_v20 }
  0x89   : > { %1014 = vmatmul.mubr.f32.gmra.mrb[22].mxu1 %v924_v32  ;;  %v1978_v32 = vld [vmem:[#allocation2 + $0x320] sm:$0xff] }
  0x8a   : > { %13232 = vmatpush3.bf16.msra.mxu1 %v14753_v26  ;;  %1018 = vmatprep.mubr.f32.mxu1 %v927_v35  ;;  %v1981_v35 = vld [vmem:[#allocation2 + $0x338] sm:$0xff] }
  0x8b   : > { %13234 = vmatprep.subr.bf16.mxu1 %v14757_v27 }
  0x8d   : > { %1019 = vmatmul.mubr.f32.gmra.mrb[24].mxu1 %v926_v36  ;;  %v1980_v36 = vld [vmem:[#allocation2 + $0x330] sm:$0xff] }
  0x8e   : > { %13236 = vmatpush3.bf16.msra.mxu1 %v14765_v33  ;;  %1023 = vmatprep.mubr.f32.mxu1 %v929_v37 }
  0x8f   : > { %13238 = vmatprep.subr.bf16.mxu1 %v14769_v34 }
  0x91   : > { %1024 = vmatmul.mubr.f32.gmra.mrb[26].mxu1 %v928_v38 }
  0x92   : > { %13240 = vmatpush3.bf16.msra.mxu1 %v14777_v39  ;;  %1028 = vmatprep.mubr.f32.mxu1 %v931_v41 }
  0x93   : > { %13242 = vmatprep.subr.bf16.mxu1 %v14781_v40 }
  0x95   : > { %1029 = vmatmul.mubr.f32.gmra.mrb[28].mxu1 %v930_v42 }
  0x96   : > { %13244 = vmatpush3.bf16.msra.mxu1 %v14789_v45  ;;  %1033 = vmatprep.mubr.f32.mxu1 %v933_v43  ;;  %v1983_v43 = vld [vmem:[#allocation2 + $0x348] sm:$0xff] }
  0x97   : > { %13246 = vmatprep.subr.bf16.mxu1 %v14793_v46 }
  0x99   : > { %1034 = vmatmul.mubr.f32.gmra.mrb[30].mxu1 %v932_v44  ;;  %v1982_v44 = vld [vmem:[#allocation2 + $0x340] sm:$0xff] }
  0x9a   : > { %13248 = vmatpush3.bf16.msra.mxu1 %v14799_v49  ;;  %1262 = vmatprep.mubr.f32.mxu1 %v1183_v47 }
  0x9b   : > { %13250 = vmatprep.subr.bf16.mxu1 %v14713_v3 }
  0x9d   : > { %1263 = vmatmul.mubr.f32.vlgmr.msra.gmra.mrb[32].mxu1 %v1182_v48 }
  0x9e   : > { %13252 = vmatpush3.bf16.msra.mxu1 %v14718_v7  ;;  %1267 = vmatprep.mubr.f32.mxu1 %v1185_v50 }
  0x9f   : > { %13254 = vmatprep.subr.bf16.mxu1 %v14720_v8 }
  0xa1   : > { %1268 = vmatmul.mubr.f32.gmra.mrb[34].mxu1 %v1184_v51 }
  0xa2   : > { %13256 = vmatpush3.bf16.msra.mxu1 %v14729_v13  ;;  %1272 = vmatprep.mubr.f32.mxu1 %v1187_v52 }
  0xa3   : > { %13258 = vmatprep.subr.bf16.mxu1 %v14733_v14 }
  0xa5   : > { %1273 = vmatmul.mubr.f32.gmra.mrb[36].mxu1 %v1186_v53 }
  0xa6   : > { %13260 = vmatpush3.bf16.msra.mxu1 %v14741_v19  ;;  %1277 = vmatprep.mubr.f32.mxu1 %v1189_v54  ;;  %v1985_v54 = vld [vmem:[#allocation2 + $0x358] sm:$0xff] }
  0xa7   : > { %13262 = vmatprep.subr.bf16.mxu1 %v14745_v20 }
  0xa9   : > { %1278 = vmatmul.mubr.f32.gmra.mrb[38].mxu1 %v1188_v55  ;;  %v1984_v55 = vld [vmem:[#allocation2 + $0x350] sm:$0xff] }
  0xaa   : > { %13264 = vmatpush3.bf16.msra.mxu1 %v14753_v26  ;;  %1282 = vmatprep.mubr.f32.mxu1 %v1191_v56 }
  0xab   : > { %13266 = vmatprep.subr.bf16.mxu1 %v14757_v27 }
  0xad   : > { %1283 = vmatmul.mubr.f32.gmra.mrb[40].mxu1 %v1190_v57 }
  0xae   : > { %13268 = vmatpush3.bf16.msra.mxu1 %v14765_v33  ;;  %1287 = vmatprep.mubr.f32.mxu1 %v1193_v58  ;;  %v14901_v58 = vld [vmem:[%s16659_s2 + $0x8] sm:$0x7] }
  0xaf   : > { %13270 = vmatprep.subr.bf16.mxu1 %v14769_v34 }
  0xb1   : > { %1288 = vmatmul.mubr.f32.gmra.mrb[42].mxu1 %v1192_v59 }
  0xb2   : > { %13272 = vmatpush3.bf16.msra.mxu1 %v14777_v39  ;;  %1292 = vmatprep.mubr.f32.mxu1 %v1195_v60 }
  0xb3   : > { %13274 = vmatprep.subr.bf16.mxu1 %v14781_v40 }
  0xb5   : > { %1293 = vmatmul.mubr.f32.gmra.mrb[44].mxu1 %v1194_v61  ;;  %v1987_v61 = vld [vmem:[#allocation2 + $0x368] sm:$0xff] }
  0xb6   : > { %13276 = vmatpush3.bf16.msra.mxu1 %v14789_v45  ;;  %1297 = vmatprep.mubr.f32.mxu1 %v1197_v62 }
  0xb7   : > { %13278 = vmatprep.subr.bf16.mxu1 %v14793_v46 }
  0xb9   : > { %1298 = vmatmul.mubr.f32.gmra.mrb[46].mxu1 %v1196_v0  ;;  %v1986_v0 = vld [vmem:[#allocation2 + $0x360] sm:$0xff] }
  0xba   : > { %13280 = vmatpush3.bf16.msra.mxu1 %v14799_v49  ;;  %1526 = vmatprep.mubr.f32.mxu1 %v1447_v1 }
  0xbb   : > { %13314 = vmatprep.subr.bf16.mxu1 %v14713_v3 }
  0xbd   : > { %1527 = vmatmul.mubr.f32.vlgmr.msra.gmra.mrb[48].mxu1 %v1446_v2 }
  0xbe   : > { %1531 = vmatprep.mubr.f32.mxu1 %v1449_v4  ;;  %13316 = vmatpush3.bf16.msra.mxu1 %v14718_v7 }
  0xbf   : > { %13318 = vmatprep.subr.bf16.mxu1 %v14720_v8 }
  0xc1   : > { %1532 = vmatmul.mubr.f32.gmra.mrb[50].mxu1 %v1448_v5 }
  0xc2   : > { %1536 = vmatprep.mubr.f32.mxu1 %v1451_v6  ;;  %13320 = vmatpush3.bf16.msra.mxu1 %v14729_v13  ;;  %v1989_v6 = vld [vmem:[#allocation2 + $0x378] sm:$0xff] }
  0xc3   : > { %13322 = vmatprep.subr.bf16.mxu1 %v14733_v14 }
  0xc5   : > { %1537 = vmatmul.mubr.f32.gmra.mrb[52].mxu1 %v1450_v9 }
  0xc6   : > { %1541 = vmatprep.mubr.f32.mxu1 %v1453_v10  ;;  %13324 = vmatpush3.bf16.msra.mxu1 %v14741_v19 }
  0xc7   : > { %13326 = vmatprep.subr.bf16.mxu1 %v14745_v20 }
  0xc9   : > { %1542 = vmatmul.mubr.f32.gmra.mrb[54].mxu1 %v1452_v11  ;;  %v1988_v11 = vld [vmem:[#allocation2 + $0x370] sm:$0xff] }
  0xca   : > { %1546 = vmatprep.mubr.f32.mxu1 %v1455_v12  ;;  %13328 = vmatpush3.bf16.msra.mxu1 %v14753_v26 }
  0xcb   : > { %13330 = vmatprep.subr.bf16.mxu1 %v14757_v27 }
  0xcd   : > { %1547 = vmatmul.mubr.f32.gmra.mrb[56].mxu1 %v1454_v15 }
  0xce   : > { %1551 = vmatprep.mubr.f32.mxu1 %v1457_v16  ;;  %13332 = vmatpush3.bf16.msra.mxu1 %v14765_v33 }
  0xcf   : > { %13334 = vmatprep.subr.bf16.mxu1 %v14769_v34 }
  0xd1   : > { %1552 = vmatmul.mubr.f32.gmra.mrb[58].mxu1 %v1456_v17 }
  0xd2   : > { %1556 = vmatprep.mubr.f32.mxu1 %v1459_v18  ;;  %13336 = vmatpush3.bf16.msra.mxu1 %v14777_v39  ;;  %v2239_v18 = vld [vmem:[#allocation2 + $0x388] sm:$0xff] }
  0xd3   : > { %13338 = vmatprep.subr.bf16.mxu1 %v14781_v40 }
  0xd5   : > { %1557 = vmatmul.mubr.f32.gmra.mrb[60].mxu1 %v1458_v22 }
  0xd6   : > { %1561 = vmatprep.mubr.f32.mxu1 %v1461_v23  ;;  %13340 = vmatpush3.bf16.msra.mxu1 %v14789_v45  ;;  %v2238_v23 = vld [vmem:[#allocation2 + $0x380] sm:$0xff] }
  0xd7   : > { %13342 = vmatprep.subr.bf16.mxu1 %v14793_v46 }
  0xd9   : > { %1562 = vmatmul.mubr.f32.gmra.mrb[62].mxu1 %v1460_v24 }
  0xda   : > { %13344 = vmatpush3.bf16.msra.mxu1 %v14799_v49  ;;  %2054 = vmatprep.mubr.f32.mxu1 %v1975_v25 }
  0xdb   : > { %13346 = vmatprep.subr.bf16.mxu1 %v14713_v3 }
  0xdd   : > { %2055 = vmatmul.mubr.f32.vlgmr.msra.gmra.mrb[64].mxu1 %v1974_v28 }
  0xde   : > { %13348 = vmatpush3.bf16.msra.mxu1 %v14718_v7  ;;  %2059 = vmatprep.mubr.f32.mxu1 %v1977_v29 }
  0xdf   : > { %13350 = vmatprep.subr.bf16.mxu1 %v14720_v8 }
  0xe1   : > { %2060 = vmatmul.mubr.f32.gmra.mrb[66].mxu1 %v1976_v30  ;;  %v2241_v30 = vld [vmem:[#allocation2 + $0x398] sm:$0xff] }
  0xe2   : > { %13352 = vmatpush3.bf16.msra.mxu1 %v14729_v13  ;;  %2064 = vmatprep.mubr.f32.mxu1 %v1979_v31 }
  0xe3   : > { %13354 = vmatprep.subr.bf16.mxu1 %v14733_v14 }
  0xe5   : > { %2065 = vmatmul.mubr.f32.gmra.mrb[68].mxu1 %v1978_v32 }
  0xe6   : > { %13356 = vmatpush3.bf16.msra.mxu1 %v14741_v19  ;;  %2069 = vmatprep.mubr.f32.mxu1 %v1981_v35  ;;  %v2240_v35 = vld [vmem:[#allocation2 + $0x390] sm:$0xff] }
  0xe7   : > { %13358 = vmatprep.subr.bf16.mxu1 %v14745_v20 }
  0xe9   : > { %2070 = vmatmul.mubr.f32.gmra.mrb[70].mxu1 %v1980_v36 }
  0xea   : > { %13360 = vmatpush3.bf16.msra.mxu1 %v14753_v26  ;;  %2074 = vmatprep.mubr.f32.mxu1 %v1983_v43 }
  0xeb   : > { %13362 = vmatprep.subr.bf16.mxu1 %v14757_v27 }
  0xed   : > { %2075 = vmatmul.mubr.f32.gmra.mrb[72].mxu1 %v1982_v44 }
  0xee   : > { %13364 = vmatpush3.bf16.msra.mxu1 %v14765_v33  ;;  %2079 = vmatprep.mubr.f32.mxu1 %v1985_v54  ;;  %v2245_v54 = vld [vmem:[#allocation2 + $0x3b8] sm:$0xff] }
  0xef   : > { %13366 = vmatprep.subr.bf16.mxu1 %v14769_v34 }
  0xf1   : > { %2080 = vmatmul.mubr.f32.gmra.mrb[74].mxu1 %v1984_v55 }
  0xf2   : > { %13368 = vmatpush3.bf16.msra.mxu1 %v14777_v39  ;;  %2084 = vmatprep.mubr.f32.mxu1 %v1987_v61 }
  0xf3   : > { %13370 = vmatprep.subr.bf16.mxu1 %v14781_v40 }
  0xf5   : > { %2085 = vmatmul.mubr.f32.gmra.mrb[76].mxu1 %v1986_v0 }
  0xf6   : > { %13372 = vmatpush3.bf16.msra.mxu1 %v14789_v45  ;;  %2089 = vmatprep.mubr.f32.mxu1 %v1989_v6 }
  0xf7   : > { %13374 = vmatprep.subr.bf16.mxu1 %v14793_v46 }
  0xf9   : > { %2090 = vmatmul.mubr.f32.gmra.mrb[78].mxu1 %v1988_v11 }
  0xfa   : > { %13376 = vmatpush3.bf16.msra.mxu1 %v14799_v49  ;;  %2318 = vmatprep.mubr.f32.mxu1 %v2239_v18 }
  0xfb   : > { %13378 = vmatprep.subr.bf16.mxu1 %v14713_v3 }
  0xfd   : > { %2319 = vmatmul.mubr.f32.vlgmr.msra.gmra.mrb[80].mxu1 %v2238_v23  ;;  %v2503_v23 = vld [vmem:[#allocation2 + $0x408] sm:$0xff] }
  0xfe   : > { %13380 = vmatpush3.bf16.msra.mxu1 %v14718_v7  ;;  %2323 = vmatprep.mubr.f32.mxu1 %v2241_v30  ;;  %v14968_v30 = vld [vmem:[%s16659_s2 + $0x10] sm:$0x7] }
  0xff   : > { %13382 = vmatprep.subr.bf16.mxu1 %v14720_v8 }
 0x101   : > { %2324 = vmatmul.mubr.f32.gmra.mrb[82].mxu1 %v2240_v35  ;;  %v2504_v35 = vld [vmem:[#allocation2 + $0x410] sm:$0xff] }
 0x102   : > { %13384 = vmatpush3.bf16.msra.mxu1 %v14729_v13 }
 0x103   : > { %13386 = vmatprep.subr.bf16.mxu1 %v14733_v14 }
 0x106   : > { %13388 = vmatpush3.bf16.msra.mxu1 %v14741_v19 }
 0x107   : > { %13390 = vmatprep.subr.bf16.mxu1 %v14745_v20 }
 0x10a   : > { %13392 = vmatpush3.bf16.msra.mxu1 %v14753_v26 }
 0x10b   : > { %13394 = vmatprep.subr.bf16.mxu1 %v14757_v27 }
 0x10e   : > { %13396 = vmatpush3.bf16.msra.mxu1 %v14765_v33 }
 0x10f   : > { %13398 = vmatprep.subr.bf16.mxu1 %v14769_v34 }
 0x112   : > { %13400 = vmatpush3.bf16.msra.mxu1 %v14777_v39 }
 0x113   : > { %13402 = vmatprep.subr.bf16.mxu1 %v14781_v40 }
 0x116   : > { %13404 = vmatpush3.bf16.msra.mxu1 %v14789_v45 }
 0x117   : > { %13406 = vmatprep.subr.bf16.mxu1 %v14793_v46 }
 0x11a   : > { %13408 = vmatpush3.bf16.msra.mxu1 %v14799_v49 }
 0x11b   : > { %13410 = vmatprep.subr.bf16.mxu1 %v14713_v3 }
 0x130   : > { %v10601_v37 = vpop.f32.mrb[0].mxu1  ;;  %v10545_v38 = vpop.f32.mrb[0].mxu0 }
 0x131   : > { %v10602_v41 = vpop.f32.mrb[1].mxu1  ;;  %v10546_v42 = vpop.f32.mrb[1].mxu0 }
 0x132   : > { %v10603_v47 = vadd.f32 %v10602_v41, %v10601_v37  ;;  %v14891_v48 = vadd.f32 %v10546_v42, %v10545_v38  ;;  %v2243_v42 = vld [vmem:[#allocation2 + $0x3a8] sm:$0xff] }
 0x133   : > { %2328 = vmatprep.mubr.f32.mxu1 %v2243_v42  ;;  %v2506_v42 = vld [vmem:[#allocation2 + $0x420] sm:$0xff] }
 0x134   : > { %v10604_v50 = vpop.f32.mrb[2].mxu1  ;;  %12003 = vmatprep.mubr.msk.f32.mxu0 %vm651_vm1, %v10603_v47  ;;  %v10548_v51 = vpop.f32.mrb[2].mxu0  ;;  %v2242_v47 = vld [vmem:[#allocation2 + $0x3a0] sm:$0xff] }
 0x135   : > { %v10605_v52 = vpop.f32.mrb[3].mxu1  ;;  %v10549_v53 = vpop.f32.mrb[3].mxu0  ;;  %2329 = vmatmul.mubr.f32.gmra.mrb[84].mxu1 %v2242_v47  ;;  %v2509_v47 = vld [vmem:[#allocation2 + $0x438] sm:$0xff] }
 0x136   : > { %v10606_v56 = vadd.f32 %v10605_v52, %v10604_v50  ;;  %v14896_v57 = vadd.f32 %v10549_v53, %v10548_v51  ;;  %2333 = vmatprep.mubr.f32.mxu1 %v2245_v54  ;;  %v2511_v54 = vld [vmem:[#allocation2 + $0x448] sm:$0xff] }
 0x138   : > { %v10607_v59 = vpop.f32.mrb[4].mxu1  ;;  %12004 = vmatmul.mubr.msk.f32.vlgmr.msra.gmra.mrb[16].mxu0 %vm651_vm1, %v10606_v56  ;;  %v10551_v60 = vpop.f32.mrb[4].mxu0 }
 0x139   : > { %v10608_v62 = vpop.f32.mrb[5].mxu1  ;;  %v10552_v63 = vpop.f32.mrb[5].mxu0  ;;  %12016 = vmatpush3.msk.msra.mxu0 %vm676_vm0, %v14873_v21 }
 0x13a   : > { %v10609_v1 = vadd.f32 %v10608_v62, %v10607_v59  ;;  %v14907_v2 = vadd.f32 %v10552_v63, %v10551_v60  ;;  %12029 = vmatprep.subr.msk.mxu0 %vm676_vm0, %v14901_v58  ;;  %v2244_v59 = vld [vmem:[#allocation2 + $0x3b0] sm:$0xff]  ;;  %v2247_v63 = vld [vmem:[#allocation2 + $0x3c8] sm:$0xff] }
 0x13b   : > { %2334 = vmatmul.mubr.f32.gmra.mrb[86].mxu1 %v2244_v59 }
 0x13c   : > { %v10610_v4 = vpop.f32.mrb[6].mxu1  ;;  %12006 = vmatprep.mubr.msk.f32.mxu0 %vm651_vm1, %v10609_v1  ;;  %v10554_v5 = vpop.f32.mrb[6].mxu0  ;;  %2338 = vmatprep.mubr.f32.mxu1 %v2247_v63  ;;  %v2246_v1 = vld [vmem:[#allocation2 + $0x3c0] sm:$0xff]  ;;  %v2512_v63 = vld [vmem:[#allocation2 + $0x450] sm:$0xff] }
 0x13d   : > { %v10611_v9 = vpop.f32.mrb[7].mxu1  ;;  %v10555_v10 = vpop.f32.mrb[7].mxu0 }
 0x13e   : > { %v10612_v12 = vadd.f32 %v10611_v9, %v10610_v4  ;;  %v14915_v15 = vadd.f32 %v10555_v10, %v10554_v5  ;;  %v10054_v5 = vld [vmem:[%s16659_s2 + $0xc] sm:$0x7]  ;;  %v2249_v9 = vld [vmem:[#allocation2 + $0x3d8] sm:$0xff]  ;;  %v2248_v10 = vld [vmem:[#allocation2 + $0x3d0] sm:$0xff] }
 0x13f   : > { %2339 = vmatmul.mubr.f32.gmra.mrb[88].mxu1 %v2246_v1 }
 0x140   : > { %v10613_v16 = vpop.f32.mrb[8].mxu1  ;;  %12007 = vmatmul.mubr.msk.f32.gmra.mrb[18].mxu0 %vm651_vm1, %v10612_v12  ;;  %v10557_v17 = vpop.f32.mrb[8].mxu0  ;;  %2343 = vmatprep.mubr.f32.mxu1 %v2249_v9  ;;  %v2251_v12 = vld [vmem:[#allocation2 + $0x3e8] sm:$0xff] }
 0x141   : > { %v10614_v21 = vpop.f32.mrb[9].mxu1  ;;  %v10558_v22 = vpop.f32.mrb[9].mxu0 }
 0x142   : > { %v10615_v24 = vadd.f32 %v10614_v21, %v10613_v16  ;;  %v14920_v25 = vadd.f32 %v10558_v22, %v10557_v17  ;;  %v2250_v16 = vld [vmem:[#allocation2 + $0x3e0] sm:$0xff] }
 0x143   : > { %2344 = vmatmul.mubr.f32.gmra.mrb[90].mxu1 %v2248_v10 }
 0x144   : > { %v10616_v28 = vpop.f32.mrb[10].mxu1  ;;  %12009 = vmatprep.mubr.msk.f32.mxu0 %vm651_vm1, %v10615_v24  ;;  %v10560_v29 = vpop.f32.mrb[10].mxu0  ;;  %2348 = vmatprep.mubr.f32.mxu1 %v2251_v12  ;;  %v2516_v12 = vld [vmem:[#allocation2 + $0x470] sm:$0xff] }
 0x145   : > { %v10617_v31 = vpop.f32.mrb[11].mxu1  ;;  %v10561_v32 = vpop.f32.mrb[11].mxu0 }
 0x146   : > { %v10618_v36 = vadd.f32 %v10617_v31, %v10616_v28  ;;  %v14925_v37 = vadd.f32 %v10561_v32, %v10560_v29  ;;  %v2505_v31 = vld [vmem:[#allocation2 + $0x418] sm:$0xff] }
 0x147   : > { %2349 = vmatmul.mubr.f32.gmra.mrb[92].mxu1 %v2250_v16 }
 0x148   : > { %v10619_v38 = vpop.f32.mrb[12].mxu1  ;;  %12010 = vmatmul.mubr.msk.f32.gmra.mrb[20].mxu0 %vm651_vm1, %v10618_v36  ;;  %v10563_v41 = vpop.f32.mrb[12].mxu0 }
 0x149   : > { %v10620_v43 = vpop.f32.mrb[13].mxu1  ;;  %v10564_v44 = vpop.f32.mrb[13].mxu0 }
 0x14a   : > { %v10621_v50 = vadd.f32 %v10620_v43, %v10619_v38  ;;  %v10565_v51 = vadd.f32 %v10564_v44, %v10563_v41  ;;  %v2507_v38 = vld [vmem:[#allocation2 + $0x428] sm:$0xff] }
 0x14c   : > { %v10622_v52 = vpop.f32.mrb[14].mxu1  ;;  %12012 = vmatprep.mubr.msk.f32.mxu0 %vm651_vm1, %v10621_v50  ;;  %v10566_v53 = vpop.f32.mrb[14].mxu0 }
 0x14d   : > { %v10623_v55 = vpop.f32.mrb[15].mxu1  ;;  %v10567_v56 = vpop.f32.mrb[15].mxu0 }
 0x14e   : > { %v10624_v60 = vadd.f32 %v10623_v55, %v10622_v52  ;;  %v10568_v61 = vadd.f32 %v10567_v56, %v10566_v53  ;;  %v2510_v56 = vld [vmem:[#allocation2 + $0x440] sm:$0xff] }
 0x150   : > { %12013 = vmatmul.mubr.msk.f32.gmra.mrb[22].mxu0 %vm651_vm1, %v10624_v60  ;;  %v10675_v62 = vpop.f32.mrb[16].mxu1 }
 0x151   : > { %v10676_v0 = vpop.f32.mrb[17].mxu1  ;;  %12017 = vmatprep.mubr.msk.f32.mxu0 %vm651_vm1, %v14891_v48 }
 0x152   : > { %v10677_v4 = vadd.f32 %v10676_v0, %v10675_v62 }
 0x154   : > { %12018 = vmatmul.mubr.msk.f32.vlgmr.msra.gmra.mrb[16].mxu0 %vm651_vm1, %v14896_v57  ;;  %v10678_v6 = vpop.f32.mrb[18].mxu1 }
 0x155   : > { %v10679_v11 = vpop.f32.mrb[19].mxu1  ;;  %12020 = vmatprep.mubr.msk.f32.mxu0 %vm651_vm1, %v14907_v2  ;;  %12030 = vmatpush3.msk.msra.mxu0 %vm676_vm0, %v14901_v58  ;;  %v2253_v2 = vld [vmem:[#allocation2 + $0x3f8] sm:$0xff] }
 0x156   : > { %v10680_v48 = vadd.f32 %v10679_v11, %v10678_v6  ;;  %12043 = vmatprep.subr.msk.mxu0 %vm676_vm0, %v10054_v5  ;;  %2353 = vmatprep.mubr.f32.mxu1 %v2253_v2  ;;  %v2514_v6 = vld [vmem:[#allocation2 + $0x460] sm:$0xff]  ;;  %v2517_v11 = vld [vmem:[#allocation2 + $0x478] sm:$0xff] }
 0x157   : > { %v2766_v2 = vld [vmem:[#allocation2 + $0x480] sm:$0xff] }
 0x158   : > { %12021 = vmatmul.mubr.msk.f32.gmra.mrb[18].mxu0 %vm651_vm1, %v14915_v15  ;;  %v10681_v57 = vpop.f32.mrb[20].mxu1  ;;  %v2252_v15 = vld [vmem:[#allocation2 + $0x3f0] sm:$0xff] }
 0x159   : > { %v10682_v17 = vpop.f32.mrb[21].mxu1  ;;  %12023 = vmatprep.mubr.msk.f32.mxu0 %vm651_vm1, %v14920_v25  ;;  %2354 = vmatmul.mubr.f32.gmra.mrb[94].mxu1 %v2252_v15  ;;  %v2502_v25 = vld [vmem:[#allocation2 + $0x400] sm:$0xff]  ;;  %v2769_v15 = vld [vmem:[#allocation2 + $0x498] sm:$0xff] }
 0x15a   : > { %v10683_v58 = vadd.f32 %v10682_v17, %v10681_v57  ;;  %2582 = vmatprep.mubr.f32.mxu1 %v2503_v23  ;;  %v2767_v17 = vld [vmem:[#allocation2 + $0x488] sm:$0xff]  ;;  %v2768_v23 = vld [vmem:[#allocation2 + $0x490] sm:$0xff] }
 0x15c   : > { %12024 = vmatmul.mubr.msk.f32.gmra.mrb[20].mxu0 %vm651_vm1, %v14925_v37  ;;  %v10684_v18 = vpop.f32.mrb[22].mxu1 }
 0x15d   : > { %v10685_v21 = vpop.f32.mrb[23].mxu1  ;;  %12026 = vmatprep.mubr.msk.f32.mxu0 %vm651_vm1, %v10565_v51  ;;  %2583 = vmatmul.mubr.f32.vlgmr.msra.gmra.mrb[96].mxu1 %v2502_v25  ;;  %v2508_v51 = vld [vmem:[#allocation2 + $0x430] sm:$0xff]  ;;  %v2771_v25 = vld [vmem:[#allocation2 + $0x4a8] sm:$0xff] }
 0x15e   : > { %v10686_v22 = vadd.f32 %v10685_v21, %v10684_v18  ;;  %13412 = vmatpush3.bf16.msra.mxu1 %v14718_v7  ;;  %2587 = vmatprep.mubr.f32.mxu1 %v2505_v31 }
 0x15f   : > { %13414 = vmatprep.subr.bf16.mxu1 %v14720_v8 }
 0x160   : > { %12027 = vmatmul.mubr.msk.f32.gmra.mrb[22].mxu0 %vm651_vm1, %v10568_v61  ;;  %v10687_v24 = vpop.f32.mrb[24].mxu1  ;;  %v2513_v61 = vld [vmem:[#allocation2 + $0x458] sm:$0xff] }
 0x161   : > { %v10688_v28 = vpop.f32.mrb[25].mxu1  ;;  %12031 = vmatprep.mubr.msk.f32.mxu0 %vm651_vm1, %v10677_v4  ;;  %2588 = vmatmul.mubr.f32.gmra.mrb[98].mxu1 %v2504_v35  ;;  %v2515_v4 = vld [vmem:[#allocation2 + $0x468] sm:$0xff] }
 0x162   : > { %v10689_v29 = vadd.f32 %v10688_v28, %v10687_v24  ;;  %13416 = vmatpush3.bf16.msra.mxu1 %v14729_v13  ;;  %2592 = vmatprep.mubr.f32.mxu1 %v2507_v38 }
 0x163   : > { %13418 = vmatprep.subr.bf16.mxu1 %v14733_v14 }
 0x164   : > { %v10690_v32 = vpop.f32.mrb[26].mxu1  ;;  %12032 = vmatmul.mubr.msk.f32.vlgmr.msra.gmra.mrb[16].mxu0 %vm651_vm1, %v10680_v48 }
 0x165   : > { %v10691_v36 = vpop.f32.mrb[27].mxu1  ;;  %12034 = vmatprep.mubr.msk.f32.mxu0 %vm651_vm1, %v10683_v58  ;;  %12044 = vmatpush3.msk.msra.mxu0 %vm676_vm0, %v10054_v5 }
 0x166   : > { %v10692_v37 = vadd.f32 %v10691_v36, %v10690_v32  ;;  %12057 = vmatprep.subr.msk.mxu0 %vm676_vm0, %v14968_v30  ;;  %2593 = vmatmul.mubr.f32.gmra.mrb[100].mxu1 %v2506_v42  ;;  %v2773_v32 = vld [vmem:[#allocation2 + $0x4b8] sm:$0xff] }
 0x167   : > { %13420 = vmatpush3.bf16.msra.mxu1 %v14741_v19  ;;  %2597 = vmatprep.mubr.f32.mxu1 %v2509_v47 }
 0x168   : > { %v10693_v41 = vpop.f32.mrb[28].mxu1  ;;  %12035 = vmatmul.mubr.msk.f32.gmra.mrb[18].mxu0 %vm651_vm1, %v10686_v22  ;;  %13422 = vmatprep.subr.bf16.mxu1 %v14745_v20 }
 0x169   : > { %v10694_v43 = vpop.f32.mrb[29].mxu1  ;;  %12037 = vmatprep.mubr.msk.f32.mxu0 %vm651_vm1, %v10689_v29 }
 0x16a   : > { %v10695_v44 = vadd.f32 %v10694_v43, %v10693_v41  ;;  %2598 = vmatmul.mubr.f32.gmra.mrb[102].mxu1 %v2508_v51  ;;  %v2775_v41 = vld [vmem:[#allocation2 + $0x4c8] sm:$0xff] }
 0x16b   : > { %13424 = vmatpush3.bf16.msra.mxu1 %v14753_v26  ;;  %2602 = vmatprep.mubr.f32.mxu1 %v2511_v54 }
 0x16c   : > { %v10696_v50 = vpop.f32.mrb[30].mxu1  ;;  %12038 = vmatmul.mubr.msk.f32.gmra.mrb[20].mxu0 %vm651_vm1, %v10692_v37  ;;  %13426 = vmatprep.subr.bf16.mxu1 %v14757_v27  ;;  %v2772_v37 = vld [vmem:[#allocation2 + $0x4b0] sm:$0xff] }
 0x16d   : > { %v10697_v52 = vpop.f32.mrb[31].mxu1  ;;  %12040 = vmatprep.mubr.msk.f32.mxu0 %vm651_vm1, %v10695_v44  ;;  %v2774_v44 = vld [vmem:[#allocation2 + $0x4c0] sm:$0xff] }
 0x16e   : > { %v10698_v53 = vadd.f32 %v10697_v52, %v10696_v50  ;;  %2603 = vmatmul.mubr.f32.gmra.mrb[104].mxu1 %v2510_v56  ;;  %v2777_v50 = vld [vmem:[#allocation2 + $0x4d8] sm:$0xff] }
 0x16f   : > { %13428 = vmatpush3.bf16.msra.mxu1 %v14765_v33  ;;  %2607 = vmatprep.mubr.f32.mxu1 %v2513_v61 }
 0x170   : > { %12041 = vmatmul.mubr.msk.f32.gmra.mrb[22].mxu0 %vm651_vm1, %v10698_v53  ;;  %v10740_v55 = vpop.f32.mrb[32].mxu1  ;;  %13430 = vmatprep.subr.bf16.mxu1 %v14769_v34  ;;  %v2776_v53 = vld [vmem:[#allocation2 + $0x4d0] sm:$0xff] }
 0x171   : > { %v10741_v59 = vpop.f32.mrb[33].mxu1 }
 0x172   : > { %v10742_v60 = vadd.f32 %v10741_v59, %v10740_v55  ;;  %2608 = vmatmul.mubr.f32.gmra.mrb[106].mxu1 %v2512_v63  ;;  %v2779_v55 = vld [vmem:[#allocation2 + $0x4e8] sm:$0xff] }
 0x173   : > { %13432 = vmatpush3.bf16.msra.mxu1 %v14777_v39  ;;  %2612 = vmatprep.mubr.f32.mxu1 %v2515_v4 }
 0x174   : > { %v10743_v62 = vpop.f32.mrb[34].mxu1  ;;  %12045 = vmatprep.mubr.msk.f32.mxu0 %vm651_vm1, %v10742_v60  ;;  %13434 = vmatprep.subr.bf16.mxu1 %v14781_v40  ;;  %v2778_v60 = vld [vmem:[#allocation2 + $0x4e0] sm:$0xff] }
 0x175   : > { %v10744_v0 = vpop.f32.mrb[35].mxu1 }
 0x176   : > { %v10745_v1 = vadd.f32 %v10744_v0, %v10743_v62  ;;  %2613 = vmatmul.mubr.f32.gmra.mrb[108].mxu1 %v2514_v6  ;;  %v2781_v62 = vld [vmem:[#allocation2 + $0x4f8] sm:$0xff] }
 0x177   : > { %13436 = vmatpush3.bf16.msra.mxu1 %v14789_v45  ;;  %2617 = vmatprep.mubr.f32.mxu1 %v2517_v11 }
 0x178   : > { %v10746_v5 = vpop.f32.mrb[36].mxu1  ;;  %12046 = vmatmul.mubr.msk.f32.vlgmr.msra.gmra.mrb[16].mxu0 %vm651_vm1, %v10745_v1  ;;  %13438 = vmatprep.subr.bf16.mxu1 %v14793_v46  ;;  %v2780_v1 = vld [vmem:[#allocation2 + $0x4f0] sm:$0xff] }
 0x179   : > { %v10747_v9 = vpop.f32.mrb[37].mxu1  ;;  %12058 = vmatpush3.msk.msra.mxu0 %vm676_vm0, %v14968_v30  ;;  %v2770_v30 = vld [vmem:[#allocation2 + $0x4a0] sm:$0xff] }
 0x17a   : > { %v10748_v10 = vadd.f32 %v10747_v9, %v10746_v5  ;;  %13282 = vmatprep.subr.bf16.mxu0 %v14713_v3  ;;  %2618 = vmatmul.mubr.f32.gmra.mrb[110].mxu1 %v2516_v12 }
 0x17b   : > { %13440 = vmatpush3.bf16.msra.mxu1 %v14799_v49  ;;  %2846 = vmatprep.mubr.f32.mxu1 %v2767_v17 }
 0x17c   : > { %v10749_v48 = vpop.f32.mrb[38].mxu1  ;;  %12048 = vmatprep.mubr.msk.f32.mxu0 %vm651_vm1, %v10748_v10  ;;  %13474 = vmatprep.subr.bf16.mxu1 %v14713_v3 }
 0x17d   : > { %v10750_v57 = vpop.f32.mrb[39].mxu1 }
 0x17e   : > { %v10751_v16 = vadd.f32 %v10750_v57, %v10749_v48  ;;  %2847 = vmatmul.mubr.f32.vlgmr.msra.gmra.mrb[112].mxu1 %v2766_v2 }
 0x17f   : > { %2851 = vmatprep.mubr.f32.mxu1 %v2769_v15  ;;  %13476 = vmatpush3.bf16.msra.mxu1 %v14718_v7  ;;  %v1711_v15 = vld [vmem:[#allocation2 + $0x288] sm:$0xff] }
 0x180   : > { %v10752_v58 = vpop.f32.mrb[40].mxu1  ;;  %12049 = vmatmul.mubr.msk.f32.gmra.mrb[18].mxu0 %vm651_vm1, %v10751_v16  ;;  %13478 = vmatprep.subr.bf16.mxu1 %v14720_v8 }
 0x181   : > { %v10753_v18 = vpop.f32.mrb[41].mxu1 }
 0x182   : > { %v10754_v21 = vadd.f32 %v10753_v18, %v10752_v58  ;;  %2852 = vmatmul.mubr.f32.gmra.mrb[114].mxu1 %v2768_v23  ;;  %v1713_v23 = vld [vmem:[#allocation2 + $0x298] sm:$0xff] }
 0x183   : > { %2856 = vmatprep.mubr.f32.mxu1 %v2771_v25  ;;  %13480 = vmatpush3.bf16.msra.mxu1 %v14729_v13  ;;  %v1715_v25 = vld [vmem:[#allocation2 + $0x2a8] sm:$0xff] }
 0x184   : > { %v10755_v22 = vpop.f32.mrb[42].mxu1  ;;  %12051 = vmatprep.mubr.msk.f32.mxu0 %vm651_vm1, %v10754_v21  ;;  %13482 = vmatprep.subr.bf16.mxu1 %v14733_v14  ;;  %v10074_v21 = vld [vmem:[%s16659_s2 + $0x14] sm:$0x7] }
 0x185   : > { %v10756_v24 = vpop.f32.mrb[43].mxu1 }
 0x186   : > { %v10757_v28 = vadd.f32 %v10756_v24, %v10755_v22  ;;  %2857 = vmatmul.mubr.f32.gmra.mrb[116].mxu1 %v2770_v30  ;;  %v1710_v22 = vld [vmem:[#allocation2 + $0x280] sm:$0xff]  ;;  %v1712_v24 = vld [vmem:[#allocation2 + $0x290] sm:$0xff] }
 0x187   : > { %2861 = vmatprep.mubr.f32.mxu1 %v2773_v32  ;;  %13484 = vmatpush3.bf16.msra.mxu1 %v14741_v19  ;;  %v1716_v30 = vld [vmem:[#allocation2 + $0x2b0] sm:$0xff]  ;;  %v1718_v32 = vld [vmem:[#allocation2 + $0x2c0] sm:$0xff] }
 0x188   : > { %v10758_v29 = vpop.f32.mrb[44].mxu1  ;;  %12052 = vmatmul.mubr.msk.f32.gmra.mrb[20].mxu0 %vm651_vm1, %v10757_v28  ;;  %13486 = vmatprep.subr.bf16.mxu1 %v14745_v20  ;;  %v1714_v28 = vld [vmem:[#allocation2 + $0x2a0] sm:$0xff] }
 0x189   : > { %v10759_v31 = vpop.f32.mrb[45].mxu1 }
 0x18a   : > { %v10760_v35 = vadd.f32 %v10759_v31, %v10758_v29  ;;  %2862 = vmatmul.mubr.f32.gmra.mrb[118].mxu1 %v2772_v37  ;;  %v1717_v29 = vld [vmem:[#allocation2 + $0x2b8] sm:$0xff]  ;;  %v1719_v31 = vld [vmem:[#allocation2 + $0x2c8] sm:$0xff] }
 0x18b   : > { %2866 = vmatprep.mubr.f32.mxu1 %v2775_v41  ;;  %13488 = vmatpush3.bf16.msra.mxu1 %v14753_v26  ;;  %v1723_v37 = vld [vmem:[#allocation2 + $0x2e8] sm:$0xff]  ;;  %v1725_v41 = vld [vmem:[#allocation2 + $0x2f8] sm:$0xff] }
 0x18c   : > { %v10761_v36 = vpop.f32.mrb[46].mxu1  ;;  %12054 = vmatprep.mubr.msk.f32.mxu0 %vm651_vm1, %v10760_v35  ;;  %13490 = vmatprep.subr.bf16.mxu1 %v14757_v27  ;;  %v1721_v35 = vld [vmem:[#allocation2 + $0x2d8] sm:$0xff] }
 0x18d   : > { %v10762_v38 = vpop.f32.mrb[47].mxu1 }
 0x18e   : > { %v10763_v42 = vadd.f32 %v10762_v38, %v10761_v36  ;;  %2867 = vmatmul.mubr.f32.gmra.mrb[120].mxu1 %v2774_v44  ;;  %v1720_v36 = vld [vmem:[#allocation2 + $0x2d0] sm:$0xff]  ;;  %v1722_v38 = vld [vmem:[#allocation2 + $0x2e0] sm:$0xff] }
 0x18f   : > { %2871 = vmatprep.mubr.f32.mxu1 %v2777_v50  ;;  %13492 = vmatpush3.bf16.msra.mxu1 %v14765_v33 }
 0x190   : > { %12055 = vmatmul.mubr.msk.f32.gmra.mrb[22].mxu0 %vm651_vm1, %v10763_v42  ;;  %v10805_v43 = vpop.f32.mrb[48].mxu1  ;;  %13494 = vmatprep.subr.bf16.mxu1 %v14769_v34  ;;  %v1724_v42 = vld [vmem:[#allocation2 + $0x2f0] sm:$0xff] }
 0x191   : > { %v10806_v47 = vpop.f32.mrb[49].mxu1 }
 0x192   : > { %v10807_v51 = vadd.f32 %v10806_v47, %v10805_v43  ;;  %2872 = vmatmul.mubr.f32.gmra.mrb[122].mxu1 %v2776_v53 }
 0x193   : > { %2876 = vmatprep.mubr.f32.mxu1 %v2779_v55  ;;  %13496 = vmatpush3.bf16.msra.mxu1 %v14777_v39 }
 0x194   : > { %v10808_v52 = vpop.f32.mrb[50].mxu1  ;;  %12059 = vmatprep.mubr.msk.f32.mxu0 %vm651_vm1, %v10807_v51  ;;  %13498 = vmatprep.subr.bf16.mxu1 %v14781_v40 }
 0x195   : > { %v10809_v54 = vpop.f32.mrb[51].mxu1 }
 0x196   : > { %v10810_v56 = vadd.f32 %v10809_v54, %v10808_v52  ;;  %2877 = vmatmul.mubr.f32.gmra.mrb[124].mxu1 %v2778_v60 }
 0x197   : > { %2881 = vmatprep.mubr.f32.mxu1 %v2781_v62  ;;  %13500 = vmatpush3.bf16.msra.mxu1 %v14789_v45 }
 0x198   : > { %12060 = vmatmul.mubr.msk.f32.vlgmr.msra.gmra.mrb[16].mxu0 %vm651_vm1, %v10810_v56  ;;  %v10811_v59 = vpop.f32.mrb[52].mxu1  ;;  %13502 = vmatprep.subr.bf16.mxu1 %v14793_v46 }
 0x199   : > { %13284 = vmatpush3.bf16.msra.mxu0 %v14718_v7  ;;  %v10812_v61 = vpop.f32.mrb[53].mxu1 }
 0x19a   : > { %v10813_v63 = vadd.f32 %v10812_v61, %v10811_v59  ;;  %13286 = vmatprep.subr.bf16.mxu0 %v14720_v8  ;;  %2882 = vmatmul.mubr.f32.gmra.mrb[126].mxu1 %v2780_v1 }
 0x19b   : > { %13504 = vmatpush3.bf16.msra.mxu1 %v14799_v49 }
 0x19c   : > { %v10814_v0 = vpop.f32.mrb[54].mxu1  ;;  %12062 = vmatprep.mubr.msk.f32.mxu0 %vm651_vm1, %v10813_v63  ;;  %13506 = vmatprep.subr.bf16.mxu1 %v14713_v3 }
 0x19d   : > { %13288 = vmatpush3.bf16.msra.mxu0 %v14729_v13  ;;  %v10815_v4 = vpop.f32.mrb[55].mxu1 }
 0x19e   : > { %v10816_v5 = vadd.f32 %v10815_v4, %v10814_v0  ;;  %13290 = vmatprep.subr.bf16.mxu0 %v14733_v14 }
 0x1a0   : > { %v10817_v6 = vpop.f32.mrb[56].mxu1  ;;  %12063 = vmatmul.mubr.msk.f32.gmra.mrb[18].mxu0 %vm651_vm1, %v10816_v5 }
 0x1a1   : > { %13292 = vmatpush3.bf16.msra.mxu0 %v14741_v19  ;;  %v10818_v9 = vpop.f32.mrb[57].mxu1 }
 0x1a2   : > { %v10819_v10 = vadd.f32 %v10818_v9, %v10817_v6  ;;  %13294 = vmatprep.subr.bf16.mxu0 %v14745_v20 }
 0x1a4   : > { %v10820_v11 = vpop.f32.mrb[58].mxu1  ;;  %12065 = vmatprep.mubr.msk.f32.mxu0 %vm651_vm1, %v10819_v10 }
 0x1a5   : > { %13296 = vmatpush3.bf16.msra.mxu0 %v14753_v26  ;;  %v10821_v48 = vpop.f32.mrb[59].mxu1 }
 0x1a6   : > { %v10822_v12 = vadd.f32 %v10821_v48, %v10820_v11  ;;  %13298 = vmatprep.subr.bf16.mxu0 %v14757_v27 }
 0x1a8   : > { %v10823_v57 = vpop.f32.mrb[60].mxu1  ;;  %12066 = vmatmul.mubr.msk.f32.gmra.mrb[20].mxu0 %vm651_vm1, %v10822_v12 }
 0x1a9   : > { %13300 = vmatpush3.bf16.msra.mxu0 %v14765_v33  ;;  %v10824_v16 = vpop.f32.mrb[61].mxu1 }
 0x1aa   : > { %v10825_v17 = vadd.f32 %v10824_v16, %v10823_v57  ;;  %13302 = vmatprep.subr.bf16.mxu0 %v14769_v34 }
 0x1ac   : > { %v10826_v58 = vpop.f32.mrb[62].mxu1  ;;  %12068 = vmatprep.mubr.msk.f32.mxu0 %vm651_vm1, %v10825_v17 }
 0x1ad   : > { %13304 = vmatpush3.bf16.msra.mxu0 %v14777_v39  ;;  %v10827_v2 = vpop.f32.mrb[63].mxu1 }
 0x1ae   : > { %v10828_v18 = vadd.f32 %v10827_v2, %v10826_v58  ;;  %13306 = vmatprep.subr.bf16.mxu0 %v14781_v40 }
 0x1b0   : > { %12069 = vmatmul.mubr.msk.f32.gmra.mrb[22].mxu0 %vm651_vm1, %v10828_v18  ;;  %v10935_v43 = vpop.f32.mrb[64].mxu1 }
 0x1b1   : > { %13308 = vmatpush3.bf16.msra.mxu0 %v14789_v45  ;;  %1790 = vmatprep.mubr.f32.mxu0 %v1711_v15  ;;  %v10936_v44 = vpop.f32.mrb[65].mxu1 }
 0x1b2   : > { %13310 = vmatprep.subr.bf16.mxu0 %v14793_v46  ;;  %v15051_v47 = vadd.f32 %v10936_v44, %v10935_v43 }
 0x1b4   : > { %v10938_v50 = vpop.f32.mrb[66].mxu1 }
 0x1b5   : > { %13312 = vmatpush3.bf16.msra.mxu0 %v14799_v49  ;;  %v10939_v51 = vpop.f32.mrb[67].mxu1 }
 0x1b6   : > { %12071 = vmatprep.subr.msk.mxu0 %vm676_vm0, %v10074_v21  ;;  %v15053_v52 = vadd.f32 %v10939_v51, %v10938_v50 }
 0x1b8   : > { %1791 = vmatmul.mubr.f32.vlgmr.msra.gmra.mrb[24].mxu0 %v1710_v22  ;;  %v10941_v53 = vpop.f32.mrb[68].mxu1  ;;  %v15076_v22 = vld [vmem:[%s16659_s2 + $0x18] sm:$0x7] }
 0x1b9   : > { %1795 = vmatprep.mubr.f32.mxu0 %v1713_v23  ;;  %12072 = vmatpush3.msk.msra.mxu0 %vm676_vm0, %v10074_v21  ;;  %v10942_v54 = vpop.f32.mrb[69].mxu1 }
 0x1ba   : > { %v15055_v55 = vadd.f32 %v10942_v54, %v10941_v53  ;;  %12085 = vmatprep.subr.msk.mxu0 %vm676_vm0, %v15076_v22 }
 0x1bc   : > { %1796 = vmatmul.mubr.f32.gmra.mrb[26].mxu0 %v1712_v24  ;;  %v10944_v56 = vpop.f32.mrb[70].mxu1 }
 0x1bd   : > { %1800 = vmatprep.mubr.f32.mxu0 %v1715_v25  ;;  %v10945_v59 = vpop.f32.mrb[71].mxu1 }
 0x1be   : > { %v15057_v60 = vadd.f32 %v10945_v59, %v10944_v56 }
 0x1c0   : > { %1801 = vmatmul.mubr.f32.gmra.mrb[28].mxu0 %v1714_v28  ;;  %v10947_v61 = vpop.f32.mrb[72].mxu1 }
 0x1c1   : > { %1805 = vmatprep.mubr.f32.mxu0 %v1717_v29  ;;  %v10948_v62 = vpop.f32.mrb[73].mxu1 }
 0x1c2   : > { %v15059_v63 = vadd.f32 %v10948_v62, %v10947_v61 }
 0x1c4   : > { %1806 = vmatmul.mubr.f32.gmra.mrb[30].mxu0 %v1716_v30  ;;  %v10950_v0 = vpop.f32.mrb[74].mxu1 }
 0x1c5   : > { %1810 = vmatprep.mubr.f32.mxu0 %v1719_v31  ;;  %v10951_v1 = vpop.f32.mrb[75].mxu1 }
 0x1c6   : > { %v15061_v4 = vadd.f32 %v10951_v1, %v10950_v0 }
 0x1c8   : > { %1811 = vmatmul.mubr.f32.gmra.mrb[32].mxu0 %v1718_v32  ;;  %v10953_v5 = vpop.f32.mrb[76].mxu1 }
 0x1c9   : > { %1815 = vmatprep.mubr.f32.mxu0 %v1721_v35  ;;  %v10954_v6 = vpop.f32.mrb[77].mxu1 }
 0x1ca   : > { %v15063_v9 = vadd.f32 %v10954_v6, %v10953_v5 }
 0x1cc   : > { %1816 = vmatmul.mubr.f32.gmra.mrb[34].mxu0 %v1720_v36  ;;  %v10956_v10 = vpop.f32.mrb[78].mxu1 }
 0x1cd   : > { %1820 = vmatprep.mubr.f32.mxu0 %v1723_v37  ;;  %v10957_v11 = vpop.f32.mrb[79].mxu1 }
 0x1ce   : > { %v15065_v48 = vadd.f32 %v10957_v11, %v10956_v10 }
 0x1d0   : > { %1821 = vmatmul.mubr.f32.gmra.mrb[36].mxu0 %v1722_v38  ;;  %v11000_v12 = vpop.f32.mrb[80].mxu1 }
 0x1d1   : > { %1825 = vmatprep.mubr.f32.mxu0 %v1725_v41  ;;  %v11001_v57 = vpop.f32.mrb[81].mxu1 }
 0x1d2   : > { %v15067_v16 = vadd.f32 %v11001_v57, %v11000_v12 }
 0x1d4   : > { %1826 = vmatmul.mubr.f32.gmra.mrb[38].mxu0 %v1724_v42  ;;  %v11003_v17 = vpop.f32.mrb[82].mxu1 }
 0x1d5   : > { %v11004_v58 = vpop.f32.mrb[83].mxu1 }
 0x1d6   : > { %v15069_v2 = vadd.f32 %v11004_v58, %v11003_v17 }
 0x208   : > { %v11006_v18 = vpop.f32.mrb[84].mxu1 }
 0x209   : > { %v11007_v15 = vpop.f32.mrb[85].mxu1 }
 0x20a   : > { %v15071_v21 = vadd.f32 %v11007_v15, %v11006_v18 }
 0x20e   : > { %v11009_v23 = vpop.f32.mrb[86].mxu1 }
 0x20f   : > { %v11010_v24 = vpop.f32.mrb[87].mxu1 }
 0x210   : > { %v15080_v25 = vadd.f32 %v11010_v24, %v11009_v23 }
 0x212   : > { %v11012_v28 = vpop.f32.mrb[88].mxu1 }
 0x213   : > { %v11013_v29 = vpop.f32.mrb[89].mxu1 }
 0x214   : > { %v15082_v30 = vadd.f32 %v11013_v29, %v11012_v28 }
 0x216   : > { %v11015_v31 = vpop.f32.mrb[90].mxu1 }
 0x217   : > { %v11016_v32 = vpop.f32.mrb[91].mxu1 }
 0x218   : > { %v15084_v35 = vadd.f32 %v11016_v32, %v11015_v31 }
 0x21a   : > { %v11018_v36 = vpop.f32.mrb[92].mxu1 }
 0x21b   : > { %v11019_v37 = vpop.f32.mrb[93].mxu1 }
 0x21c   : > { %v15086_v38 = vadd.f32 %v11019_v37, %v11018_v36 }
 0x22c   : > { %v11021_v41 = vpop.f32.mrb[94].mxu1 }
 0x22d   : > { %v11022_v42 = vpop.f32.mrb[95].mxu1 }
 0x22e   : > { %v15088_v43 = vadd.f32 %v11022_v42, %v11021_v41 }
 0x230   : > { %v11065_v44 = vpop.f32.mrb[96].mxu1 }
 0x231   : > { %v11066_v50 = vpop.f32.mrb[97].mxu1 }
 0x232   : > { %v15090_v51 = vadd.f32 %v11066_v50, %v11065_v44 }
 0x234   : > { %v11068_v53 = vpop.f32.mrb[98].mxu1 }
 0x235   : > { %v11069_v54 = vpop.f32.mrb[99].mxu1 }
 0x236   : > { %v15092_v56 = vadd.f32 %v11069_v54, %v11068_v53 }
 0x239   : > { %v11071_v59 = vpop.f32.mrb[100].mxu1 }
 0x23a   : > { %v11072_v61 = vpop.f32.mrb[101].mxu1 }
 0x23b   : > { %v15094_v62 = vadd.f32 %v11072_v61, %v11071_v59  ;;  %v3295_v61 = vld [vmem:[#allocation2 + $0x588] sm:$0xff] }
 0x23c   : > { %3374 = vmatprep.mubr.f32.mxu1 %v3295_v61 }
 0x23d   : > { %v11074_v0 = vpop.f32.mrb[102].mxu1 }
 0x23e   : > { %v11075_v1 = vpop.f32.mrb[103].mxu1 }
 0x23f   : > { %v15096_v5 = vadd.f32 %v11075_v1, %v11074_v0  ;;  %v3294_v1 = vld [vmem:[#allocation2 + $0x580] sm:$0xff] }
 0x240   : > { %3375 = vmatmul.mubr.f32.vlgmr.msra.gmra.mrb[128].mxu1 %v3294_v1  ;;  %v3302_v1 = vld [vmem:[#allocation2 + $0x5c0] sm:$0xff] }
 0x241   : > { %v11077_v6 = vpop.f32.mrb[104].mxu1  ;;  %13508 = vmatpush3.bf16.msra.mxu1 %v14718_v7 }
 0x242   : > { %v11078_v10 = vpop.f32.mrb[105].mxu1  ;;  %13510 = vmatprep.subr.bf16.mxu1 %v14720_v8 }
 0x243   : > { %v15098_v11 = vadd.f32 %v11078_v10, %v11077_v6 }
 0x245   : > { %v11080_v12 = vpop.f32.mrb[106].mxu1  ;;  %13512 = vmatpush3.bf16.msra.mxu1 %v14729_v13 }
 0x246   : > { %v11081_v57 = vpop.f32.mrb[107].mxu1  ;;  %13514 = vmatprep.subr.bf16.mxu1 %v14733_v14 }
 0x247   : > { %v15100_v17 = vadd.f32 %v11081_v57, %v11080_v12  ;;  %v3297_v12 = vld [vmem:[#allocation2 + $0x598] sm:$0xff] }
 0x248   : > { %3379 = vmatprep.mubr.f32.mxu1 %v3297_v12  ;;  %v3304_v12 = vld [vmem:[#allocation2 + $0x5d0] sm:$0xff] }
 0x249   : > { %v11083_v58 = vpop.f32.mrb[108].mxu1  ;;  %13516 = vmatpush3.bf16.msra.mxu1 %v14741_v19 }
 0x24a   : > { %v11084_v18 = vpop.f32.mrb[109].mxu1  ;;  %13518 = vmatprep.subr.bf16.mxu1 %v14745_v20 }
 0x24b   : > { %v15102_v15 = vadd.f32 %v11084_v18, %v11083_v58  ;;  %v3296_v58 = vld [vmem:[#allocation2 + $0x590] sm:$0xff] }
 0x24c   : > { %3380 = vmatmul.mubr.f32.gmra.mrb[130].mxu1 %v3296_v58  ;;  %v3306_v58 = vld [vmem:[#allocation2 + $0x5e0] sm:$0xff] }
 0x24d   : > { %v11086_v23 = vpop.f32.mrb[110].mxu1  ;;  %13520 = vmatpush3.bf16.msra.mxu1 %v14753_v26 }
 0x24e   : > { %v11087_v24 = vpop.f32.mrb[111].mxu1  ;;  %13522 = vmatprep.subr.bf16.mxu1 %v14757_v27 }
 0x24f   : > { %v15104_v28 = vadd.f32 %v11087_v24, %v11086_v23  ;;  %v3299_v24 = vld [vmem:[#allocation2 + $0x5a8] sm:$0xff] }
 0x250   : > { %3384 = vmatprep.mubr.f32.mxu1 %v3299_v24  ;;  %v3308_v24 = vld [vmem:[#allocation2 + $0x5f0] sm:$0xff] }
 0x251   : > { %v11130_v29 = vpop.f32.mrb[112].mxu1  ;;  %13524 = vmatpush3.bf16.msra.mxu1 %v14765_v33 }
 0x252   : > { %v11131_v31 = vpop.f32.mrb[113].mxu1  ;;  %13526 = vmatprep.subr.bf16.mxu1 %v14769_v34 }
 0x253   : > { %v15106_v32 = vadd.f32 %v11131_v31, %v11130_v29  ;;  %v3298_v31 = vld [vmem:[#allocation2 + $0x5a0] sm:$0xff] }
 0x254   : > { %3385 = vmatmul.mubr.f32.gmra.mrb[132].mxu1 %v3298_v31  ;;  %v3558_v31 = vld [vmem:[#allocation2 + $0x600] sm:$0xff] }
 0x255   : > { %v11133_v36 = vpop.f32.mrb[114].mxu1  ;;  %13528 = vmatpush3.bf16.msra.mxu1 %v14777_v39 }
 0x256   : > { %v11134_v37 = vpop.f32.mrb[115].mxu1  ;;  %13530 = vmatprep.subr.bf16.mxu1 %v14781_v40 }
 0x257   : > { %v15108_v41 = vadd.f32 %v11134_v37, %v11133_v36 }
 0x259   : > { %v11136_v42 = vpop.f32.mrb[116].mxu1  ;;  %13532 = vmatpush3.bf16.msra.mxu1 %v14789_v45 }
 0x25a   : > { %v11137_v44 = vpop.f32.mrb[117].mxu1  ;;  %13534 = vmatprep.subr.bf16.mxu1 %v14793_v46 }
 0x25b   : > { %v15110_v50 = vadd.f32 %v11137_v44, %v11136_v42  ;;  %v3301_v42 = vld [vmem:[#allocation2 + $0x5b8] sm:$0xff] }
 0x25c   : > { %3389 = vmatprep.mubr.f32.mxu1 %v3301_v42  ;;  %v3561_v42 = vld [vmem:[#allocation2 + $0x618] sm:$0xff] }
 0x25d   : > { %v11139_v53 = vpop.f32.mrb[118].mxu1  ;;  %13536 = vmatpush3.bf16.msra.mxu1 %v14799_v49 }
 0x25e   : > { %v11140_v54 = vpop.f32.mrb[119].mxu1  ;;  %13538 = vmatprep.subr.bf16.mxu1 %v14713_v3 }
 0x25f   : > { %v15112_v59 = vadd.f32 %v11140_v54, %v11139_v53  ;;  %v3300_v53 = vld [vmem:[#allocation2 + $0x5b0] sm:$0xff] }
 0x260   : > { %3390 = vmatmul.mubr.f32.gmra.mrb[134].mxu1 %v3300_v53  ;;  %v3560_v53 = vld [vmem:[#allocation2 + $0x610] sm:$0xff] }
 0x261   : > { %v11142_v0 = vpop.f32.mrb[120].mxu1 }
 0x262   : > { %v11143_v6 = vpop.f32.mrb[121].mxu1 }
 0x263   : > { %v15114_v10 = vadd.f32 %v11143_v6, %v11142_v0  ;;  %v3303_v0 = vld [vmem:[#allocation2 + $0x5c8] sm:$0xff]  ;;  %v3305_v6 = vld [vmem:[#allocation2 + $0x5d8] sm:$0xff] }
 0x264   : > { %3394 = vmatprep.mubr.f32.mxu1 %v3303_v0 }
 0x265   : > { %v11145_v57 = vpop.f32.mrb[122].mxu1  ;;  %3395 = vmatmul.mubr.f32.gmra.mrb[136].mxu1 %v3302_v1  ;;  %v3563_v1 = vld [vmem:[#allocation2 + $0x628] sm:$0xff] }
 0x266   : > { %v11146_v18 = vpop.f32.mrb[123].mxu1  ;;  %3399 = vmatprep.mubr.f32.mxu1 %v3305_v6 }
 0x267   : > { %v15118_v23 = vadd.f32 %v11146_v18, %v11145_v57  ;;  %v3307_v57 = vld [vmem:[#allocation2 + $0x5e8] sm:$0xff]  ;;  %v3309_v18 = vld [vmem:[#allocation2 + $0x5f8] sm:$0xff] }
 0x269   : > { %v11148_v29 = vpop.f32.mrb[124].mxu1  ;;  %3400 = vmatmul.mubr.f32.gmra.mrb[138].mxu1 %v3304_v12  ;;  %v3562_v12 = vld [vmem:[#allocation2 + $0x620] sm:$0xff] }
 0x26a   : > { %v11149_v36 = vpop.f32.mrb[125].mxu1  ;;  %3404 = vmatprep.mubr.f32.mxu1 %v3307_v57 }
 0x26b   : > { %v15122_v37 = vadd.f32 %v11149_v36, %v11148_v29  ;;  %v3559_v29 = vld [vmem:[#allocation2 + $0x608] sm:$0xff] }
 0x26d   : > { %v11151_v44 = vpop.f32.mrb[126].mxu1  ;;  %3405 = vmatmul.mubr.f32.gmra.mrb[140].mxu1 %v3306_v58  ;;  %v15146_v58 = vld [vmem:[%s16659_s2 + $0x1c] sm:$0x7] }
 0x26e   : > { %v11152_v54 = vpop.f32.mrb[127].mxu1  ;;  %3409 = vmatprep.mubr.f32.mxu1 %v3309_v18 }
 0x26f   : > { %v15126_v61 = vadd.f32 %v11152_v54, %v11151_v44 }
 0x271   : > { %3410 = vmatmul.mubr.f32.gmra.mrb[142].mxu1 %v3308_v24  ;;  %v3565_v24 = vld [vmem:[#allocation2 + $0x638] sm:$0xff] }
 0x272   : > { %3638 = vmatprep.mubr.f32.mxu1 %v3559_v29 }
 0x275   : > { %3639 = vmatmul.mubr.f32.vlgmr.msra.gmra.mrb[144].mxu1 %v3558_v31  ;;  %v3564_v31 = vld [vmem:[#allocation2 + $0x630] sm:$0xff] }
 0x276   : > { %13540 = vmatpush3.bf16.msra.mxu1 %v14718_v7  ;;  %3643 = vmatprep.mubr.f32.mxu1 %v3561_v42 }
 0x277   : > { %13542 = vmatprep.subr.bf16.mxu1 %v14720_v8 }
 0x279   : > { %3644 = vmatmul.mubr.f32.gmra.mrb[146].mxu1 %v3560_v53 }
 0x27a   : > { %13544 = vmatpush3.bf16.msra.mxu1 %v14729_v13  ;;  %3648 = vmatprep.mubr.f32.mxu1 %v3563_v1  ;;  %v3569_v1 = vld [vmem:[#allocation2 + $0x658] sm:$0xff] }
 0x27b   : > { %13546 = vmatprep.subr.bf16.mxu1 %v14733_v14 }
 0x27d   : > { %3649 = vmatmul.mubr.f32.gmra.mrb[148].mxu1 %v3562_v12 }
 0x27e   : > { %13548 = vmatpush3.bf16.msra.mxu1 %v14741_v19  ;;  %3653 = vmatprep.mubr.f32.mxu1 %v3565_v24 }
 0x27f   : > { %13550 = vmatprep.subr.bf16.mxu1 %v14745_v20 }
 0x281   : > { %3654 = vmatmul.mubr.f32.gmra.mrb[150].mxu1 %v3564_v31 }
 0x282   : > { %13552 = vmatpush3.bf16.msra.mxu1 %v14753_v26 }
 0x283   : > { %13554 = vmatprep.subr.bf16.mxu1 %v14757_v27 }
 0x286   : > { %13556 = vmatpush3.bf16.msra.mxu1 %v14765_v33 }
 0x287   : > { %13558 = vmatprep.subr.bf16.mxu1 %v14769_v34 }
 0x28a   : > { %13560 = vmatpush3.bf16.msra.mxu1 %v14777_v39 }
 0x28b   : > { %v10870_v36 = vpop.f32.mrb[24].mxu0  ;;  %13562 = vmatprep.subr.bf16.mxu1 %v14781_v40 }
 0x28c   : > { %v10871_v44 = vpop.f32.mrb[25].mxu0 }
 0x28d   : > { %v10872_v54 = vadd.f32 %v10871_v44, %v10870_v36  ;;  %v3567_v44 = vld [vmem:[#allocation2 + $0x648] sm:$0xff] }
 0x28e   : > { %3658 = vmatprep.mubr.f32.mxu1 %v3567_v44  ;;  %13564 = vmatpush3.bf16.msra.mxu1 %v14789_v45 }
 0x28f   : > { %v10873_v0 = vpop.f32.mrb[26].mxu0  ;;  %12073 = vmatprep.mubr.msk.f32.mxu0 %vm651_vm1, %v10872_v54  ;;  %v3566_v54 = vld [vmem:[#allocation2 + $0x640] sm:$0xff]  ;;  %13566 = vmatprep.subr.bf16.mxu1 %v14793_v46 }
 0x290   : > { %v10874_v6 = vpop.f32.mrb[27].mxu0  ;;  %3659 = vmatmul.mubr.f32.gmra.mrb[152].mxu1 %v3566_v54 }
 0x291   : > { %v10875_v57 = vadd.f32 %v10874_v6, %v10873_v0  ;;  %v3568_v6 = vld [vmem:[#allocation2 + $0x650] sm:$0xff]  ;;  %3663 = vmatprep.mubr.f32.mxu1 %v3569_v1 }
 0x292   : > { %13568 = vmatpush3.bf16.msra.mxu1 %v14799_v49 }
 0x293   : > { %v10876_v18 = vpop.f32.mrb[28].mxu0  ;;  %12074 = vmatmul.mubr.msk.f32.vlgmr.msra.gmra.mrb[16].mxu0 %vm651_vm1, %v10875_v57  ;;  %13570 = vmatprep.subr.bf16.mxu1 %v14713_v3 }
 0x294   : > { %v10877_v29 = vpop.f32.mrb[29].mxu0  ;;  %12086 = vmatpush3.msk.msra.mxu0 %vm676_vm0, %v15076_v22  ;;  %3664 = vmatmul.mubr.f32.gmra.mrb[154].mxu1 %v3568_v6  ;;  %v3822_v6 = vld [vmem:[#allocation2 + $0x680] sm:$0xff] }
 0x295   : > { %v10878_v36 = vadd.f32 %v10877_v29, %v10876_v18  ;;  %12099 = vmatprep.subr.msk.mxu0 %vm676_vm0, %v15146_v58  ;;  %v3571_v18 = vld [vmem:[#allocation2 + $0x668] sm:$0xff]  ;;  %v3570_v29 = vld [vmem:[#allocation2 + $0x660] sm:$0xff] }
 0x296   : > { %3668 = vmatprep.mubr.f32.mxu1 %v3571_v18  ;;  %v3825_v18 = vld [vmem:[#allocation2 + $0x698] sm:$0xff] }
 0x297   : > { %v10879_v42 = vpop.f32.mrb[30].mxu0  ;;  %12076 = vmatprep.mubr.msk.f32.mxu0 %vm651_vm1, %v10878_v36 }
 0x298   : > { %v10880_v53 = vpop.f32.mrb[31].mxu0  ;;  %3669 = vmatmul.mubr.f32.gmra.mrb[156].mxu1 %v3570_v29  ;;  %v10104_v29 = vld [vmem:[%s16659_s2 + $0x20] sm:$0x7] }
 0x299   : > { %v10881_v22 = vadd.f32 %v10880_v53, %v10879_v42  ;;  %v3573_v42 = vld [vmem:[#allocation2 + $0x678] sm:$0xff]  ;;  %v3572_v53 = vld [vmem:[#allocation2 + $0x670] sm:$0xff] }
 0x29a   : > { %3673 = vmatprep.mubr.f32.mxu1 %v3573_v42  ;;  %v4086_v42 = vld [vmem:[#allocation2 + $0x700] sm:$0xff] }
 0x29b   : > { %v10882_v0 = vpop.f32.mrb[32].mxu0  ;;  %12077 = vmatmul.mubr.msk.f32.gmra.mrb[18].mxu0 %vm651_vm1, %v10881_v22 }
 0x29c   : > { %v10883_v12 = vpop.f32.mrb[33].mxu0  ;;  %3674 = vmatmul.mubr.f32.gmra.mrb[158].mxu1 %v3572_v53  ;;  %v3036_v53 = vld [vmem:[#allocation2 + $0x530] sm:$0xff] }
 0x29d   : > { %v10884_v57 = vadd.f32 %v10883_v12, %v10882_v0  ;;  %v3823_v0 = vld [vmem:[#allocation2 + $0x688] sm:$0xff] }
 0x29e   : > { %3902 = vmatprep.mubr.f32.mxu1 %v3823_v0  ;;  %v3041_v0 = vld [vmem:[#allocation2 + $0x558] sm:$0xff] }
 0x29f   : > { %v10885_v24 = vpop.f32.mrb[34].mxu0  ;;  %12079 = vmatprep.mubr.msk.f32.mxu0 %vm651_vm1, %v10884_v57 }
 0x2a0   : > { %v10886_v31 = vpop.f32.mrb[35].mxu0  ;;  %3903 = vmatmul.mubr.f32.vlgmr.msra.gmra.mrb[160].mxu1 %v3822_v6  ;;  %v3043_v6 = vld [vmem:[#allocation2 + $0x568] sm:$0xff] }
 0x2a1   : > { %v10887_v36 = vadd.f32 %v10886_v31, %v10885_v24  ;;  %13572 = vmatpush3.bf16.msra.mxu1 %v14718_v7  ;;  %v3824_v24 = vld [vmem:[#allocation2 + $0x690] sm:$0xff]  ;;  %3907 = vmatprep.mubr.f32.mxu1 %v3825_v18  ;;  %v3827_v31 = vld [vmem:[#allocation2 + $0x6a8] sm:$0xff] }
 0x2a2   : > { %13574 = vmatprep.subr.bf16.mxu1 %v14720_v8  ;;  %v3044_v18 = vld [vmem:[#allocation2 + $0x570] sm:$0xff] }
 0x2a3   : > { %v10888_v44 = vpop.f32.mrb[36].mxu0  ;;  %12080 = vmatmul.mubr.msk.f32.gmra.mrb[20].mxu0 %vm651_vm1, %v10887_v36  ;;  %v3826_v36 = vld [vmem:[#allocation2 + $0x6a0] sm:$0xff] }
 0x2a4   : > { %v10889_v54 = vpop.f32.mrb[37].mxu0  ;;  %3908 = vmatmul.mubr.f32.gmra.mrb[162].mxu1 %v3824_v24 }
 0x2a5   : > { %v10890_v22 = vadd.f32 %v10889_v54, %v10888_v44  ;;  %13576 = vmatpush3.bf16.msra.mxu1 %v14729_v13  ;;  %3912 = vmatprep.mubr.f32.mxu1 %v3827_v31  ;;  %v4091_v44 = vld [vmem:[#allocation2 + $0x728] sm:$0xff] }
 0x2a6   : > { %13578 = vmatprep.subr.bf16.mxu1 %v14733_v14  ;;  %v3039_v54 = vld [vmem:[#allocation2 + $0x548] sm:$0xff] }
 0x2a7   : > { %v10891_v1 = vpop.f32.mrb[38].mxu0  ;;  %12082 = vmatprep.mubr.msk.f32.mxu0 %vm651_vm1, %v10890_v22  ;;  %v3038_v22 = vld [vmem:[#allocation2 + $0x540] sm:$0xff] }
 0x2a8   : > { %v10892_v12 = vpop.f32.mrb[39].mxu0  ;;  %3913 = vmatmul.mubr.f32.gmra.mrb[164].mxu1 %v3826_v36 }
 0x2a9   : > { %v10893_v57 = vadd.f32 %v10892_v12, %v10891_v1  ;;  %13580 = vmatpush3.bf16.msra.mxu1 %v14741_v19  ;;  %v3040_v1 = vld [vmem:[#allocation2 + $0x550] sm:$0xff]  ;;  %v3042_v12 = vld [vmem:[#allocation2 + $0x560] sm:$0xff] }
 0x2aa   : > { %13582 = vmatprep.subr.bf16.mxu1 %v14745_v20 }
 0x2ab   : > { %12083 = vmatmul.mubr.msk.f32.gmra.mrb[22].mxu0 %vm651_vm1, %v10893_v57  ;;  %v3045_v57 = vld [vmem:[#allocation2 + $0x578] sm:$0xff] }
 0x2ac   : > { %12087 = vmatprep.mubr.msk.f32.mxu0 %vm651_vm1, %v15051_v47  ;;  %v3829_v47 = vld [vmem:[#allocation2 + $0x6b8] sm:$0xff] }
 0x2ad   : > { %3917 = vmatprep.mubr.f32.mxu1 %v3829_v47  ;;  %13584 = vmatpush3.bf16.msra.mxu1 %v14753_v26 }
 0x2ae   : > { %13586 = vmatprep.subr.bf16.mxu1 %v14757_v27 }
 0x2af   : > { %12088 = vmatmul.mubr.msk.f32.vlgmr.msra.gmra.mrb[16].mxu0 %vm651_vm1, %v15053_v52  ;;  %v3828_v52 = vld [vmem:[#allocation2 + $0x6b0] sm:$0xff] }
 0x2b0   : > { %12090 = vmatprep.mubr.msk.f32.mxu0 %vm651_vm1, %v15055_v55  ;;  %12100 = vmatpush3.msk.msra.mxu0 %vm676_vm0, %v15146_v58  ;;  %v3831_v55 = vld [vmem:[#allocation2 + $0x6c8] sm:$0xff]  ;;  %v3830_v58 = vld [vmem:[#allocation2 + $0x6c0] sm:$0xff] }
 0x2b1   : > { %12113 = vmatprep.subr.msk.mxu0 %vm676_vm0, %v10104_v29  ;;  %3918 = vmatmul.mubr.f32.gmra.mrb[166].mxu1 %v3828_v52 }
 0x2b2   : > { %3922 = vmatprep.mubr.f32.mxu1 %v3831_v55  ;;  %13588 = vmatpush3.bf16.msra.mxu1 %v14765_v33 }
 0x2b3   : > { %12091 = vmatmul.mubr.msk.f32.gmra.mrb[18].mxu0 %vm651_vm1, %v15057_v60  ;;  %v3833_v60 = vld [vmem:[#allocation2 + $0x6d8] sm:$0xff]  ;;  %13590 = vmatprep.subr.bf16.mxu1 %v14769_v34 }
 0x2b4   : > { %12093 = vmatprep.mubr.msk.f32.mxu0 %vm651_vm1, %v15059_v63  ;;  %v3832_v63 = vld [vmem:[#allocation2 + $0x6d0] sm:$0xff] }
 0x2b5   : > { %3923 = vmatmul.mubr.f32.gmra.mrb[168].mxu1 %v3830_v58 }
 0x2b6   : > { %3927 = vmatprep.mubr.f32.mxu1 %v3833_v60  ;;  %13592 = vmatpush3.bf16.msra.mxu1 %v14777_v39 }
 0x2b7   : > { %12094 = vmatmul.mubr.msk.f32.gmra.mrb[20].mxu0 %vm651_vm1, %v15061_v4  ;;  %v10114_v4 = vld [vmem:[%s16659_s2 + $0x24] sm:$0x7]  ;;  %13594 = vmatprep.subr.bf16.mxu1 %v14781_v40 }
 0x2b8   : > { %12096 = vmatprep.mubr.msk.f32.mxu0 %vm651_vm1, %v15063_v9  ;;  %v3835_v9 = vld [vmem:[#allocation2 + $0x6e8] sm:$0xff] }
 0x2b9   : > { %3928 = vmatmul.mubr.f32.gmra.mrb[170].mxu1 %v3832_v63 }
 0x2ba   : > { %3932 = vmatprep.mubr.f32.mxu1 %v3835_v9  ;;  %13596 = vmatpush3.bf16.msra.mxu1 %v14789_v45 }
 0x2bb   : > { %12097 = vmatmul.mubr.msk.f32.gmra.mrb[22].mxu0 %vm651_vm1, %v15065_v48  ;;  %v3834_v48 = vld [vmem:[#allocation2 + $0x6e0] sm:$0xff]  ;;  %13598 = vmatprep.subr.bf16.mxu1 %v14793_v46 }
 0x2bc   : > { %12101 = vmatprep.mubr.msk.f32.mxu0 %vm651_vm1, %v15067_v16  ;;  %v3837_v16 = vld [vmem:[#allocation2 + $0x6f8] sm:$0xff] }
 0x2bd   : > { %3933 = vmatmul.mubr.f32.gmra.mrb[172].mxu1 %v3834_v48 }
 0x2be   : > { %3937 = vmatprep.mubr.f32.mxu1 %v3837_v16  ;;  %13600 = vmatpush3.bf16.msra.mxu1 %v14799_v49 }
 0x2bf   : > { %12102 = vmatmul.mubr.msk.f32.vlgmr.msra.gmra.mrb[16].mxu0 %vm651_vm1, %v15069_v2  ;;  %v3836_v2 = vld [vmem:[#allocation2 + $0x6f0] sm:$0xff] }
 0x2c0   : > { %12104 = vmatprep.mubr.msk.f32.mxu0 %vm651_vm1, %v15071_v21  ;;  %12114 = vmatpush3.msk.msra.mxu0 %vm676_vm0, %v10104_v29  ;;  %v4087_v21 = vld [vmem:[#allocation2 + $0x708] sm:$0xff] }
 0x2c1   : > { %12127 = vmatprep.subr.msk.mxu0 %vm676_vm0, %v10114_v4  ;;  %3938 = vmatmul.mubr.f32.gmra.mrb[174].mxu1 %v3836_v2 }
 0x2c2   : > { %4166 = vmatprep.mubr.f32.mxu1 %v4087_v21 }
 0x2c3   : > { %12105 = vmatmul.mubr.msk.f32.gmra.mrb[18].mxu0 %vm651_vm1, %v15080_v25  ;;  %v4089_v25 = vld [vmem:[#allocation2 + $0x718] sm:$0xff] }
 0x2c4   : > { %12107 = vmatprep.mubr.msk.f32.mxu0 %vm651_vm1, %v15082_v30  ;;  %v4088_v30 = vld [vmem:[#allocation2 + $0x710] sm:$0xff] }
 0x2c5   : > { %4167 = vmatmul.mubr.f32.vlgmr.msra.gmra.mrb[176].mxu1 %v4086_v42 }
 0x2c6   : > { %4171 = vmatprep.mubr.f32.mxu1 %v4089_v25 }
 0x2c7   : > { %12108 = vmatmul.mubr.msk.f32.gmra.mrb[20].mxu0 %vm651_vm1, %v15084_v35  ;;  %v4090_v35 = vld [vmem:[#allocation2 + $0x720] sm:$0xff] }
 0x2c8   : > { %12110 = vmatprep.mubr.msk.f32.mxu0 %vm651_vm1, %v15086_v38  ;;  %v4093_v38 = vld [vmem:[#allocation2 + $0x738] sm:$0xff] }
 0x2c9   : > { %4172 = vmatmul.mubr.f32.gmra.mrb[178].mxu1 %v4088_v30 }
 0x2ca   : > { %4176 = vmatprep.mubr.f32.mxu1 %v4091_v44 }
 0x2cb   : > { %12111 = vmatmul.mubr.msk.f32.gmra.mrb[22].mxu0 %vm651_vm1, %v15088_v43  ;;  %v4092_v43 = vld [vmem:[#allocation2 + $0x730] sm:$0xff] }
 0x2cc   : > { %12115 = vmatprep.mubr.msk.f32.mxu0 %vm651_vm1, %v15090_v51  ;;  %v4095_v51 = vld [vmem:[#allocation2 + $0x748] sm:$0xff] }
 0x2cd   : > { %4177 = vmatmul.mubr.f32.gmra.mrb[180].mxu1 %v4090_v35 }
 0x2ce   : > { %4181 = vmatprep.mubr.f32.mxu1 %v4093_v38 }
 0x2cf   : > { %12116 = vmatmul.mubr.msk.f32.vlgmr.msra.gmra.mrb[16].mxu0 %vm651_vm1, %v15092_v56  ;;  %v4094_v56 = vld [vmem:[#allocation2 + $0x740] sm:$0xff] }
 0x2d0   : > { %12118 = vmatprep.mubr.msk.f32.mxu0 %vm651_vm1, %v15094_v62  ;;  %12128 = vmatpush3.msk.msra.mxu0 %vm676_vm0, %v10114_v4  ;;  %v4097_v62 = vld [vmem:[#allocation2 + $0x758] sm:$0xff] }
 0x2d1   : > { %13442 = vmatprep.subr.bf16.mxu0 %v14713_v3  ;;  %4182 = vmatmul.mubr.f32.gmra.mrb[182].mxu1 %v4092_v43 }
 0x2d2   : > { %4186 = vmatprep.mubr.f32.mxu1 %v4095_v51 }
 0x2d3   : > { %12119 = vmatmul.mubr.msk.f32.gmra.mrb[18].mxu0 %vm651_vm1, %v15096_v5  ;;  %v4096_v5 = vld [vmem:[#allocation2 + $0x750] sm:$0xff] }
 0x2d4   : > { %12121 = vmatprep.mubr.msk.f32.mxu0 %vm651_vm1, %v15098_v11  ;;  %v4099_v11 = vld [vmem:[#allocation2 + $0x768] sm:$0xff] }
 0x2d5   : > { %4187 = vmatmul.mubr.f32.gmra.mrb[184].mxu1 %v4094_v56 }
 0x2d6   : > { %4191 = vmatprep.mubr.f32.mxu1 %v4097_v62 }
 0x2d7   : > { %12122 = vmatmul.mubr.msk.f32.gmra.mrb[20].mxu0 %vm651_vm1, %v15100_v17  ;;  %v4098_v17 = vld [vmem:[#allocation2 + $0x760] sm:$0xff] }
 0x2d8   : > { %12124 = vmatprep.mubr.msk.f32.mxu0 %vm651_vm1, %v15102_v15  ;;  %v4101_v15 = vld [vmem:[#allocation2 + $0x778] sm:$0xff] }
 0x2d9   : > { %4192 = vmatmul.mubr.f32.gmra.mrb[186].mxu1 %v4096_v5 }
 0x2da   : > { %4196 = vmatprep.mubr.f32.mxu1 %v4099_v11 }
 0x2db   : > { %12125 = vmatmul.mubr.msk.f32.gmra.mrb[22].mxu0 %vm651_vm1, %v15104_v28  ;;  %v4100_v28 = vld [vmem:[#allocation2 + $0x770] sm:$0xff] }
 0x2dc   : > { %12129 = vmatprep.mubr.msk.f32.mxu0 %vm651_vm1, %v15106_v32  ;;  %v3031_v32 = vld [vmem:[#allocation2 + $0x508] sm:$0xff] }
 0x2dd   : > { %4197 = vmatmul.mubr.f32.gmra.mrb[188].mxu1 %v4098_v17 }
 0x2de   : > { %4201 = vmatprep.mubr.f32.mxu1 %v4101_v15 }
 0x2df   : > { %12130 = vmatmul.mubr.msk.f32.vlgmr.msra.gmra.mrb[16].mxu0 %vm651_vm1, %v15108_v41  ;;  %v10124_v41 = vld [vmem:[%s16659_s2 + $0x28] sm:$0x7] }
 0x2e0   : > { %13444 = vmatpush3.bf16.msra.mxu0 %v14718_v7  ;;  %12132 = vmatprep.mubr.msk.f32.mxu0 %vm651_vm1, %v15110_v50  ;;  %v3030_v50 = vld [vmem:[#allocation2 + $0x500] sm:$0xff] }
 0x2e1   : > { %13446 = vmatprep.subr.bf16.mxu0 %v14720_v8  ;;  %4202 = vmatmul.mubr.f32.gmra.mrb[190].mxu1 %v4100_v28 }
 0x2e3   : > { %12133 = vmatmul.mubr.msk.f32.gmra.mrb[18].mxu0 %vm651_vm1, %v15112_v59  ;;  %v3033_v59 = vld [vmem:[#allocation2 + $0x518] sm:$0xff] }
 0x2e4   : > { %13448 = vmatpush3.bf16.msra.mxu0 %v14729_v13  ;;  %12135 = vmatprep.mubr.msk.f32.mxu0 %vm651_vm1, %v15114_v10  ;;  %v3032_v10 = vld [vmem:[#allocation2 + $0x510] sm:$0xff] }
 0x2e5   : > { %13450 = vmatprep.subr.bf16.mxu0 %v14733_v14 }
 0x2e7   : > { %12136 = vmatmul.mubr.msk.f32.gmra.mrb[20].mxu0 %vm651_vm1, %v15118_v23  ;;  %v3035_v23 = vld [vmem:[#allocation2 + $0x528] sm:$0xff] }
 0x2e8   : > { %13452 = vmatpush3.bf16.msra.mxu0 %v14741_v19  ;;  %12138 = vmatprep.mubr.msk.f32.mxu0 %vm651_vm1, %v15122_v37  ;;  %v3034_v37 = vld [vmem:[#allocation2 + $0x520] sm:$0xff] }
 0x2e9   : > { %13454 = vmatprep.subr.bf16.mxu0 %v14745_v20 }
 0x2eb   : > { %12139 = vmatmul.mubr.msk.f32.gmra.mrb[22].mxu0 %vm651_vm1, %v15126_v61  ;;  %v3037_v61 = vld [vmem:[#allocation2 + $0x538] sm:$0xff] }
 0x2ec   : > { %13456 = vmatpush3.bf16.msra.mxu0 %v14753_v26  ;;  %3110 = vmatprep.mubr.f32.mxu0 %v3031_v32 }
 0x2ed   : > { %13458 = vmatprep.subr.bf16.mxu0 %v14757_v27 }
 0x2f0   : > { %13460 = vmatpush3.bf16.msra.mxu0 %v14765_v33 }
 0x2f1   : > { %13462 = vmatprep.subr.bf16.mxu0 %v14769_v34 }
 0x2f4   : > { %13464 = vmatpush3.bf16.msra.mxu0 %v14777_v39 }
 0x2f5   : > { %13466 = vmatprep.subr.bf16.mxu0 %v14781_v40 }
 0x2f8   : > { %13468 = vmatpush3.bf16.msra.mxu0 %v14789_v45 }
 0x2f9   : > { %13470 = vmatprep.subr.bf16.mxu0 %v14793_v46 }
 0x2fc   : > { %13472 = vmatpush3.bf16.msra.mxu0 %v14799_v49 }
 0x2fd   : > { %12141 = vmatprep.subr.msk.mxu0 %vm676_vm0, %v10124_v41 }
 0x2ff   : > { %3111 = vmatmul.mubr.f32.vlgmr.msra.gmra.mrb[40].mxu0 %v3030_v50  ;;  %v15308_v50 = vld [vmem:[%s16659_s2 + $0x2c] sm:$0x7] }
 0x300   : > { %3115 = vmatprep.mubr.f32.mxu0 %v3033_v59  ;;  %12142 = vmatpush3.msk.msra.mxu0 %vm676_vm0, %v10124_v41 }
 0x301   : > { %12155 = vmatprep.subr.msk.mxu0 %vm676_vm0, %v15308_v50 }
 0x303   : > { %3116 = vmatmul.mubr.f32.gmra.mrb[42].mxu0 %v3032_v10 }
 0x304   : > { %3120 = vmatprep.mubr.f32.mxu0 %v3035_v23 }
 0x307   : > { %3121 = vmatmul.mubr.f32.gmra.mrb[44].mxu0 %v3034_v37 }
 0x308   : > { %3125 = vmatprep.mubr.f32.mxu0 %v3037_v61 }
 0x30b   : > { %3126 = vmatmul.mubr.f32.gmra.mrb[46].mxu0 %v3036_v53 }
 0x30c   : > { %3130 = vmatprep.mubr.f32.mxu0 %v3039_v54 }
 0x30f   : > { %3131 = vmatmul.mubr.f32.gmra.mrb[48].mxu0 %v3038_v22 }
 0x310   : > { %3135 = vmatprep.mubr.f32.mxu0 %v3041_v0 }
 0x313   : > { %3136 = vmatmul.mubr.f32.gmra.mrb[50].mxu0 %v3040_v1  ;;  %v11260_v24 = vpop.f32.mrb[128].mxu1 }
 0x314   : > { %3140 = vmatprep.mubr.f32.mxu0 %v3043_v6  ;;  %v11261_v29 = vpop.f32.mrb[129].mxu1 }
 0x315   : > { %v15283_v31 = vadd.f32 %v11261_v29, %v11260_v24 }
 0x317   : > { %3141 = vmatmul.mubr.f32.gmra.mrb[52].mxu0 %v3042_v12 }
 0x318   : > { %3145 = vmatprep.mubr.f32.mxu0 %v3045_v57 }
 0x31b   : > { %3146 = vmatmul.mubr.f32.gmra.mrb[54].mxu0 %v3044_v18 }
 0x31f   : > { %v11263_v36 = vpop.f32.mrb[130].mxu1 }
 0x320   : > { %v11264_v47 = vpop.f32.mrb[131].mxu1 }
 0x321   : > { %v15285_v52 = vadd.f32 %v11264_v47, %v11263_v36 }
 0x327   : > { %v11266_v55 = vpop.f32.mrb[132].mxu1 }
 0x328   : > { %v11267_v58 = vpop.f32.mrb[133].mxu1 }
 0x329   : > { %v15287_v60 = vadd.f32 %v11267_v58, %v11266_v55 }
 0x333   : > { %v11269_v63 = vpop.f32.mrb[134].mxu1 }
 0x334   : > { %v11270_v4 = vpop.f32.mrb[135].mxu1 }
 0x335   : > { %v15289_v9 = vadd.f32 %v11270_v4, %v11269_v63 }
 0x338   : > { %v11272_v48 = vpop.f32.mrb[136].mxu1 }
 0x339   : > { %v11273_v16 = vpop.f32.mrb[137].mxu1 }
 0x33a   : > { %v15291_v2 = vadd.f32 %v11273_v16, %v11272_v48 }
 0x33c   : > { %v11275_v21 = vpop.f32.mrb[138].mxu1 }
 0x33d   : > { %v11276_v42 = vpop.f32.mrb[139].mxu1 }
 0x33e   : > { %v15293_v25 = vadd.f32 %v11276_v42, %v11275_v21 }
 0x340   : > { %v11278_v30 = vpop.f32.mrb[140].mxu1 }
 0x341   : > { %v11279_v44 = vpop.f32.mrb[141].mxu1 }
 0x342   : > { %v15295_v35 = vadd.f32 %v11279_v44, %v11278_v30 }
 0x344   : > { %v11281_v38 = vpop.f32.mrb[142].mxu1 }
 0x345   : > { %v11282_v43 = vpop.f32.mrb[143].mxu1 }
 0x346   : > { %v15297_v51 = vadd.f32 %v11282_v43, %v11281_v38 }
 0x348   : > { %v11325_v56 = vpop.f32.mrb[144].mxu1 }
 0x349   : > { %v11326_v62 = vpop.f32.mrb[145].mxu1 }
 0x34a   : > { %v15299_v5 = vadd.f32 %v11326_v62, %v11325_v56 }
 0x34c   : > { %v11328_v11 = vpop.f32.mrb[146].mxu1 }
 0x34d   : > { %v11329_v17 = vpop.f32.mrb[147].mxu1 }
 0x34e   : > { %v15301_v15 = vadd.f32 %v11329_v17, %v11328_v11 }
 0x350   : > { %v11331_v28 = vpop.f32.mrb[148].mxu1 }
 0x351   : > { %v11332_v32 = vpop.f32.mrb[149].mxu1 }
 0x352   : > { %v15303_v41 = vadd.f32 %v11332_v32, %v11331_v28 }
 0x354   : > { %v11334_v59 = vpop.f32.mrb[150].mxu1 }
 0x355   : > { %v11335_v10 = vpop.f32.mrb[151].mxu1 }
 0x356   : > { %v15312_v23 = vadd.f32 %v11335_v10, %v11334_v59 }
 0x363   : > { %v11337_v37 = vpop.f32.mrb[152].mxu1 }
 0x364   : > { %v11338_v61 = vpop.f32.mrb[153].mxu1 }
 0x365   : > { %v15314_v53 = vadd.f32 %v11338_v61, %v11337_v37 }
 0x367   : > { %v11340_v54 = vpop.f32.mrb[154].mxu1 }
 0x368   : > { %v11341_v22 = vpop.f32.mrb[155].mxu1 }
 0x369   : > { %v15316_v0 = vadd.f32 %v11341_v22, %v11340_v54 }
 0x36b   : > { %v11343_v1 = vpop.f32.mrb[156].mxu1 }
 0x36c   : > { %v11344_v6 = vpop.f32.mrb[157].mxu1 }
 0x36d   : > { %v15318_v12 = vadd.f32 %v11344_v6, %v11343_v1 }
 0x36f   : > { %v11346_v57 = vpop.f32.mrb[158].mxu1 }
 0x370   : > { %v11347_v18 = vpop.f32.mrb[159].mxu1 }
 0x371   : > { %v15320_v24 = vadd.f32 %v11347_v18, %v11346_v57 }
 0x373   : > { %v11390_v29 = vpop.f32.mrb[160].mxu1 }
 0x374   : > { %v11391_v36 = vpop.f32.mrb[161].mxu1 }
 0x375   : > { %v15322_v47 = vadd.f32 %v11391_v36, %v11390_v29 }
 0x377   : > { %v11393_v55 = vpop.f32.mrb[162].mxu1 }
 0x378   : > { %v11394_v58 = vpop.f32.mrb[163].mxu1 }
 0x379   : > { %v15324_v63 = vadd.f32 %v11394_v58, %v11393_v55 }
 0x37b   : > { %v11396_v4 = vpop.f32.mrb[164].mxu1 }
 0x37c   : > { %v11397_v48 = vpop.f32.mrb[165].mxu1 }
 0x37d   : > { %v15326_v16 = vadd.f32 %v11397_v48, %v11396_v4 }
 0x384   : > { %v11399_v21 = vpop.f32.mrb[166].mxu1 }
 0x385   : > { %v11400_v42 = vpop.f32.mrb[167].mxu1 }
 0x386   : > { %v15328_v30 = vadd.f32 %v11400_v42, %v11399_v21 }
 0x388   : > { %v11402_v44 = vpop.f32.mrb[168].mxu1 }
 0x389   : > { %v11403_v38 = vpop.f32.mrb[169].mxu1 }
 0x38a   : > { %v15330_v43 = vadd.f32 %v11403_v38, %v11402_v44 }
 0x38c   : > { %v11405_v56 = vpop.f32.mrb[170].mxu1 }
 0x38d   : > { %v11406_v62 = vpop.f32.mrb[171].mxu1 }
 0x38e   : > { %v15332_v11 = vadd.f32 %v11406_v62, %v11405_v56 }
 0x390   : > { %v11408_v17 = vpop.f32.mrb[172].mxu1 }
 0x391   : > { %v11409_v28 = vpop.f32.mrb[173].mxu1 }
 0x392   : > { %v15334_v32 = vadd.f32 %v11409_v28, %v11408_v17 }
 0x394   : > { %v11411_v59 = vpop.f32.mrb[174].mxu1 }
 0x395   : > { %v11412_v10 = vpop.f32.mrb[175].mxu1 }
 0x396   : > { %v15336_v37 = vadd.f32 %v11412_v10, %v11411_v59 }
 0x398   : > { %v11455_v61 = vpop.f32.mrb[176].mxu1 }
 0x399   : > { %v11456_v54 = vpop.f32.mrb[177].mxu1 }
 0x39a   : > { %v15338_v22 = vadd.f32 %v11456_v54, %v11455_v61 }
 0x39c   : > { %v11458_v1 = vpop.f32.mrb[178].mxu1 }
 0x39d   : > { %v11459_v6 = vpop.f32.mrb[179].mxu1 }
 0x39e   : > { %v15340_v57 = vadd.f32 %v11459_v6, %v11458_v1 }
 0x3a0   : > { %v11461_v18 = vpop.f32.mrb[180].mxu1 }
 0x3a1   : > { %v11462_v29 = vpop.f32.mrb[181].mxu1 }
 0x3a2   : > { %v15342_v36 = vadd.f32 %v11462_v29, %v11461_v18 }
 0x3a4   : > { %v11464_v55 = vpop.f32.mrb[182].mxu1 }
 0x3a5   : > { %v11465_v58 = vpop.f32.mrb[183].mxu1 }
 0x3a6   : > { %v15344_v4 = vadd.f32 %v11465_v58, %v11464_v55  ;;  %v10144_v58 = vld [vmem:[%s16659_s2 + $0x30] sm:$0x7] }
 0x3a8   : > { %v11467_v48 = vpop.f32.mrb[184].mxu1 }
 0x3a9   : > { %v11468_v21 = vpop.f32.mrb[185].mxu1 }
 0x3aa   : > { %v15346_v42 = vadd.f32 %v11468_v21, %v11467_v48 }
 0x3ac   : > { %v11470_v44 = vpop.f32.mrb[186].mxu1 }
 0x3ad   : > { %v11471_v38 = vpop.f32.mrb[187].mxu1 }
 0x3ae   : > { %v15348_v56 = vadd.f32 %v11471_v38, %v11470_v44 }
 0x3b0   : > { %v11473_v62 = vpop.f32.mrb[188].mxu1 }
 0x3b1   : > { %v11474_v17 = vpop.f32.mrb[189].mxu1 }
 0x3b2   : > { %v15350_v28 = vadd.f32 %v11474_v17, %v11473_v62 }
 0x3b4   : > { %v11476_v59 = vpop.f32.mrb[190].mxu1 }
 0x3b5   : > { %v11477_v10 = vpop.f32.mrb[191].mxu1 }
 0x3b6   : > { %v15352_v61 = vadd.f32 %v11477_v10, %v11476_v59 }
 0x3d2   : > { %v11195_v54 = vpop.f32.mrb[40].mxu0 }
 0x3d3   : > { %v11196_v1 = vpop.f32.mrb[41].mxu0 }
 0x3d4   : > { %v11197_v6 = vadd.f32 %v11196_v1, %v11195_v54 }
 0x3d6   : > { %v11198_v18 = vpop.f32.mrb[42].mxu0  ;;  %12143 = vmatprep.mubr.msk.f32.mxu0 %vm651_vm1, %v11197_v6 }
 0x3d7   : > { %v11199_v29 = vpop.f32.mrb[43].mxu0 }
 0x3d8   : > { %v11200_v55 = vadd.f32 %v11199_v29, %v11198_v18 }
 0x3da   : > { %v11201_v48 = vpop.f32.mrb[44].mxu0  ;;  %12144 = vmatmul.mubr.msk.f32.vlgmr.msra.gmra.mrb[16].mxu0 %vm651_vm1, %v11200_v55 }
 0x3db   : > { %v11202_v21 = vpop.f32.mrb[45].mxu0  ;;  %12156 = vmatpush3.msk.msra.mxu0 %vm676_vm0, %v15308_v50 }
 0x3dc   : > { %v11203_v44 = vadd.f32 %v11202_v21, %v11201_v48  ;;  %12169 = vmatprep.subr.msk.mxu0 %vm676_vm0, %v10144_v58 }
 0x3de   : > { %v11204_v38 = vpop.f32.mrb[46].mxu0  ;;  %12146 = vmatprep.mubr.msk.f32.mxu0 %vm651_vm1, %v11203_v44 }
 0x3df   : > { %v11205_v62 = vpop.f32.mrb[47].mxu0 }
 0x3e0   : > { %v11206_v17 = vadd.f32 %v11205_v62, %v11204_v38  ;;  %v10154_v38 = vld [vmem:[%s16659_s2 + $0x34] sm:$0x7] }
 0x3e2   : > { %v11207_v59 = vpop.f32.mrb[48].mxu0  ;;  %12147 = vmatmul.mubr.msk.f32.gmra.mrb[18].mxu0 %vm651_vm1, %v11206_v17 }
 0x3e3   : > { %v11208_v10 = vpop.f32.mrb[49].mxu0 }
 0x3e4   : > { %v11209_v54 = vadd.f32 %v11208_v10, %v11207_v59 }
 0x3e6   : > { %v11210_v1 = vpop.f32.mrb[50].mxu0  ;;  %12149 = vmatprep.mubr.msk.f32.mxu0 %vm651_vm1, %v11209_v54 }
 0x3e7   : > { %v11211_v6 = vpop.f32.mrb[51].mxu0 }
 0x3e8   : > { %v11212_v18 = vadd.f32 %v11211_v6, %v11210_v1 }
 0x3ea   : > { %v11213_v29 = vpop.f32.mrb[52].mxu0  ;;  %12150 = vmatmul.mubr.msk.f32.gmra.mrb[20].mxu0 %vm651_vm1, %v11212_v18 }
 0x3eb   : > { %v11214_v50 = vpop.f32.mrb[53].mxu0 }
 0x3ec   : > { %v11215_v55 = vadd.f32 %v11214_v50, %v11213_v29 }
 0x3ee   : > { %v11216_v48 = vpop.f32.mrb[54].mxu0  ;;  %12152 = vmatprep.mubr.msk.f32.mxu0 %vm651_vm1, %v11215_v55 }
 0x3ef   : > { %v11217_v21 = vpop.f32.mrb[55].mxu0 }
 0x3f0   : > { %v11218_v44 = vadd.f32 %v11217_v21, %v11216_v48 }
 0x3f2   : > { %12153 = vmatmul.mubr.msk.f32.gmra.mrb[22].mxu0 %vm651_vm1, %v11218_v44 }
 0x3f3   : > { %12157 = vmatprep.mubr.msk.f32.mxu0 %vm651_vm1, %v15283_v31  ;;  %v10164_v31 = vld [vmem:[%s16659_s2 + $0x38] sm:$0x7] }
 0x3f6   : > { %12158 = vmatmul.mubr.msk.f32.vlgmr.msra.gmra.mrb[16].mxu0 %vm651_vm1, %v15285_v52  ;;  %v4364_v52 = vld [vmem:[#allocation2 + $0x7f0] sm:$0xff] }
 0x3f7   : > { %12160 = vmatprep.mubr.msk.f32.mxu0 %vm651_vm1, %v15287_v60  ;;  %12170 = vmatpush3.msk.msra.mxu0 %vm676_vm0, %v10144_v58 }
 0x3f8   : > { %12183 = vmatprep.subr.msk.mxu0 %vm676_vm0, %v10154_v38 }
 0x3fa   : > { %12161 = vmatmul.mubr.msk.f32.gmra.mrb[18].mxu0 %vm651_vm1, %v15289_v9 }
 0x3fb   : > { %12163 = vmatprep.mubr.msk.f32.mxu0 %vm651_vm1, %v15291_v2 }
 0x3fe   : > { %12164 = vmatmul.mubr.msk.f32.gmra.mrb[20].mxu0 %vm651_vm1, %v15293_v25 }
 0x3ff   : > { %12166 = vmatprep.mubr.msk.f32.mxu0 %vm651_vm1, %v15295_v35 }
 0x402   : > { %12167 = vmatmul.mubr.msk.f32.gmra.mrb[22].mxu0 %vm651_vm1, %v15297_v51 }
 0x403   : > { %12171 = vmatprep.mubr.msk.f32.mxu0 %vm651_vm1, %v15299_v5 }
 0x406   : > { %12172 = vmatmul.mubr.msk.f32.vlgmr.msra.gmra.mrb[16].mxu0 %vm651_vm1, %v15301_v15 }
 0x407   : > { %12174 = vmatprep.mubr.msk.f32.mxu0 %vm651_vm1, %v15303_v41  ;;  %12184 = vmatpush3.msk.msra.mxu0 %vm676_vm0, %v10154_v38 }
 0x408   : > { %12197 = vmatprep.subr.msk.mxu0 %vm676_vm0, %v10164_v31 }
 0x40a   : > { %12175 = vmatmul.mubr.msk.f32.gmra.mrb[18].mxu0 %vm651_vm1, %v15312_v23 }
 0x40b   : > { %12177 = vmatprep.mubr.msk.f32.mxu0 %vm651_vm1, %v15314_v53 }
 0x40e   : > { %12178 = vmatmul.mubr.msk.f32.gmra.mrb[20].mxu0 %vm651_vm1, %v15316_v0 }
 0x40f   : > { %12180 = vmatprep.mubr.msk.f32.mxu0 %vm651_vm1, %v15318_v12 }
 0x412   : > { %12181 = vmatmul.mubr.msk.f32.gmra.mrb[22].mxu0 %vm651_vm1, %v15320_v24 }
 0x413   : > { %12185 = vmatprep.mubr.msk.f32.mxu0 %vm651_vm1, %v15322_v47 }
 0x416   : > { %12186 = vmatmul.mubr.msk.f32.vlgmr.msra.gmra.mrb[16].mxu0 %vm651_vm1, %v15324_v63 }
 0x417   : > { %12188 = vmatprep.mubr.msk.f32.mxu0 %vm651_vm1, %v15326_v16  ;;  %12198 = vmatpush3.msk.msra.mxu0 %vm676_vm0, %v10164_v31 }
 0x418   : > { %13602 = vmatprep.subr.bf16.mxu0 %v14713_v3  ;;  %v4351_v3 = vld [vmem:[#allocation2 + $0x788] sm:$0xff] }
 0x41a   : > { %12189 = vmatmul.mubr.msk.f32.gmra.mrb[18].mxu0 %vm651_vm1, %v15328_v30 }
 0x41b   : > { %12191 = vmatprep.mubr.msk.f32.mxu0 %vm651_vm1, %v15330_v43 }
 0x41e   : > { %12192 = vmatmul.mubr.msk.f32.gmra.mrb[20].mxu0 %vm651_vm1, %v15332_v11 }
 0x41f   : > { %12194 = vmatprep.mubr.msk.f32.mxu0 %vm651_vm1, %v15334_v32 }
 0x422   : > { %12195 = vmatmul.mubr.msk.f32.gmra.mrb[22].mxu0 %vm651_vm1, %v15336_v37 }
 0x423   : > { %12199 = vmatprep.mubr.msk.f32.mxu0 %vm651_vm1, %v15338_v22 }
 0x426   : > { %12200 = vmatmul.mubr.msk.f32.vlgmr.msra.gmra.mrb[16].mxu0 %vm651_vm1, %v15340_v57 }
 0x427   : > { %13604 = vmatpush3.bf16.msra.mxu0 %v14718_v7  ;;  %12202 = vmatprep.mubr.msk.f32.mxu0 %vm651_vm1, %v15342_v36  ;;  %v10174_v7 = vld [vmem:[%s16659_s2 + $0x3c] sm:$0x7]  ;;  %v4636_v36 = vld [vmem:[%s16661_s4] sm:$0xff] }
 0x428   : > { %13606 = vmatprep.subr.bf16.mxu0 %v14720_v8  ;;  %v4350_v8 = vld [vmem:[#allocation2 + $0x780] sm:$0xff]  ;;  %12241 = vmatprep.mubr.msk.f32.mxu1 %vm4638_vm2, %v4636_v36  ;;  %v4722_v36 = vld [vmem:[%s16662_s5 + $0x10] sm:$0xff] }
 0x42a   : > { %12203 = vmatmul.mubr.msk.f32.gmra.mrb[18].mxu0 %vm651_vm1, %v15344_v4  ;;  %v10199_v4 = vld [vmem:[%s16661_s4 + $0x20] sm:$0xff] }
 0x42b   : > { %13608 = vmatpush3.bf16.msra.mxu0 %v14729_v13  ;;  %12205 = vmatprep.mubr.msk.f32.mxu0 %vm651_vm1, %v15346_v42  ;;  %v4353_v13 = vld [vmem:[#allocation2 + $0x798] sm:$0xff]  ;;  %v10184_v42 = vld [vmem:[%s16660_s3] ss:$0 sm:$0xff] }
 0x42c   : > { %13610 = vmatprep.subr.bf16.mxu0 %v14733_v14  ;;  %v4352_v14 = vld [vmem:[#allocation2 + $0x790] sm:$0xff] }
 0x42e   : > { %12206 = vmatmul.mubr.msk.f32.gmra.mrb[20].mxu0 %vm651_vm1, %v15348_v56 }
 0x42f   : > { %13612 = vmatpush3.bf16.msra.mxu0 %v14741_v19  ;;  %12208 = vmatprep.mubr.msk.f32.mxu0 %vm651_vm1, %v15350_v28  ;;  %v4355_v19 = vld [vmem:[#allocation2 + $0x7a8] sm:$0xff] }
 0x430   : > { %13614 = vmatprep.subr.bf16.mxu0 %v14745_v20  ;;  %v4354_v20 = vld [vmem:[#allocation2 + $0x7a0] sm:$0xff] }
 0x432   : > { %12209 = vmatmul.mubr.msk.f32.gmra.mrb[22].mxu0 %vm651_vm1, %v15352_v61 }
 0x433   : > { %13616 = vmatpush3.bf16.msra.mxu0 %v14753_v26  ;;  %4430 = vmatprep.mubr.f32.mxu0 %v4351_v3  ;;  %v4357_v26 = vld [vmem:[#allocation2 + $0x7b8] sm:$0xff] }
 0x434   : > { %13618 = vmatprep.subr.bf16.mxu0 %v14757_v27  ;;  %v4356_v27 = vld [vmem:[#allocation2 + $0x7b0] sm:$0xff] }
 0x437   : > { %13620 = vmatpush3.bf16.msra.mxu0 %v14765_v33  ;;  %v4359_v33 = vld [vmem:[#allocation2 + $0x7c8] sm:$0xff] }
 0x438   : > { %13622 = vmatprep.subr.bf16.mxu0 %v14769_v34  ;;  %v4358_v34 = vld [vmem:[#allocation2 + $0x7c0] sm:$0xff] }
 0x43b   : > { %13624 = vmatpush3.bf16.msra.mxu0 %v14777_v39  ;;  %v4361_v39 = vld [vmem:[#allocation2 + $0x7d8] sm:$0xff] }
 0x43c   : > { %13626 = vmatprep.subr.bf16.mxu0 %v14781_v40  ;;  %v4360_v40 = vld [vmem:[#allocation2 + $0x7d0] sm:$0xff] }
 0x43f   : > { %13628 = vmatpush3.bf16.msra.mxu0 %v14789_v45  ;;  %v4363_v45 = vld [vmem:[#allocation2 + $0x7e8] sm:$0xff] }
 0x440   : > { %13630 = vmatprep.subr.bf16.mxu0 %v14793_v46  ;;  %v4362_v46 = vld [vmem:[#allocation2 + $0x7e0] sm:$0xff] }
 0x443   : > { %13632 = vmatpush3.bf16.msra.mxu0 %v14799_v49  ;;  %v4365_v49 = vld [vmem:[#allocation2 + $0x7f8] sm:$0xff] }
 0x444   : > { %12211 = vmatprep.subr.msk.mxu0 %vm676_vm0, %v10174_v7 }
 0x446   : > { %4431 = vmatmul.mubr.f32.vlgmr.msra.gmra.mrb[56].mxu0 %v4350_v8 }
 0x447   : > { %4435 = vmatprep.mubr.f32.mxu0 %v4353_v13  ;;  %12212 = vmatpush3.msk.msra.mxu0 %vm676_vm0, %v10174_v7 }
 0x44a   : > { %4436 = vmatmul.mubr.f32.gmra.mrb[58].mxu0 %v4352_v14 }
 0x44b   : > { %4440 = vmatprep.mubr.f32.mxu0 %v4355_v19 }
 0x44e   : > { %4441 = vmatmul.mubr.f32.gmra.mrb[60].mxu0 %v4354_v20 }
 0x44f   : > { %4445 = vmatprep.mubr.f32.mxu0 %v4357_v26 }
 0x452   : > { %4446 = vmatmul.mubr.f32.gmra.mrb[62].mxu0 %v4356_v27  ;;  %v4637_v27 = vld [vmem:[%s16661_s4 + $0x8] sm:$0xff] }
 0x453   : > { %4450 = vmatprep.mubr.f32.mxu0 %v4359_v33  ;;  %v10200_v33 = vld [vmem:[%s16661_s4 + $0x28] sm:$0xff] }
 0x456   : > { %4451 = vmatmul.mubr.f32.gmra.mrb[64].mxu0 %v4358_v34  ;;  %v10187_v34 = vld [vmem:[%s16661_s4 + $0x10] sm:$0xff] }
 0x457   : > { %4455 = vmatprep.mubr.f32.mxu0 %v4361_v39  ;;  %v10219_v39 = vld [vmem:[%s16661_s4 + $0x40] sm:$0xff] }
 0x45a   : > { %4456 = vmatmul.mubr.f32.gmra.mrb[66].mxu0 %v4360_v40  ;;  %v10188_v40 = vld [vmem:[%s16661_s4 + $0x18] sm:$0xff] }
 0x45b   : > { %4460 = vmatprep.mubr.f32.mxu0 %v4363_v45  ;;  %v10220_v45 = vld [vmem:[%s16661_s4 + $0x48] sm:$0xff] }
 0x45e   : > { %4461 = vmatmul.mubr.f32.gmra.mrb[68].mxu0 %v4362_v46  ;;  %v10229_v46 = vld [vmem:[%s16661_s4 + $0x50] sm:$0xff] }
 0x45f   : > { %4465 = vmatprep.mubr.f32.mxu0 %v4365_v49  ;;  %v10230_v49 = vld [vmem:[%s16661_s4 + $0x58] sm:$0xff] }
 0x462   : > { %4466 = vmatmul.mubr.f32.gmra.mrb[70].mxu0 %v4364_v52  ;;  %v10239_v52 = vld [vmem:[%s16661_s4 + $0x60] sm:$0xff] }
 0x519   : > { %v11520_v60 = vpop.f32.mrb[56].mxu0 }
 0x51a   : > { %v11521_v9 = vpop.f32.mrb[57].mxu0 }
 0x51b   : > { %v11522_v2 = vadd.f32 %v11521_v9, %v11520_v60  ;;  %v10240_v60 = vld [vmem:[%s16661_s4 + $0x68] sm:$0xff]  ;;  %v10259_v9 = vld [vmem:[%s16661_s4 + $0x80] sm:$0xff] }
 0x51d   : > { %v11523_v25 = vpop.f32.mrb[58].mxu0  ;;  %12213 = vmatprep.mubr.msk.f32.mxu0 %vm651_vm1, %v11522_v2  ;;  %v10260_v2 = vld [vmem:[%s16661_s4 + $0x88] sm:$0xff] }
 0x51e   : > { %v11524_v35 = vpop.f32.mrb[59].mxu0 }
 0x51f   : > { %v11525_v51 = vadd.f32 %v11524_v35, %v11523_v25  ;;  %v10269_v25 = vld [vmem:[%s16661_s4 + $0x90] sm:$0xff]  ;;  %v10270_v35 = vld [vmem:[%s16661_s4 + $0x98] sm:$0xff] }
 0x521   : > { %v11526_v5 = vpop.f32.mrb[60].mxu0  ;;  %12214 = vmatmul.mubr.msk.f32.vlgmr.msra.gmra.mrb[16].mxu0 %vm651_vm1, %v11525_v51  ;;  %v10279_v51 = vld [vmem:[%s16661_s4 + $0xa0] sm:$0xff] }
 0x522   : > { %v11527_v15 = vpop.f32.mrb[61].mxu0 }
 0x523   : > { %v11528_v41 = vadd.f32 %v11527_v15, %v11526_v5  ;;  %v10191_v5 = vld [vmem:[%s16662_s5 + $0x20] sm:$0xff]  ;;  %v10192_v15 = vld [vmem:[%s16662_s5 + $0x28] sm:$0xff] }
 0x525   : > { %v11529_v23 = vpop.f32.mrb[62].mxu0  ;;  %12216 = vmatprep.mubr.msk.f32.mxu0 %vm651_vm1, %v11528_v41  ;;  %v10193_v41 = vld [vmem:[%s16662_s5 + $0x30] sm:$0xff] }
 0x526   : > { %v11530_v53 = vpop.f32.mrb[63].mxu0 }
 0x527   : > { %v11531_v0 = vadd.f32 %v11530_v53, %v11529_v23  ;;  %v13665_v23 = vpack.c.bf16 %v10192_v15, %v10191_v5  ;;  %v10194_v53 = vld [vmem:[%s16662_s5 + $0x38] sm:$0xff]  ;;  %v10244_v5 = vld [vmem:[%s16662_s5 + $0xc8] sm:$0xff] }
 0x529   : > { %v11532_v12 = vpop.f32.mrb[64].mxu0  ;;  %12217 = vmatmul.mubr.msk.f32.gmra.mrb[18].mxu0 %vm651_vm1, %v11531_v0  ;;  %v13669_v0 = vpack.c.bf16 %v10194_v53, %v10193_v41  ;;  %v10245_v41 = vld [vmem:[%s16662_s5 + $0xd0] sm:$0xff] }
 0x52a   : > { %v11533_v24 = vpop.f32.mrb[65].mxu0 }
 0x52b   : > { %v11534_v47 = vadd.f32 %v11533_v24, %v11532_v12  ;;  %v10280_v12 = vld [vmem:[%s16661_s4 + $0xa8] sm:$0xff]  ;;  %v10299_v24 = vld [vmem:[%s16661_s4 + $0xc0] sm:$0xff] }
 0x52d   : > { %v11535_v63 = vpop.f32.mrb[66].mxu0  ;;  %12219 = vmatprep.mubr.msk.f32.mxu0 %vm651_vm1, %v11534_v47  ;;  %v4720_v47 = vld [vmem:[%s16662_s5] sm:$0xff] }
 0x52e   : > { %v11536_v16 = vpop.f32.mrb[67].mxu0 }
 0x52f   : > { %v11537_v30 = vadd.f32 %v11536_v16, %v11535_v63  ;;  %v4721_v63 = vld [vmem:[%s16662_s5 + $0x8] sm:$0xff] }
 0x530   : > { %v13673_v16 = vpack.c.bf16 %v4721_v63, %v4720_v47  ;;  %v10255_v63 = vld [vmem:[%s16662_s5 + $0xf0] sm:$0xff] }
 0x531   : > { %v11538_v43 = vpop.f32.mrb[68].mxu0  ;;  %12220 = vmatmul.mubr.msk.f32.gmra.mrb[20].mxu0 %vm651_vm1, %v11537_v30  ;;  %v10300_v30 = vld [vmem:[%s16661_s4 + $0xc8] sm:$0xff] }
 0x532   : > { %v11539_v11 = vpop.f32.mrb[69].mxu0 }
 0x533   : > { %v11540_v32 = vadd.f32 %v11539_v11, %v11538_v43  ;;  %v10309_v43 = vld [vmem:[%s16661_s4 + $0xd0] sm:$0xff]  ;;  %v10310_v11 = vld [vmem:[%s16661_s4 + $0xd8] sm:$0xff] }
 0x535   : > { %v11541_v37 = vpop.f32.mrb[70].mxu0  ;;  %12222 = vmatprep.mubr.msk.f32.mxu0 %vm651_vm1, %v11540_v32 }
 0x536   : > { %v11542_v22 = vpop.f32.mrb[71].mxu0 }
 0x537   : > { %v11543_v57 = vadd.f32 %v11542_v22, %v11541_v37 }
 0x539   : > { %12223 = vmatmul.mubr.msk.f32.gmra.mrb[22].mxu0 %vm651_vm1, %v11543_v57 }
 0x53a   : > { %12301 = vmatprep.mubr.msk.f32.mxu0 %vm4638_vm2, %v10199_v4  ;;  %v4723_v4 = vld [vmem:[%s16662_s5 + $0x18] sm:$0xff] }
 0x5f4   : > { %v12215_v56 = vpop.f32.mrb[16].mxu0 }
 0x5f5   : > { %v4621_v28 = vadd.f32 %v12215_v56, %v10184_v42  ;;  %v4566_v61 = vpop.f32.mrb[17].mxu0 }
 0x5f6   : > { %v4620_v58 = vadd.f32 %v10184_v42, %v4566_v61  ;;  %v13677_v61 = vpack.c.bf16 %v4723_v4, %v4722_v36 }
 0x5f7   : > { %v4629_v62 = vmax.f32 %v4621_v28, 0.0 }
 0x5f8   : > { %v4628_v17 = vmax.f32 %v4620_v58, 0.0 }
 0x5fa   : > { %v15483_v59 = vpack.c.bf16 %v4629_v62, %v4628_v17  ;;  %v10203_v62 = vld [vmem:[%s16662_s5 + $0x40] sm:$0xff]  ;;  %v10204_v17 = vld [vmem:[%s16662_s5 + $0x48] sm:$0xff] }
 0x5fc   : > { %v12218_v10 = vpop.f32.mrb[18].mxu0  ;;  %13634 = vmatprep.subr.bf16.mxu1 %v15483_v59  ;;  %13682 = vmatprep.subr.bf16.mxu0 %v15483_v59 }
 0x5fd   : > { %v4623_v54 = vadd.f32 %v12218_v10, %v10184_v42  ;;  %v4576_v1 = vpop.f32.mrb[19].mxu0  ;;  %13636 = vmatpush3.bf16.msra.mxu1 %v15483_v59  ;;  %13684 = vmatpush3.bf16.msra.mxu0 %v15483_v59  ;;  %v13697_v10 = vpack.c.bf16 %v10204_v17, %v10203_v62  ;;  %v10266_v62 = vld [vmem:[%s16662_s5 + $0x118] sm:$0xff] }
 0x5fe   : > { %v4622_v6 = vadd.f32 %v10184_v42, %v4576_v1  ;;  %v10206_v1 = vld [vmem:[%s16662_s5 + $0x58] sm:$0xff] }
 0x5ff   : > { %v4631_v18 = vmax.f32 %v4623_v54, 0.0  ;;  %v10205_v54 = vld [vmem:[%s16662_s5 + $0x50] sm:$0xff] }
 0x600   : > { %v4630_v29 = vmax.f32 %v4622_v6, 0.0  ;;  %v13701_v6 = vpack.c.bf16 %v10206_v1, %v10205_v54  ;;  %v10273_v1 = vld [vmem:[%s16662_s5 + $0x120] sm:$0xff] }
 0x602   : > { %v15489_v50 = vpack.c.bf16 %v4631_v18, %v4630_v29  ;;  %v10209_v18 = vld [vmem:[%s16661_s4 + $0x30] sm:$0xff]  ;;  %v10213_v29 = vld [vmem:[%s16662_s5 + $0x60] sm:$0xff] }
 0x604   : > { %v12221_v55 = vpop.f32.mrb[20].mxu0  ;;  %13638 = vmatprep.subr.bf16.mxu1 %v15489_v50  ;;  %13686 = vmatprep.subr.bf16.mxu0 %v15489_v50 }
 0x605   : > { %v4625_v48 = vadd.f32 %v12221_v55, %v10184_v42  ;;  %v4586_v21 = vpop.f32.mrb[21].mxu0  ;;  %13640 = vmatpush3.bf16.msra.mxu1 %v15489_v50  ;;  %13688 = vmatpush3.bf16.msra.mxu0 %v15489_v50  ;;  %v10214_v55 = vld [vmem:[%s16662_s5 + $0x68] sm:$0xff] }
 0x606   : > { %v4624_v44 = vadd.f32 %v10184_v42, %v4586_v21  ;;  %v10215_v21 = vld [vmem:[%s16662_s5 + $0x70] sm:$0xff] }
 0x607   : > { %v4633_v38 = vmax.f32 %v4625_v48, 0.0  ;;  %v13721_v48 = vpack.c.bf16 %v10214_v55, %v10213_v29  ;;  %v10275_v29 = vld [vmem:[%s16662_s5 + $0x130] sm:$0xff]  ;;  %v10276_v55 = vld [vmem:[%s16662_s5 + $0x138] sm:$0xff] }
 0x608   : > { %v4632_v31 = vmax.f32 %v4624_v44, 0.0  ;;  %v10216_v44 = vld [vmem:[%s16662_s5 + $0x78] sm:$0xff] }
 0x60a   : > { %v15495_v3 = vpack.c.bf16 %v4633_v38, %v4632_v31  ;;  %v10210_v38 = vld [vmem:[%s16661_s4 + $0x38] sm:$0xff]  ;;  %v13725_v31 = vpack.c.bf16 %v10216_v44, %v10215_v21  ;;  %v10283_v21 = vld [vmem:[%s16662_s5 + $0x140] sm:$0xff]  ;;  %v10284_v44 = vld [vmem:[%s16662_s5 + $0x148] sm:$0xff] }
 0x60c   : > { %v12224_v7 = vpop.f32.mrb[22].mxu0  ;;  %13642 = vmatprep.subr.bf16.mxu1 %v15495_v3  ;;  %13690 = vmatprep.subr.bf16.mxu0 %v15495_v3 }
 0x60d   : > { %v4627_v8 = vadd.f32 %v12224_v7, %v10184_v42  ;;  %v4596_v13 = vpop.f32.mrb[23].mxu0  ;;  %13644 = vmatpush3.bf16.msra.mxu1 %v15495_v3  ;;  %13692 = vmatpush3.bf16.msra.mxu0 %v15495_v3  ;;  %v10223_v7 = vld [vmem:[%s16662_s5 + $0x80] sm:$0xff] }
 0x60e   : > { %v4626_v14 = vadd.f32 %v10184_v42, %v4596_v13 }
 0x60f   : > { %v4635_v19 = vmax.f32 %v4627_v8, 0.0  ;;  %v10224_v8 = vld [vmem:[%s16662_s5 + $0x88] sm:$0xff] }
 0x610   : > { %v4634_v20 = vmax.f32 %v4626_v14, 0.0  ;;  %v13745_v13 = vpack.c.bf16 %v10224_v8, %v10223_v7  ;;  %v10286_v7 = vld [vmem:[%s16662_s5 + $0x158] sm:$0xff] }
 0x612   : > { %v15501_v26 = vpack.c.bf16 %v4635_v19, %v4634_v20 }
 0x614   : > { %13646 = vmatprep.subr.bf16.mxu1 %v15501_v26  ;;  %13694 = vmatprep.subr.bf16.mxu0 %v15501_v26 }
 0x615   : > { %13648 = vmatpush3.bf16.msra.mxu1 %v15501_v26  ;;  %13696 = vmatpush3.bf16.msra.mxu0 %v15501_v26 }
 0x616   : > { %13650 = vmatprep.subr.bf16.mxu1 %v15483_v59  ;;  %13730 = vmatprep.subr.bf16.mxu0 %v15483_v59 }
 0x618   : > { %12242 = vmatmul.mubr.msk.f32.vlgmr.msra.gmra.mrb[192].mxu1 %vm4638_vm2, %v4637_v27  ;;  %12302 = vmatmul.mubr.msk.f32.vlgmr.msra.gmra.mrb[72].mxu0 %vm4638_vm2, %v10200_v33 }
 0x619   : > { %13652 = vmatpush3.bf16.msra.mxu1 %v15483_v59  ;;  %13732 = vmatpush3.bf16.msra.mxu0 %v15483_v59 }
 0x61a   : > { %13654 = vmatprep.subr.bf16.mxu1 %v15489_v50  ;;  %13734 = vmatprep.subr.bf16.mxu0 %v15489_v50 }
 0x61b   : > { %12260 = vmatprep.mubr.msk.f32.mxu1 %vm4638_vm2, %v10187_v34  ;;  %12361 = vmatprep.mubr.msk.f32.mxu0 %vm4638_vm2, %v10219_v39  ;;  %v10225_v39 = vld [vmem:[%s16662_s5 + $0x90] sm:$0xff] }
 0x61d   : > { %13656 = vmatpush3.bf16.msra.mxu1 %v15489_v50  ;;  %13736 = vmatpush3.bf16.msra.mxu0 %v15489_v50 }
 0x61e   : > { %13658 = vmatprep.subr.bf16.mxu1 %v15495_v3  ;;  %13738 = vmatprep.subr.bf16.mxu0 %v15495_v3 }
 0x621   : > { %13660 = vmatpush3.bf16.msra.mxu1 %v15495_v3  ;;  %13740 = vmatpush3.bf16.msra.mxu0 %v15495_v3 }
 0x622   : > { %13662 = vmatprep.subr.bf16.mxu1 %v15501_v26  ;;  %13742 = vmatprep.subr.bf16.mxu0 %v15501_v26 }
 0x625   : > { %13664 = vmatpush3.bf16.msra.mxu1 %v15501_v26  ;;  %13744 = vmatpush3.bf16.msra.mxu0 %v15501_v26 }
 0x626   : > { %13754 = vmatprep.subr.bf16.mxu0 %v15483_v59  ;;  %13666 = vmatprep.subr.bf16.mxu1 %v13665_v23 }
 0x628   : > { %12261 = vmatmul.mubr.msk.f32.vlgmr.msra.gmra.mrb[194].mxu1 %vm4638_vm2, %v10188_v40  ;;  %12362 = vmatmul.mubr.msk.f32.vlgmr.msra.gmra.mrb[74].mxu0 %vm4638_vm2, %v10220_v45  ;;  %v10226_v40 = vld [vmem:[%s16662_s5 + $0x98] sm:$0xff] }
 0x629   : > { %13756 = vmatpush3.bf16.msra.mxu0 %v15483_v59  ;;  %12391 = vmatprep.mubr.msk.f32.mxu0 %vm4638_vm2, %v10229_v46 }
 0x62a   : > { %13758 = vmatprep.subr.bf16.mxu0 %v15489_v50  ;;  %13668 = vmatpush3.bf16.msra.mxu1 %v13665_v23  ;;  %v10246_v23 = vld [vmem:[%s16662_s5 + $0xd8] sm:$0xff] }
 0x62b   : > { %13670 = vmatprep.subr.bf16.mxu1 %v13669_v0  ;;  %v13797_v53 = vpack.c.bf16 %v10246_v23, %v10245_v41  ;;  %v10314_v41 = vld [vmem:[%s16662_s5 + $0x1a8] sm:$0xff] }
 0x62d   : > { %13760 = vmatpush3.bf16.msra.mxu0 %v15489_v50 }
 0x62e   : > { %13762 = vmatprep.subr.bf16.mxu0 %v15495_v3  ;;  %13672 = vmatpush3.bf16.msra.mxu1 %v13669_v0  ;;  %v10249_v0 = vld [vmem:[%s16661_s4 + $0x70] sm:$0xff] }
 0x62f   : > { %13674 = vmatprep.subr.bf16.mxu1 %v13673_v16 }
 0x631   : > { %13764 = vmatpush3.bf16.msra.mxu0 %v15495_v3 }
 0x632   : > { %13766 = vmatprep.subr.bf16.mxu0 %v15501_v26 }
 0x635   : > { %13768 = vmatpush3.bf16.msra.mxu0 %v15501_v26 }
 0x636   : > { %13778 = vmatprep.subr.bf16.mxu0 %v15483_v59 }
 0x638   : > { %12392 = vmatmul.mubr.msk.f32.vlgmr.msra.gmra.mrb[76].mxu0 %vm4638_vm2, %v10230_v49  ;;  %v13749_v49 = vpack.c.bf16 %v10226_v40, %v10225_v39  ;;  %v10303_v40 = vld [vmem:[%s16662_s5 + $0x180] sm:$0xff] }
 0x639   : > { %13780 = vmatpush3.bf16.msra.mxu0 %v15483_v59  ;;  %12421 = vmatprep.mubr.msk.f32.mxu0 %vm4638_vm2, %v10239_v52  ;;  %v10233_v52 = vld [vmem:[%s16662_s5 + $0xa0] sm:$0xff] }
 0x63a   : > { %13782 = vmatprep.subr.bf16.mxu0 %v15489_v50 }
 0x63d   : > { %13784 = vmatpush3.bf16.msra.mxu0 %v15489_v50 }
 0x63e   : > { %13786 = vmatprep.subr.bf16.mxu0 %v15495_v3 }
 0x641   : > { %13788 = vmatpush3.bf16.msra.mxu0 %v15495_v3 }
 0x642   : > { %13790 = vmatprep.subr.bf16.mxu0 %v15501_v26 }
 0x645   : > { %13792 = vmatpush3.bf16.msra.mxu0 %v15501_v26 }
 0x646   : > { %13826 = vmatprep.subr.bf16.mxu0 %v15483_v59 }
 0x648   : > { %12422 = vmatmul.mubr.msk.f32.vlgmr.msra.gmra.mrb[78].mxu0 %vm4638_vm2, %v10240_v60  ;;  %v10234_v60 = vld [vmem:[%s16662_s5 + $0xa8] sm:$0xff] }
 0x649   : > { %13828 = vmatpush3.bf16.msra.mxu0 %v15483_v59  ;;  %12481 = vmatprep.mubr.msk.f32.mxu0 %vm4638_vm2, %v10259_v9  ;;  %v13769_v9 = vpack.c.bf16 %v10234_v60, %v10233_v52 }
 0x64a   : > { %13830 = vmatprep.subr.bf16.mxu0 %v15489_v50 }
 0x64d   : > { %13832 = vmatpush3.bf16.msra.mxu0 %v15489_v50 }
 0x64e   : > { %13834 = vmatprep.subr.bf16.mxu0 %v15495_v3 }
 0x651   : > { %13836 = vmatpush3.bf16.msra.mxu0 %v15495_v3 }
 0x652   : > { %13838 = vmatprep.subr.bf16.mxu0 %v15501_v26 }
 0x655   : > { %13840 = vmatpush3.bf16.msra.mxu0 %v15501_v26 }
 0x656   : > { %13850 = vmatprep.subr.bf16.mxu0 %v15483_v59 }
 0x658   : > { %12482 = vmatmul.mubr.msk.f32.vlgmr.msra.gmra.mrb[80].mxu0 %vm4638_vm2, %v10260_v2  ;;  %v10235_v2 = vld [vmem:[%s16662_s5 + $0xb0] sm:$0xff] }
 0x659   : > { %13852 = vmatpush3.bf16.msra.mxu0 %v15483_v59  ;;  %12511 = vmatprep.mubr.msk.f32.mxu0 %vm4638_vm2, %v10269_v25  ;;  %v10236_v25 = vld [vmem:[%s16662_s5 + $0xb8] sm:$0xff] }
 0x65a   : > { %13854 = vmatprep.subr.bf16.mxu0 %v15489_v50 }
 0x65d   : > { %13856 = vmatpush3.bf16.msra.mxu0 %v15489_v50 }
 0x65e   : > { %13858 = vmatprep.subr.bf16.mxu0 %v15495_v3 }
 0x661   : > { %13860 = vmatpush3.bf16.msra.mxu0 %v15495_v3 }
 0x662   : > { %13862 = vmatprep.subr.bf16.mxu0 %v15501_v26 }
 0x665   : > { %13864 = vmatpush3.bf16.msra.mxu0 %v15501_v26 }
 0x666   : > { %13874 = vmatprep.subr.bf16.mxu0 %v15483_v59 }
 0x668   : > { %12512 = vmatmul.mubr.msk.f32.vlgmr.msra.gmra.mrb[82].mxu0 %vm4638_vm2, %v10270_v35  ;;  %v13773_v35 = vpack.c.bf16 %v10236_v25, %v10235_v2  ;;  %v10305_v2 = vld [vmem:[%s16662_s5 + $0x190] sm:$0xff]  ;;  %v10306_v25 = vld [vmem:[%s16662_s5 + $0x198] sm:$0xff] }
 0x669   : > { %13876 = vmatpush3.bf16.msra.mxu0 %v15483_v59  ;;  %12541 = vmatprep.mubr.msk.f32.mxu0 %vm4638_vm2, %v10279_v51  ;;  %v10243_v51 = vld [vmem:[%s16662_s5 + $0xc0] sm:$0xff] }
 0x66a   : > { %13878 = vmatprep.subr.bf16.mxu0 %v15489_v50  ;;  %v13793_v15 = vpack.c.bf16 %v10244_v5, %v10243_v51  ;;  %v13941_v5 = vpack.c.bf16 %v10306_v25, %v10305_v2  ;;  %v10355_v25 = vld [vmem:[%s16665_s8 + $0x80] sm:$0xff] }
 0x66d   : > { %13880 = vmatpush3.bf16.msra.mxu0 %v15489_v50 }
 0x66e   : > { %13882 = vmatprep.subr.bf16.mxu0 %v15495_v3 }
 0x671   : > { %13884 = vmatpush3.bf16.msra.mxu0 %v15495_v3 }
 0x672   : > { %13886 = vmatprep.subr.bf16.mxu0 %v15501_v26 }
 0x675   : > { %13888 = vmatpush3.bf16.msra.mxu0 %v15501_v26 }
 0x676   : > { %13922 = vmatprep.subr.bf16.mxu0 %v15483_v59 }
 0x678   : > { %12542 = vmatmul.mubr.msk.f32.vlgmr.msra.gmra.mrb[84].mxu0 %vm4638_vm2, %v10280_v12  ;;  %v10253_v12 = vld [vmem:[%s16662_s5 + $0xe0] sm:$0xff] }
 0x679   : > { %13924 = vmatpush3.bf16.msra.mxu0 %v15483_v59  ;;  %12601 = vmatprep.mubr.msk.f32.mxu0 %vm4638_vm2, %v10299_v24  ;;  %v10254_v24 = vld [vmem:[%s16662_s5 + $0xe8] sm:$0xff] }
 0x67a   : > { %13926 = vmatprep.subr.bf16.mxu0 %v15489_v50  ;;  %v13817_v47 = vpack.c.bf16 %v10254_v24, %v10253_v12  ;;  %v10323_v24 = vld [vmem:[%s16662_s5 + $0x1c0] sm:$0xff] }
 0x67d   : > { %13928 = vmatpush3.bf16.msra.mxu0 %v15489_v50 }
 0x67e   : > { %13930 = vmatprep.subr.bf16.mxu0 %v15495_v3 }
 0x681   : > { %13932 = vmatpush3.bf16.msra.mxu0 %v15495_v3 }
 0x682   : > { %13934 = vmatprep.subr.bf16.mxu0 %v15501_v26 }
 0x685   : > { %13936 = vmatpush3.bf16.msra.mxu0 %v15501_v26 }
 0x686   : > { %13946 = vmatprep.subr.bf16.mxu0 %v15483_v59 }
 0x688   : > { %12602 = vmatmul.mubr.msk.f32.vlgmr.msra.gmra.mrb[86].mxu0 %vm4638_vm2, %v10300_v30  ;;  %v10250_v30 = vld [vmem:[%s16661_s4 + $0x78] sm:$0xff] }
 0x689   : > { %13948 = vmatpush3.bf16.msra.mxu0 %v15483_v59  ;;  %12631 = vmatprep.mubr.msk.f32.mxu0 %vm4638_vm2, %v10309_v43 }
 0x68a   : > { %13950 = vmatprep.subr.bf16.mxu0 %v15489_v50 }
 0x68d   : > { %13952 = vmatpush3.bf16.msra.mxu0 %v15489_v50 }
 0x68e   : > { %13954 = vmatprep.subr.bf16.mxu0 %v15495_v3 }
 0x691   : > { %13956 = vmatpush3.bf16.msra.mxu0 %v15495_v3 }
 0x692   : > { %13958 = vmatprep.subr.bf16.mxu0 %v15501_v26 }
 0x695   : > { %13960 = vmatpush3.bf16.msra.mxu0 %v15501_v26 }
 0x696   : > { %13970 = vmatprep.subr.bf16.mxu0 %v15483_v59 }
 0x698   : > { %12632 = vmatmul.mubr.msk.f32.vlgmr.msra.gmra.mrb[88].mxu0 %vm4638_vm2, %v10310_v11  ;;  %v10263_v11 = vld [vmem:[%s16662_s5 + $0x100] sm:$0xff] }
 0x699   : > { %13972 = vmatpush3.bf16.msra.mxu0 %v15483_v59 }
 0x69a   : > { %13974 = vmatprep.subr.bf16.mxu0 %v15489_v50 }
 0x69d   : > { %13976 = vmatpush3.bf16.msra.mxu0 %v15489_v50 }
 0x69e   : > { %13978 = vmatprep.subr.bf16.mxu0 %v15495_v3 }
 0x6a1   : > { %13980 = vmatpush3.bf16.msra.mxu0 %v15495_v3 }
 0x6a2   : > { %13982 = vmatprep.subr.bf16.mxu0 %v15501_v26 }
 0x6a5   : > { %13984 = vmatpush3.bf16.msra.mxu0 %v15501_v26 }
 0x6eb   : > { %v12243_v32 = vpop.f32.mrb[192].mxu1  ;;  %v12303_v37 = vpop.f32.mrb[72].mxu0 }
 0x6ec   : > { %v4711_v22 = vpop.f32.mrb[193].mxu1  ;;  %v5051_v57 = vpop.f32.mrb[73].mxu0 }
 0x6fb   : > { %v12262_v42 = vpop.f32.mrb[194].mxu1  ;;  %v15691_v56 = vpop.f32.mrb[74].mxu0 }
 0x6fc   : > { %v4799_v28 = vpop.f32.mrb[195].mxu1  ;;  %v5395_v58 = vpop.f32.mrb[75].mxu0 }
 0x6fd   : > { %12271 = vmatprep.mubr.msk.f32.mxu1 %vm4813_vm3, %v4799_v28 }
 0x6fe   : > { %12272 = vmatmul.mubr.msk.f32.vlgmr.msra.gmra.mrb[196].mxu1 %vm4813_vm3, %v12262_v42  ;;  %v10319_v42 = vld [vmem:[%s16661_s4 + $0xe0] sm:$0xff] }
 0x6ff   : > { %13676 = vmatpush3.bf16.msra.mxu1 %v13673_v16  ;;  %12282 = vmatprep.mubr.msk.f32.mxu1 %vm4813_vm3, %v4711_v22  ;;  %v10256_v16 = vld [vmem:[%s16662_s5 + $0xf8] sm:$0xff] }
 0x700   : > { %13678 = vmatprep.subr.bf16.mxu1 %v13677_v61  ;;  %v13821_v43 = vpack.c.bf16 %v10256_v16, %v10255_v63  ;;  %12661 = vmatprep.mubr.msk.f32.mxu0 %vm4638_vm2, %v10319_v42  ;;  %v10325_v16 = vld [vmem:[%s16662_s5 + $0x1d0] sm:$0xff]  ;;  %v14561_v42 = vmov 0.0|0.0  }
 0x701   : > { %14017 = vmatprep.subr.bf16.mxu0 %v14561_v42 }
 0x703   : > { %13680 = vmatpush3.bf16.msra.mxu1 %v13677_v61 }
 0x704   : > { %13698 = vmatprep.subr.bf16.mxu1 %v13697_v10 }
 0x706   : > { %12283 = vmatmul.mubr.msk.f32.vlgmr.msra.gmra.mrb[196].mxu1 %vm4813_vm3, %v12243_v32  ;;  %v10264_v32 = vld [vmem:[%s16662_s5 + $0x108] sm:$0xff] }
 0x707   : > { %13700 = vmatpush3.bf16.msra.mxu1 %v13697_v10  ;;  %12312 = vmatprep.mubr.msk.f32.mxu1 %vm4813_vm3, %v5051_v57 }
 0x708   : > { %13702 = vmatprep.subr.bf16.mxu1 %v13701_v6 }
 0x70b   : > { %13704 = vmatpush3.bf16.msra.mxu1 %v13701_v6  ;;  %v12393_v14 = vpop.f32.mrb[76].mxu0  ;;  %v10274_v6 = vld [vmem:[%s16662_s5 + $0x128] sm:$0xff] }
 0x70c   : > { %13706 = vmatprep.subr.bf16.mxu1 %v15483_v59  ;;  %v5567_v19 = vpop.f32.mrb[77].mxu0 }
 0x70e   : > { %12313 = vmatmul.mubr.msk.f32.vlgmr.msra.gmra.mrb[196].mxu1 %vm4813_vm3, %v12303_v37  ;;  %v13841_v37 = vpack.c.bf16 %v10264_v32, %v10263_v11  ;;  %v10329_v11 = vld [vmem:[%s16661_s4 + $0xf0] sm:$0xff]  ;;  %v10333_v32 = vld [vmem:[%s16662_s5 + $0x1e0] sm:$0xff] }
 0x70f   : > { %13708 = vmatpush3.bf16.msra.mxu1 %v15483_v59  ;;  %12331 = vmatprep.mubr.msk.f32.mxu1 %vm4638_vm2, %v10209_v18  ;;  %v13865_v18 = vpack.c.bf16 %v10274_v6, %v10273_v1  ;;  %v7476_v6 = vld [vmem:[%s16665_s8 + $0x30] sm:$0xff] }
 0x710   : > { %13710 = vmatprep.subr.bf16.mxu1 %v15489_v50 }
 0x713   : > { %13712 = vmatpush3.bf16.msra.mxu1 %v15489_v50 }
 0x714   : > { %13714 = vmatprep.subr.bf16.mxu1 %v15495_v3 }
 0x717   : > { %13716 = vmatpush3.bf16.msra.mxu1 %v15495_v3 }
 0x718   : > { %13718 = vmatprep.subr.bf16.mxu1 %v15501_v26 }
 0x71b   : > { %13720 = vmatpush3.bf16.msra.mxu1 %v15501_v26  ;;  %v12423_v20 = vpop.f32.mrb[78].mxu0 }
 0x71c   : > { %13722 = vmatprep.subr.bf16.mxu1 %v13721_v48  ;;  %v5739_v27 = vpop.f32.mrb[79].mxu0 }
 0x71e   : > { %12332 = vmatmul.mubr.msk.f32.vlgmr.msra.gmra.mrb[198].mxu1 %vm4638_vm2, %v10210_v38  ;;  %v13889_v38 = vpack.c.bf16 %v10284_v44, %v10283_v21 }
 0x71f   : > { %13724 = vmatpush3.bf16.msra.mxu1 %v13721_v48  ;;  %v13869_v48 = vpack.c.bf16 %v10276_v55, %v10275_v29  ;;  %v10339_v55 = vld [vmem:[%s16663_s6] ss:$0 sm:$0xff] }
 0x720   : > { %13726 = vmatprep.subr.bf16.mxu1 %v13725_v31 }
 0x723   : > { %13728 = vmatpush3.bf16.msra.mxu1 %v13725_v31  ;;  %v10285_v31 = vld [vmem:[%s16662_s5 + $0x150] sm:$0xff] }
 0x724   : > { %13746 = vmatprep.subr.bf16.mxu1 %v13745_v13  ;;  %v13893_v8 = vpack.c.bf16 %v10286_v7, %v10285_v31 }
 0x72b   : > { %v15745_v33 = vpop.f32.mrb[80].mxu0 }
 0x72c   : > { %v15747_v34 = vpop.f32.mrb[81].mxu0 }
 0x73b   : > { %v12513_v22 = vpop.f32.mrb[82].mxu0 }
 0x73c   : > { %v6255_v57 = vpop.f32.mrb[83].mxu0 }
 0x74b   : > { %v12543_v36 = vpop.f32.mrb[84].mxu0 }
 0x74c   : > { %v6427_v4 = vpop.f32.mrb[85].mxu0 }
 0x75b   : > { %v15829_v28 = vpop.f32.mrb[86].mxu0 }
 0x75c   : > { %v15832_v61 = vpop.f32.mrb[87].mxu0 }
 0x7f1   : > { %v12333_v45 = vpop.f32.mrb[198].mxu1 }
 0x7f2   : > { %v5223_v46 = vpop.f32.mrb[199].mxu1 }
 0x7f3   : > { %12342 = vmatprep.mubr.msk.f32.mxu1 %vm4813_vm3, %v5223_v46 }
 0x7f4   : > { %12343 = vmatmul.mubr.msk.f32.vlgmr.msra.gmra.mrb[196].mxu1 %vm4813_vm3, %v12333_v45  ;;  %v10304_v45 = vld [vmem:[%s16662_s5 + $0x188] sm:$0xff] }
 0x7f5   : > { %13748 = vmatpush3.bf16.msra.mxu1 %v13745_v13  ;;  %12372 = vmatprep.mubr.msk.f32.mxu1 %vm4813_vm3, %v5395_v58  ;;  %v10265_v58 = vld [vmem:[%s16662_s5 + $0x110] sm:$0xff]  ;;  %v13937_v46 = vpack.c.bf16 %v10304_v45, %v10303_v40  ;;  %v10347_v40 = vld [vmem:[%s16665_s8 + $0x60] sm:$0xff]  ;;  %v10348_v45 = vld [vmem:[%s16665_s8 + $0x68] sm:$0xff] }
 0x7f6   : > { %13750 = vmatprep.subr.bf16.mxu1 %v13749_v49  ;;  %v13845_v54 = vpack.c.bf16 %v10266_v62, %v10265_v58  ;;  %v10289_v13 = vld [vmem:[%s16661_s4 + $0xb0] sm:$0xff]  ;;  %v7473_v62 = vld [vmem:[%s16665_s8 + $0x18] sm:$0xff] }
 0x7f7   : > { %v7472_v58 = vld [vmem:[%s16665_s8 + $0x10] sm:$0xff] }
 0x7f9   : > { %13752 = vmatpush3.bf16.msra.mxu1 %v13749_v49  ;;  %v12633_v49 = vpop.f32.mrb[88].mxu0 }
 0x7fa   : > { %13770 = vmatprep.subr.bf16.mxu1 %v13769_v9  ;;  %v6943_v52 = vpop.f32.mrb[89].mxu0 }
 0x7fc   : > { %12373 = vmatmul.mubr.msk.f32.vlgmr.msra.gmra.mrb[196].mxu1 %vm4813_vm3, %v15691_v56  ;;  %v10320_v56 = vld [vmem:[%s16661_s4 + $0xe8] sm:$0xff] }
 0x7fd   : > { %13772 = vmatpush3.bf16.msra.mxu1 %v13769_v9  ;;  %12402 = vmatprep.mubr.msk.f32.mxu1 %vm4813_vm3, %v5567_v19  ;;  %v10294_v19 = vld [vmem:[%s16662_s5 + $0x168] sm:$0xff] }
 0x7fe   : > { %13774 = vmatprep.subr.bf16.mxu1 %v13773_v35  ;;  %12662 = vmatmul.mubr.msk.f32.vlgmr.msra.gmra.mrb[90].mxu0 %vm4638_vm2, %v10320_v56  ;;  %v7470_v56 = vld [vmem:[%s16665_s8] sm:$0xff] }
 0x801   : > { %13776 = vmatpush3.bf16.msra.mxu1 %v13773_v35 }
 0x802   : > { %13794 = vmatprep.subr.bf16.mxu1 %v13793_v15 }
 0x804   : > { %12403 = vmatmul.mubr.msk.f32.vlgmr.msra.gmra.mrb[196].mxu1 %vm4813_vm3, %v12393_v14  ;;  %v10293_v14 = vld [vmem:[%s16662_s5 + $0x160] sm:$0xff] }
 0x805   : > { %13796 = vmatpush3.bf16.msra.mxu1 %v13793_v15  ;;  %12432 = vmatprep.mubr.msk.f32.mxu1 %vm4813_vm3, %v5739_v27  ;;  %v10295_v27 = vld [vmem:[%s16662_s5 + $0x170] sm:$0xff]  ;;  %v10313_v15 = vld [vmem:[%s16662_s5 + $0x1a0] sm:$0xff] }
 0x806   : > { %13798 = vmatprep.subr.bf16.mxu1 %v13797_v53  ;;  %v13961_v23 = vpack.c.bf16 %v10314_v41, %v10313_v15  ;;  %v10353_v15 = vld [vmem:[%s16664_s7 + $0x8] sm:$0xf] }
 0x809   : > { %13800 = vmatpush3.bf16.msra.mxu1 %v13797_v53  ;;  %v10315_v53 = vld [vmem:[%s16662_s5 + $0x1b0] sm:$0xff] }
 0x80a   : > { %13802 = vmatprep.subr.bf16.mxu1 %v15483_v59 }
 0x80c   : > { %12433 = vmatmul.mubr.msk.f32.vlgmr.msra.gmra.mrb[196].mxu1 %vm4813_vm3, %v12423_v20  ;;  %v13913_v20 = vpack.c.bf16 %v10294_v19, %v10293_v14  ;;  %v10343_v14 = vld [vmem:[%s16665_s8 + $0x40] sm:$0xff]  ;;  %v10344_v19 = vld [vmem:[%s16665_s8 + $0x48] sm:$0xff] }
 0x80d   : > { %13804 = vmatpush3.bf16.msra.mxu1 %v15483_v59  ;;  %12451 = vmatprep.mubr.msk.f32.mxu1 %vm4638_vm2, %v10249_v0  ;;  %v10316_v0 = vld [vmem:[%s16662_s5 + $0x1b8] sm:$0xff] }
 0x80e   : > { %13806 = vmatprep.subr.bf16.mxu1 %v15489_v50  ;;  %v13965_v12 = vpack.c.bf16 %v10316_v0, %v10315_v53  ;;  %v10358_v53 = vld [vmem:[%s16665_s8 + $0x98] sm:$0xff] }
 0x811   : > { %13808 = vmatpush3.bf16.msra.mxu1 %v15489_v50 }
 0x812   : > { %13810 = vmatprep.subr.bf16.mxu1 %v15495_v3 }
 0x815   : > { %13812 = vmatpush3.bf16.msra.mxu1 %v15495_v3 }
 0x816   : > { %13814 = vmatprep.subr.bf16.mxu1 %v15501_v26 }
 0x819   : > { %13816 = vmatpush3.bf16.msra.mxu1 %v15501_v26 }
 0x81a   : > { %13818 = vmatprep.subr.bf16.mxu1 %v13817_v47 }
 0x81c   : > { %12452 = vmatmul.mubr.msk.f32.vlgmr.msra.gmra.mrb[200].mxu1 %vm4638_vm2, %v10250_v30  ;;  %v10326_v30 = vld [vmem:[%s16662_s5 + $0x1d8] sm:$0xff] }
 0x81d   : > { %13820 = vmatpush3.bf16.msra.mxu1 %v13817_v47  ;;  %v10324_v47 = vld [vmem:[%s16662_s5 + $0x1c8] sm:$0xff] }
 0x81e   : > { %13822 = vmatprep.subr.bf16.mxu1 %v13821_v43  ;;  %v13985_v63 = vpack.c.bf16 %v10324_v47, %v10323_v24  ;;  %v10360_v24 = vld [vmem:[%s16665_s8 + $0xa8] sm:$0xff] }
 0x821   : > { %13824 = vmatpush3.bf16.msra.mxu1 %v13821_v43  ;;  %v13989_v43 = vpack.c.bf16 %v10326_v30, %v10325_v16  ;;  %v10362_v16 = vld [vmem:[%s16665_s8 + $0xb8] sm:$0xff] }
 0x822   : > { %13842 = vmatprep.subr.bf16.mxu1 %v13841_v37 }
 0x8d1   : > { %v12663_v60 = vpop.f32.mrb[90].mxu0 }
 0x8d2   : > { %v7115_v9 = vpop.f32.mrb[91].mxu0 }
 0x8ef   : > { %v12453_v17 = vpop.f32.mrb[200].mxu1 }
 0x8f0   : > { %v5911_v10 = vpop.f32.mrb[201].mxu1 }
 0x8f1   : > { %12462 = vmatprep.mubr.msk.f32.mxu1 %vm4813_vm3, %v5911_v10  ;;  %v7474_v10 = vld [vmem:[%s16665_s8 + $0x20] sm:$0xff] }
 0x8f2   : > { %12463 = vmatmul.mubr.msk.f32.vlgmr.msra.gmra.mrb[196].mxu1 %vm4813_vm3, %v12453_v17  ;;  %v14039_v17 = vpack.c.bf16 %v7473_v62, %v7472_v58 }
 0x8f3   : > { %13844 = vmatpush3.bf16.msra.mxu1 %v13841_v37  ;;  %12492 = vmatprep.mubr.msk.f32.mxu1 %vm4813_vm3, %v15747_v34  ;;  %v10290_v34 = vld [vmem:[%s16661_s4 + $0xb8] sm:$0xff]  ;;  %v10334_v37 = vld [vmem:[%s16662_s5 + $0x1e8] sm:$0xff] }
 0x8f4   : > { %13846 = vmatprep.subr.bf16.mxu1 %v13845_v54 }
 0x8f7   : > { %13848 = vmatpush3.bf16.msra.mxu1 %v13845_v54  ;;  %v7475_v54 = vld [vmem:[%s16665_s8 + $0x28] sm:$0xff] }
 0x8f8   : > { %13866 = vmatprep.subr.bf16.mxu1 %v13865_v18  ;;  %v14042_v1 = vpack.c.bf16 %v7475_v54, %v7474_v10  ;;  %v10377_v10 = vld [vmem:[%s16665_s8 + $0x100] sm:$0xff]  ;;  %v10378_v54 = vld [vmem:[%s16665_s8 + $0x108] sm:$0xff] }
 0x8fa   : > { %12493 = vmatmul.mubr.msk.f32.vlgmr.msra.gmra.mrb[196].mxu1 %vm4813_vm3, %v15745_v33  ;;  %v10296_v33 = vld [vmem:[%s16662_s5 + $0x178] sm:$0xff] }
 0x8fb   : > { %13868 = vmatpush3.bf16.msra.mxu1 %v13865_v18  ;;  %12522 = vmatprep.mubr.msk.f32.mxu1 %vm4813_vm3, %v6255_v57  ;;  %v13917_v39 = vpack.c.bf16 %v10296_v33, %v10295_v27  ;;  %v10330_v57 = vld [vmem:[%s16661_s4 + $0xf8] sm:$0xff]  ;;  %v14024_v27 = vpack.c.bf16 %v10344_v19, %v10343_v14  ;;  %v10345_v33 = vld [vmem:[%s16665_s8 + $0x50] sm:$0xff] }
 0x8fc   : > { %13870 = vmatprep.subr.bf16.mxu1 %v13869_v48  ;;  %v7477_v18 = vld [vmem:[%s16665_s8 + $0x38] sm:$0xff] }
 0x8fd   : > { %v14045_v29 = vpack.c.bf16 %v7477_v18, %v7476_v6  ;;  %v14081_v6 = vpack.c.bf16 %v10378_v54, %v10377_v10  ;;  %v10379_v18 = vld [vmem:[%s16665_s8 + $0x110] sm:$0xff]  ;;  %v10384_v14 = vld [vmem:[%s16665_s8 + $0x138] sm:$0xff]  ;;  %v10421_v10 = vld [vmem:[%s16665_s8 + $0x200] sm:$0xff] }
 0x8fe   : > { %v10422_v54 = vld [vmem:[%s16665_s8 + $0x208] sm:$0xff] }
 0x8ff   : > { %13872 = vmatpush3.bf16.msra.mxu1 %v13869_v48 }
 0x900   : > { %13890 = vmatprep.subr.bf16.mxu1 %v13889_v38 }
 0x902   : > { %12523 = vmatmul.mubr.msk.f32.vlgmr.msra.gmra.mrb[196].mxu1 %vm4813_vm3, %v12513_v22  ;;  %v10335_v22 = vld [vmem:[%s16662_s5 + $0x1f0] sm:$0xff] }
 0x903   : > { %13892 = vmatpush3.bf16.msra.mxu1 %v13889_v38  ;;  %12552 = vmatprep.mubr.msk.f32.mxu1 %vm4813_vm3, %v6427_v4 }
 0x904   : > { %13894 = vmatprep.subr.bf16.mxu1 %v13893_v8 }
 0x907   : > { %13896 = vmatpush3.bf16.msra.mxu1 %v13893_v8 }
 0x908   : > { %13898 = vmatprep.subr.bf16.mxu1 %v15483_v59 }
 0x90a   : > { %12553 = vmatmul.mubr.msk.f32.vlgmr.msra.gmra.mrb[196].mxu1 %vm4813_vm3, %v12543_v36 }
 0x90b   : > { %13900 = vmatpush3.bf16.msra.mxu1 %v15483_v59  ;;  %12571 = vmatprep.mubr.msk.f32.mxu1 %vm4638_vm2, %v10289_v13  ;;  %v7395_v13 = vld [vmem:[%s16664_s7] sm:$0xf] }
 0x90c   : > { %13902 = vmatprep.subr.bf16.mxu1 %v15489_v50 }
 0x90f   : > { %13904 = vmatpush3.bf16.msra.mxu1 %v15489_v50 }
 0x910   : > { %13906 = vmatprep.subr.bf16.mxu1 %v15495_v3 }
 0x913   : > { %13908 = vmatpush3.bf16.msra.mxu1 %v15495_v3 }
 0x914   : > { %13910 = vmatprep.subr.bf16.mxu1 %v15501_v26 }
 0x917   : > { %13912 = vmatpush3.bf16.msra.mxu1 %v15501_v26 }
 0x918   : > { %13914 = vmatprep.subr.bf16.mxu1 %v13913_v20 }
 0x91a   : > { %12572 = vmatmul.mubr.msk.f32.vlgmr.msra.gmra.mrb[202].mxu1 %vm4638_vm2, %v10290_v34  ;;  %v10346_v34 = vld [vmem:[%s16665_s8 + $0x58] sm:$0xff] }
 0x91b   : > { %13916 = vmatpush3.bf16.msra.mxu1 %v13913_v20  ;;  %v10341_v20 = vld [vmem:[%s16664_s7 + $0x4] sm:$0xf] }
 0x91c   : > { %13918 = vmatprep.subr.bf16.mxu1 %v13917_v39 }
 0x91f   : > { %13920 = vmatpush3.bf16.msra.mxu1 %v13917_v39  ;;  %v14027_v39 = vpack.c.bf16 %v10346_v34, %v10345_v33 }
 0x920   : > { %13938 = vmatprep.subr.bf16.mxu1 %v13937_v46 }
 0x9ed   : > { %v12573_v35 = vpop.f32.mrb[202].mxu1 }
 0x9ee   : > { %v6599_v51 = vpop.f32.mrb[203].mxu1 }
 0x9ef   : > { %12582 = vmatprep.mubr.msk.f32.mxu1 %vm4813_vm3, %v6599_v51 }
 0x9f0   : > { %12583 = vmatmul.mubr.msk.f32.vlgmr.msra.gmra.mrb[196].mxu1 %vm4813_vm3, %v12573_v35  ;;  %v10356_v35 = vld [vmem:[%s16665_s8 + $0x88] sm:$0xff] }
 0x9f1   : > { %13940 = vmatpush3.bf16.msra.mxu1 %v13937_v46  ;;  %12612 = vmatprep.mubr.msk.f32.mxu1 %vm4813_vm3, %v15832_v61  ;;  %v14030_v46 = vpack.c.bf16 %v10348_v45, %v10347_v40  ;;  %v14051_v41 = vpack.c.bf16 %v10356_v35, %v10355_v25  ;;  %v10389_v40 = vld [vmem:[%s16665_s8 + $0x148] sm:$0xff]  ;;  %v10391_v25 = vld [vmem:[%s16665_s8 + $0x158] sm:$0xff] }
 0x9f2   : > { %13942 = vmatprep.subr.bf16.mxu1 %v13941_v5 }
 0x9f5   : > { %13944 = vmatpush3.bf16.msra.mxu1 %v13941_v5 }
 0x9f6   : > { %13962 = vmatprep.subr.bf16.mxu1 %v13961_v23 }
 0x9f8   : > { %12613 = vmatmul.mubr.msk.f32.vlgmr.msra.gmra.mrb[196].mxu1 %vm4813_vm3, %v15829_v28  ;;  %v7471_v28 = vld [vmem:[%s16665_s8 + $0x8] sm:$0xff] }
 0x9f9   : > { %13964 = vmatpush3.bf16.msra.mxu1 %v13961_v23  ;;  %12642 = vmatprep.mubr.msk.f32.mxu1 %vm4813_vm3, %v6943_v52  ;;  %v14036_v61 = vpack.c.bf16 %v7471_v28, %v7470_v56  ;;  %v10350_v52 = vld [vmem:[%s16665_s8 + $0x78] sm:$0xff]  ;;  %v10357_v23 = vld [vmem:[%s16665_s8 + $0x90] sm:$0xff] }
 0x9fa   : > { %13966 = vmatprep.subr.bf16.mxu1 %v13965_v12  ;;  %v14054_v0 = vpack.c.bf16 %v10358_v53, %v10357_v23  ;;  %v10402_v23 = vld [vmem:[%s16665_s8 + $0x198] sm:$0xff]  ;;  %v10392_v53 = vld [vmem:[%s16665_s8 + $0x160] sm:$0xff] }
 0x9fd   : > { %13968 = vmatpush3.bf16.msra.mxu1 %v13965_v12  ;;  %v10359_v12 = vld [vmem:[%s16665_s8 + $0xa0] sm:$0xff] }
 0x9fe   : > { %13986 = vmatprep.subr.bf16.mxu1 %v13985_v63  ;;  %v14057_v47 = vpack.c.bf16 %v10360_v24, %v10359_v12 }
 0xa00   : > { %12643 = vmatmul.mubr.msk.f32.vlgmr.msra.gmra.mrb[196].mxu1 %vm4813_vm3, %v12633_v49  ;;  %v10349_v49 = vld [vmem:[%s16665_s8 + $0x70] sm:$0xff] }
 0xa01   : > { %13988 = vmatpush3.bf16.msra.mxu1 %v13985_v63  ;;  %12672 = vmatprep.mubr.msk.f32.mxu1 %vm4813_vm3, %v7115_v9  ;;  %v10361_v63 = vld [vmem:[%s16665_s8 + $0xb0] sm:$0xff] }
 0xa02   : > { %13990 = vmatprep.subr.bf16.mxu1 %v13989_v43  ;;  %v14060_v30 = vpack.c.bf16 %v10362_v16, %v10361_v63  ;;  %v10395_v63 = vld [vmem:[%s16665_s8 + $0x178] sm:$0xff]  ;;  %v10403_v16 = vld [vmem:[%s16665_s8 + $0x1a0] sm:$0xff] }
 0xa05   : > { %13992 = vmatpush3.bf16.msra.mxu1 %v13989_v43  ;;  %v10366_v43 = vld [vmem:[%s16665_s8 + $0xc0] sm:$0xff] }
 0xa06   : > { %13994 = vmatprep.subr.bf16.mxu1 %v15483_v59 }
 0xa08   : > { %12673 = vmatmul.mubr.msk.f32.vlgmr.msra.gmra.mrb[196].mxu1 %vm4813_vm3, %v12663_v60  ;;  %v14033_v60 = vpack.c.bf16 %v10350_v52, %v10349_v49  ;;  %v10399_v52 = vld [vmem:[%s16665_s8 + $0x180] sm:$0xff] }
 0xa09   : > { %13996 = vmatpush3.bf16.msra.mxu1 %v15483_v59  ;;  %12691 = vmatprep.mubr.msk.f32.mxu1 %vm4638_vm2, %v10329_v11  ;;  %v14009_v59 = vpack.c.bf16 %v10334_v37, %v10333_v32  ;;  %v10367_v11 = vld [vmem:[%s16665_s8 + $0xc8] sm:$0xff]  ;;  %v10368_v32 = vld [vmem:[%s16665_s8 + $0xd0] sm:$0xff] }
 0xa0a   : > { %13998 = vmatprep.subr.bf16.mxu1 %v15489_v50  ;;  %v14066_v37 = vpack.c.bf16 %v10367_v11, %v10366_v43  ;;  %v10404_v43 = vld [vmem:[%s16665_s8 + $0x1a8] sm:$0xff] }
 0xa0b   : > { %v14117_v11 = vpack.c.bf16 %v10404_v43, %v10403_v16  ;;  %v10441_v16 = vld [vmem:[%s16664_s7 + $0x28] sm:$0xf] }
 0xa0d   : > { %14000 = vmatpush3.bf16.msra.mxu1 %v15489_v50  ;;  %v10336_v50 = vld [vmem:[%s16662_s5 + $0x1f8] sm:$0xff] }
 0xa0e   : > { %14002 = vmatprep.subr.bf16.mxu1 %v15495_v3  ;;  %v14013_v36 = vpack.c.bf16 %v10336_v50, %v10335_v22  ;;  %v10370_v50 = vld [vmem:[%s16665_s8 + $0xe0] sm:$0xff] }
 0xa11   : > { %14004 = vmatpush3.bf16.msra.mxu1 %v15495_v3 }
 0xa12   : > { %14006 = vmatprep.subr.bf16.mxu1 %v15501_v26 }
 0xa15   : > { %14008 = vmatpush3.bf16.msra.mxu1 %v15501_v26  ;;  %v14563_v26 = vmov 0.0  }
 0xa16   : > { %14010 = vmatprep.subr.bf16.mxu1 %v14009_v59  ;;  %12709 = vmatprep.mubr.msk.f32.mxu0 %vm14562_vm4, %v14563_v26 }
 0xa18   : > { %12692 = vmatmul.mubr.msk.f32.vlgmr.msra.gmra.mrb[204].mxu1 %vm4638_vm2, %v10330_v57  ;;  %v10371_v57 = vld [vmem:[%s16665_s8 + $0xe8] sm:$0xff] }
 0xa19   : > { %14012 = vmatpush3.bf16.msra.mxu1 %v14009_v59  ;;  %v10369_v59 = vld [vmem:[%s16665_s8 + $0xd8] sm:$0xff] }
 0xa1a   : > { %14014 = vmatprep.subr.bf16.mxu1 %v14013_v36  ;;  %v14069_v22 = vpack.c.bf16 %v10369_v59, %v10368_v32  ;;  %v10405_v32 = vld [vmem:[%s16665_s8 + $0x1b0] sm:$0xff] }
 0xa1d   : > { %14016 = vmatpush3.bf16.msra.mxu1 %v14013_v36  ;;  %v14072_v36 = vpack.c.bf16 %v10371_v57, %v10370_v50 }
 0xa1e   : > { %14035 = vmatprep.subr.bf16.mxu1 %v14561_v42 }
 0xaeb   : > { %v12693_v3 = vpop.f32.mrb[204].mxu1 }
 0xaec   : > { %v7287_v4 = vpop.f32.mrb[205].mxu1 }
 0xaed   : > { %12702 = vmatprep.mubr.msk.f32.mxu1 %vm4813_vm3, %v7287_v4 }
 0xaee   : > { %12703 = vmatmul.mubr.msk.f32.vlgmr.msra.gmra.mrb[196].mxu1 %vm4813_vm3, %v12693_v3 }
 0xaef   : > { %12754 = vmatprep.mubr.msk.f32.mxu1 %vm14562_vm4, %v14563_v26  ;;  %14037 = vmatpush3.bf16.msra.mxu1 %v14036_v61 }
 0xaf0   : > { %14038 = vmatprep.subr.bf16.mxu1 %v14561_v42 }
 0xaf3   : > { %14040 = vmatpush3.bf16.msra.mxu1 %v14039_v17  ;;  %v10364_v17 = vld [vmem:[%s16664_s7 + $0xc] sm:$0xf] }
 0xaf4   : > { %14041 = vmatprep.subr.bf16.mxu1 %v14561_v42 }
 0xaf7   : > { %14043 = vmatpush3.bf16.msra.mxu1 %v14042_v1  ;;  %v10375_v1 = vld [vmem:[%s16664_s7 + $0x10] sm:$0xf] }
 0xaf8   : > { %14044 = vmatprep.subr.bf16.mxu1 %v14561_v42 }
 0xafb   : > { %14046 = vmatpush3.bf16.msra.mxu1 %v14045_v29  ;;  %v10380_v29 = vld [vmem:[%s16665_s8 + $0x118] sm:$0xff] }
 0xafc   : > { %14065 = vmatprep.subr.bf16.mxu1 %v14561_v42 }
 0xbc1   : > { %v12704_v48 = vpop.f32.mrb[196].mxu1 }
 0xbc2   : > { %v7392_v21 = vadd.f32 %v12704_v48, %v10339_v55  ;;  %v7373_v44 = vpop.f32.mrb[197].mxu1  ;;  %v10372_v48 = vld [vmem:[%s16665_s8 + $0xf0] sm:$0xff] }
 0xbc3   : > { %v7391_v38 = vadd.f32 %v10339_v55, %v7373_v44  ;;  %v14084_v55 = vpack.c.bf16 %v10380_v29, %v10379_v18  ;;  %v10381_v44 = vld [vmem:[%s16665_s8 + $0x120] sm:$0xff]  ;;  %v10413_v18 = vld [vmem:[%s16665_s8 + $0x1d8] sm:$0xff] }
 0xbc4   : > { %v7394_v31 = vmax.f32 %v7392_v21, 0.0  ;;  %v10373_v21 = vld [vmem:[%s16665_s8 + $0xf8] sm:$0xff] }
 0xbc5   : > { %v7393_v7 = vmax.f32 %v7391_v38, 0.0  ;;  %v14075_v38 = vpack.c.bf16 %v10373_v21, %v10372_v48  ;;  %v14141_v48 = vpack.c.bf16 %v10422_v54, %v10421_v10 }
 0xbc7   : > { %v16015_v8 = vpack.c.bf16 %v7394_v31, %v7393_v7  ;;  %v10382_v31 = vld [vmem:[%s16665_s8 + $0x128] sm:$0xff] }
 0xbc8   : > { %v14087_v7 = vpack.c.bf16 %v10382_v31, %v10381_v44  ;;  %v10423_v44 = vld [vmem:[%s16665_s8 + $0x210] sm:$0xff]  ;;  %v10414_v31 = vld [vmem:[%s16665_s8 + $0x1e0] sm:$0xff] }
 0xbc9   : > { %14019 = vmatpush3.bf16.msra.mxu0 %v16015_v8 }
 0xbca   : > { %14020 = vmatprep.subr.bf16.mxu0 %v14561_v42 }
 0xbcc   : > { %12710 = vmatmul.mubr.msk.f32.vlgmr.msra.gmra.mrb[92].mxu0 %vm7396_vm5, %v7395_v13  ;;  %v10383_v13 = vld [vmem:[%s16665_s8 + $0x130] sm:$0xff] }
 0xbcd   : > { %14022 = vmatpush3.bf16.msra.mxu0 %v16015_v8  ;;  %12716 = vmatprep.mubr.msk.f32.mxu0 %vm14562_vm4, %v14563_v26  ;;  %v14090_v19 = vpack.c.bf16 %v10384_v14, %v10383_v13 }
 0xbce   : > { %14023 = vmatprep.subr.bf16.mxu0 %v14561_v42 }
 0xbd0   : > { %12717 = vmatmul.mubr.msk.f32.vlgmr.msra.gmra.mrb[94].mxu0 %vm7396_vm5, %v10341_v20 }
 0xbd1   : > { %14025 = vmatpush3.bf16.msra.mxu0 %v14024_v27  ;;  %12735 = vmatprep.mubr.msk.f32.mxu0 %vm14562_vm4, %v14563_v26 }
 0xbd2   : > { %14026 = vmatprep.subr.bf16.mxu0 %v14561_v42 }
 0xbd5   : > { %14028 = vmatpush3.bf16.msra.mxu0 %v14027_v39  ;;  %v10388_v39 = vld [vmem:[%s16665_s8 + $0x140] sm:$0xff] }
 0xbd6   : > { %14029 = vmatprep.subr.bf16.mxu0 %v14561_v42  ;;  %v14096_v49 = vpack.c.bf16 %v10389_v40, %v10388_v39  ;;  %v10427_v40 = vld [vmem:[%s16665_s8 + $0x230] sm:$0xff] }
 0xbd9   : > { %14031 = vmatpush3.bf16.msra.mxu0 %v14030_v46  ;;  %v10386_v46 = vld [vmem:[%s16664_s7 + $0x14] sm:$0xf] }
 0xbda   : > { %14032 = vmatprep.subr.bf16.mxu0 %v14561_v42 }
 0xbdd   : > { %14034 = vmatpush3.bf16.msra.mxu0 %v14033_v60  ;;  %v10400_v60 = vld [vmem:[%s16665_s8 + $0x188] sm:$0xff] }
 0xbde   : > { %14047 = vmatprep.subr.bf16.mxu0 %v14561_v42 }
 0xc9f   : > { %v7466_v9 = vpop.f32.mrb[92].mxu0 }
 0xca0   : > { %v12711_v2 = vpop.f32.mrb[93].mxu0  ;;  %12755 = vmatmul.mubr.msk.f32.vlgmr.msra.gmra.mrb[206].mxu1 %vm4638_vm2, %v7466_v9 }
 0xca1   : > { %12806 = vmatprep.mubr.msk.f32.mxu1 %vm14562_vm4, %v14563_v26  ;;  %14067 = vmatpush3.bf16.msra.mxu1 %v14066_v37  ;;  %v10390_v2 = vld [vmem:[%s16665_s8 + $0x150] sm:$0xff]  ;;  %v10406_v37 = vld [vmem:[%s16665_s8 + $0x1b8] sm:$0xff] }
 0xca2   : > { %14068 = vmatprep.subr.bf16.mxu1 %v14561_v42  ;;  %v14120_v59 = vpack.c.bf16 %v10406_v37, %v10405_v32  ;;  %v10446_v32 = vld [vmem:[%s16665_s8 + $0x298] sm:$0xff]  ;;  %v10436_v37 = vld [vmem:[%s16665_s8 + $0x260] sm:$0xff] }
 0xca3   : > { %v7549_v51 = vpop.f32.mrb[94].mxu0 }
 0xca4   : > { %12736 = vmatmul.mubr.msk.f32.vlgmr.msra.gmra.mrb[96].mxu0 %vm4638_vm2, %v7549_v51  ;;  %v12718_v5 = vpop.f32.mrb[95].mxu0  ;;  %v10397_v51 = vld [vmem:[%s16664_s7 + $0x18] sm:$0xf] }
 0xca5   : > { %14049 = vmatpush3.bf16.msra.mxu0 %v16015_v8  ;;  %12761 = vmatprep.mubr.msk.f32.mxu0 %vm14562_vm4, %v14563_v26  ;;  %v14111_v5 = vpack.c.bf16 %v10400_v60, %v10399_v52 }
 0xca6   : > { %14050 = vmatprep.subr.bf16.mxu0 %v14561_v42  ;;  %14070 = vmatpush3.bf16.msra.mxu1 %v14069_v22 }
 0xca7   : > { %14071 = vmatprep.subr.bf16.mxu1 %v14561_v42 }
 0xca8   : > { %12762 = vmatmul.mubr.msk.f32.vlgmr.msra.gmra.mrb[98].mxu0 %vm7396_vm5, %v10353_v15  ;;  %v14099_v15 = vpack.c.bf16 %v10391_v25, %v10390_v2  ;;  %v10432_v25 = vld [vmem:[%s16665_s8 + $0x240] sm:$0xff] }
 0xca9   : > { %14052 = vmatpush3.bf16.msra.mxu0 %v14051_v41  ;;  %12780 = vmatprep.mubr.msk.f32.mxu0 %vm14562_vm4, %v14563_v26  ;;  %v10401_v41 = vld [vmem:[%s16665_s8 + $0x190] sm:$0xff] }
 0xcaa   : > { %14053 = vmatprep.subr.bf16.mxu0 %v14561_v42  ;;  %14073 = vmatpush3.bf16.msra.mxu1 %v14072_v36  ;;  %v14114_v12 = vpack.c.bf16 %v10402_v23, %v10401_v41  ;;  %v10430_v41 = vld [vmem:[%s16664_s7 + $0x24] sm:$0xf] }
 0xcab   : > { %14074 = vmatprep.subr.bf16.mxu1 %v14561_v42 }
 0xcad   : > { %14055 = vmatpush3.bf16.msra.mxu0 %v14054_v0  ;;  %v10393_v0 = vld [vmem:[%s16665_s8 + $0x168] sm:$0xff] }
 0xcae   : > { %14056 = vmatprep.subr.bf16.mxu0 %v14561_v42  ;;  %14076 = vmatpush3.bf16.msra.mxu1 %v14075_v38  ;;  %v14102_v24 = vpack.c.bf16 %v10393_v0, %v10392_v53  ;;  %v10424_v38 = vld [vmem:[%s16665_s8 + $0x218] sm:$0xff]  ;;  %v10443_v53 = vld [vmem:[%s16665_s8 + $0x280] sm:$0xff]  ;;  %v10444_v0 = vld [vmem:[%s16665_s8 + $0x288] sm:$0xff] }
 0xcaf   : > { %14092 = vmatprep.subr.bf16.mxu1 %v14561_v42  ;;  %v14144_v13 = vpack.c.bf16 %v10424_v38, %v10423_v44  ;;  %v10452_v44 = vld [vmem:[%s16664_s7 + $0x2c] sm:$0xf] }
 0xcb1   : > { %14058 = vmatpush3.bf16.msra.mxu0 %v14057_v47  ;;  %v10394_v47 = vld [vmem:[%s16665_s8 + $0x170] sm:$0xff] }
 0xcb2   : > { %14059 = vmatprep.subr.bf16.mxu0 %v14561_v42 }
 0xcb5   : > { %14061 = vmatpush3.bf16.msra.mxu0 %v14060_v30  ;;  %v14105_v30 = vpack.c.bf16 %v10395_v63, %v10394_v47  ;;  %v10435_v47 = vld [vmem:[%s16665_s8 + $0x258] sm:$0xff] }
 0xcb6   : > { %14062 = vmatprep.subr.bf16.mxu0 %v14561_v42 }
 0xd73   : > { %v7704_v3 = vpop.f32.mrb[206].mxu1 }
 0xd74   : > { %v12756_v4 = vpop.f32.mrb[207].mxu1 }
 0xd75   : > { %v10410_v4 = vld [vmem:[%s16665_s8 + $0x1c0] sm:$0xff] }
 0xd77   : > { %v7631_v56 = vpop.f32.mrb[96].mxu0 }
 0xd78   : > { %v7705_v28 = vadd.f32 %v7704_v3, %v7631_v56  ;;  %v12737_v61 = vpop.f32.mrb[97].mxu0  ;;  %v10411_v56 = vld [vmem:[%s16665_s8 + $0x1c8] sm:$0xff] }
 0xd7b   : > { %v7779_v58 = vpop.f32.mrb[98].mxu0 }
 0xd7c   : > { %12781 = vmatmul.mubr.msk.f32.vlgmr.msra.gmra.mrb[100].mxu0 %vm4638_vm2, %v7779_v58  ;;  %v12763_v62 = vpop.f32.mrb[99].mxu0 }
 0xd7d   : > { %14064 = vmatpush3.bf16.msra.mxu0 %v16015_v8  ;;  %12787 = vmatprep.mubr.msk.f32.mxu0 %vm14562_vm4, %v14563_v26  ;;  %v10408_v62 = vld [vmem:[%s16664_s7 + $0x1c] sm:$0xf] }
 0xd7e   : > { %14077 = vmatprep.subr.bf16.mxu0 %v14561_v42 }
 0xd80   : > { %12788 = vmatmul.mubr.msk.f32.vlgmr.msra.gmra.mrb[102].mxu0 %vm7396_vm5, %v10364_v17  ;;  %v14126_v17 = vpack.c.bf16 %v10411_v56, %v10410_v4  ;;  %v10448_v56 = vld [vmem:[%s16665_s8 + $0x2a8] sm:$0xff] }
 0xd81   : > { %14079 = vmatpush3.bf16.msra.mxu0 %v16015_v8  ;;  %12813 = vmatprep.mubr.msk.f32.mxu0 %vm14562_vm4, %v14563_v26 }
 0xd82   : > { %14080 = vmatprep.subr.bf16.mxu0 %v14561_v42 }
 0xd84   : > { %12814 = vmatmul.mubr.msk.f32.vlgmr.msra.gmra.mrb[104].mxu0 %vm7396_vm5, %v10375_v1 }
 0xd85   : > { %14082 = vmatpush3.bf16.msra.mxu0 %v14081_v6  ;;  %12832 = vmatprep.mubr.msk.f32.mxu0 %vm14562_vm4, %v14563_v26  ;;  %v10412_v6 = vld [vmem:[%s16665_s8 + $0x1d0] sm:$0xff] }
 0xd86   : > { %14083 = vmatprep.subr.bf16.mxu0 %v14561_v42  ;;  %v14129_v21 = vpack.c.bf16 %v10413_v18, %v10412_v6  ;;  %v10454_v18 = vld [vmem:[%s16665_s8 + $0x2c0] sm:$0xff] }
 0xd89   : > { %14085 = vmatpush3.bf16.msra.mxu0 %v14084_v55  ;;  %v10419_v55 = vld [vmem:[%s16664_s7 + $0x20] sm:$0xf] }
 0xd8a   : > { %14086 = vmatprep.subr.bf16.mxu0 %v14561_v42 }
 0xd8d   : > { %14088 = vmatpush3.bf16.msra.mxu0 %v14087_v7  ;;  %v10415_v7 = vld [vmem:[%s16665_s8 + $0x1e8] sm:$0xff] }
 0xd8e   : > { %14089 = vmatprep.subr.bf16.mxu0 %v14561_v42  ;;  %v14132_v14 = vpack.c.bf16 %v10415_v7, %v10414_v31  ;;  %v10465_v31 = vld [vmem:[%s16665_s8 + $0x300] sm:$0xff]  ;;  %v10466_v7 = vld [vmem:[%s16665_s8 + $0x308] sm:$0xff] }
 0xd91   : > { %14091 = vmatpush3.bf16.msra.mxu0 %v14090_v19  ;;  %v10416_v19 = vld [vmem:[%s16665_s8 + $0x1f0] sm:$0xff] }
 0xd92   : > { %14107 = vmatprep.subr.bf16.mxu0 %v14561_v42 }
 0xe4f   : > { %v7861_v20 = vpop.f32.mrb[100].mxu0 }
 0xe50   : > { %v7865_v27 = vadd.f32 %v7861_v20, %v7705_v28  ;;  %v12782_v33 = vpop.f32.mrb[101].mxu0  ;;  %v10417_v20 = vld [vmem:[%s16665_s8 + $0x1f8] sm:$0xff] }
 0xe51   : > { %v14135_v33 = vpack.c.bf16 %v10417_v20, %v10416_v19  ;;  %v10457_v19 = vld [vmem:[%s16665_s8 + $0x2d8] sm:$0xff] }
 0xe53   : > { %v7937_v34 = vpop.f32.mrb[102].mxu0 }
 0xe54   : > { %12807 = vmatmul.mubr.msk.f32.vlgmr.msra.gmra.mrb[208].mxu1 %vm4638_vm2, %v7937_v34  ;;  %v12789_v45 = vpop.f32.mrb[103].mxu0  ;;  %v10426_v34 = vld [vmem:[%s16665_s8 + $0x228] sm:$0xff] }
 0xe55   : > { %14094 = vmatpush3.bf16.msra.mxu1 %v16015_v8  ;;  %12839 = vmatprep.mubr.msk.f32.mxu1 %vm14562_vm4, %v14563_v26  ;;  %v10428_v45 = vld [vmem:[%s16665_s8 + $0x238] sm:$0xff] }
 0xe56   : > { %14095 = vmatprep.subr.bf16.mxu1 %v14561_v42 }
 0xe57   : > { %v8095_v9 = vpop.f32.mrb[104].mxu0 }
 0xe58   : > { %12833 = vmatmul.mubr.msk.f32.vlgmr.msra.gmra.mrb[106].mxu0 %vm4638_vm2, %v8095_v9  ;;  %12840 = vmatmul.mubr.msk.f32.vlgmr.msra.gmra.mrb[210].mxu1 %vm7396_vm5, %v10386_v46  ;;  %v12815_v35 = vpop.f32.mrb[105].mxu0  ;;  %v14150_v46 = vpack.c.bf16 %v10428_v45, %v10427_v40  ;;  %v10468_v40 = vld [vmem:[%s16665_s8 + $0x318] sm:$0xff]  ;;  %v10458_v45 = vld [vmem:[%s16665_s8 + $0x2e0] sm:$0xff] }
 0xe59   : > { %14109 = vmatpush3.bf16.msra.mxu0 %v16015_v8  ;;  %12865 = vmatprep.mubr.msk.f32.mxu0 %vm14562_vm4, %v14563_v26  ;;  %v10433_v35 = vld [vmem:[%s16665_s8 + $0x248] sm:$0xff] }
 0xe5a   : > { %14097 = vmatpush3.bf16.msra.mxu1 %v14096_v49  ;;  %14110 = vmatprep.subr.bf16.mxu0 %v14561_v42  ;;  %v14156_v23 = vpack.c.bf16 %v10433_v35, %v10432_v25  ;;  %v10470_v35 = vld [vmem:[%s16665_s8 + $0x328] sm:$0xff] }
 0xe5b   : > { %14098 = vmatprep.subr.bf16.mxu1 %v14561_v42  ;;  %12858 = vmatprep.mubr.msk.f32.mxu1 %vm14562_vm4, %v14563_v26 }
 0xe5c   : > { %12866 = vmatmul.mubr.msk.f32.vlgmr.msra.gmra.mrb[108].mxu0 %vm7396_vm5, %v10397_v51 }
 0xe5d   : > { %14112 = vmatpush3.bf16.msra.mxu0 %v14111_v5  ;;  %12884 = vmatprep.mubr.msk.f32.mxu0 %vm14562_vm4, %v14563_v26 }
 0xe5e   : > { %14100 = vmatpush3.bf16.msra.mxu1 %v14099_v15  ;;  %14113 = vmatprep.subr.bf16.mxu0 %v14561_v42 }
 0xe5f   : > { %14101 = vmatprep.subr.bf16.mxu1 %v14561_v42 }
 0xe61   : > { %14115 = vmatpush3.bf16.msra.mxu0 %v14114_v12 }
 0xe62   : > { %14103 = vmatpush3.bf16.msra.mxu1 %v14102_v24  ;;  %14116 = vmatprep.subr.bf16.mxu0 %v14561_v42  ;;  %v10434_v24 = vld [vmem:[%s16665_s8 + $0x250] sm:$0xff] }
 0xe63   : > { %14104 = vmatprep.subr.bf16.mxu1 %v14561_v42  ;;  %v14159_v43 = vpack.c.bf16 %v10435_v47, %v10434_v24  ;;  %v10476_v47 = vld [vmem:[%s16665_s8 + $0x340] sm:$0xff] }
 0xe65   : > { %14118 = vmatpush3.bf16.msra.mxu0 %v14117_v11  ;;  %v10445_v11 = vld [vmem:[%s16665_s8 + $0x290] sm:$0xff] }
 0xe66   : > { %14106 = vmatpush3.bf16.msra.mxu1 %v14105_v30  ;;  %14119 = vmatprep.subr.bf16.mxu0 %v14561_v42  ;;  %v14171_v30 = vpack.c.bf16 %v10444_v0, %v10443_v53 }
 0xe67   : > { %14122 = vmatprep.subr.bf16.mxu1 %v14561_v42 }
 0xe69   : > { %14121 = vmatpush3.bf16.msra.mxu0 %v14120_v59  ;;  %v10437_v59 = vld [vmem:[%s16665_s8 + $0x268] sm:$0xff] }
 0xe6a   : > { %14137 = vmatprep.subr.bf16.mxu0 %v14561_v42 }
 0xf27   : > { %v8019_v22 = vpop.f32.mrb[208].mxu1 }
 0xf28   : > { %v8023_v50 = vadd.f32 %v8019_v22, %v7865_v27  ;;  %v12808_v57 = vpop.f32.mrb[209].mxu1  ;;  %v10425_v27 = vld [vmem:[%s16665_s8 + $0x220] sm:$0xff]  ;;  %v14174_v22 = vpack.c.bf16 %v10446_v32, %v10445_v11  ;;  %v10474_v11 = vld [vmem:[%s16664_s7 + $0x34] sm:$0xf] }
 0xf29   : > { %v14147_v39 = vpack.c.bf16 %v10426_v34, %v10425_v27  ;;  %v10438_v57 = vld [vmem:[%s16665_s8 + $0x270] sm:$0xff] }
 0xf2a   : > { %v10463_v27 = vld [vmem:[%s16664_s7 + $0x30] sm:$0xf] }
 0xf2b   : > { %v8177_v36 = vpop.f32.mrb[106].mxu0  ;;  %v8253_v3 = vpop.f32.mrb[210].mxu1 }
 0xf2c   : > { %v8181_v28 = vadd.f32 %v8177_v36, %v8023_v50  ;;  %12859 = vmatmul.mubr.msk.f32.vlgmr.msra.gmra.mrb[212].mxu1 %vm4638_vm2, %v8253_v3  ;;  %v12834_v61 = vpop.f32.mrb[107].mxu0  ;;  %v12841_v58 = vpop.f32.mrb[211].mxu1  ;;  %v14162_v50 = vpack.c.bf16 %v10437_v59, %v10436_v37  ;;  %v10439_v36 = vld [vmem:[%s16665_s8 + $0x278] sm:$0xff]  ;;  %v10447_v3 = vld [vmem:[%s16665_s8 + $0x2a0] sm:$0xff]  ;;  %v10488_v59 = vld [vmem:[%s16665_s8 + $0x388] sm:$0xff] }
 0xf2d   : > { %14124 = vmatpush3.bf16.msra.mxu1 %v16015_v8  ;;  %12891 = vmatprep.mubr.msk.f32.mxu1 %vm14562_vm4, %v14563_v26  ;;  %v14165_v4 = vpack.c.bf16 %v10439_v36, %v10438_v57  ;;  %v10449_v61 = vld [vmem:[%s16665_s8 + $0x2b0] sm:$0xff]  ;;  %v10450_v58 = vld [vmem:[%s16665_s8 + $0x2b8] sm:$0xff]  ;;  %v10487_v37 = vld [vmem:[%s16665_s8 + $0x380] sm:$0xff] }
 0xf2e   : > { %14125 = vmatprep.subr.bf16.mxu1 %v14561_v42  ;;  %v10479_v57 = vld [vmem:[%s16665_s8 + $0x358] sm:$0xff] }
 0xf2f   : > { %v8411_v1 = vpop.f32.mrb[108].mxu0 }
 0xf30   : > { %12885 = vmatmul.mubr.msk.f32.vlgmr.msra.gmra.mrb[110].mxu0 %vm4638_vm2, %v8411_v1  ;;  %12892 = vmatmul.mubr.msk.f32.vlgmr.msra.gmra.mrb[214].mxu1 %vm7396_vm5, %v10408_v62  ;;  %v12867_v29 = vpop.f32.mrb[109].mxu0  ;;  %v14180_v62 = vpack.c.bf16 %v10450_v58, %v10449_v61  ;;  %v10490_v61 = vld [vmem:[%s16665_s8 + $0x398] sm:$0xff]  ;;  %v10480_v58 = vld [vmem:[%s16665_s8 + $0x360] sm:$0xff] }
 0xf31   : > { %14139 = vmatpush3.bf16.msra.mxu0 %v16015_v8  ;;  %12917 = vmatprep.mubr.msk.f32.mxu0 %vm14562_vm4, %v14563_v26  ;;  %v10455_v29 = vld [vmem:[%s16665_s8 + $0x2c8] sm:$0xff] }
 0xf32   : > { %14127 = vmatpush3.bf16.msra.mxu1 %v14126_v17  ;;  %14140 = vmatprep.subr.bf16.mxu0 %v14561_v42  ;;  %v14186_v38 = vpack.c.bf16 %v10455_v29, %v10454_v18  ;;  %v10491_v18 = vld [vmem:[%s16665_s8 + $0x3a0] sm:$0xff]  ;;  %v10492_v29 = vld [vmem:[%s16665_s8 + $0x3a8] sm:$0xff] }
 0xf33   : > { %14128 = vmatprep.subr.bf16.mxu1 %v14561_v42  ;;  %12910 = vmatprep.mubr.msk.f32.mxu1 %vm14562_vm4, %v14563_v26 }
 0xf34   : > { %12918 = vmatmul.mubr.msk.f32.vlgmr.msra.gmra.mrb[112].mxu0 %vm7396_vm5, %v10419_v55 }
 0xf35   : > { %14142 = vmatpush3.bf16.msra.mxu0 %v14141_v48  ;;  %12936 = vmatprep.mubr.msk.f32.mxu0 %vm14562_vm4, %v14563_v26 }
 0xf36   : > { %14130 = vmatpush3.bf16.msra.mxu1 %v14129_v21  ;;  %14143 = vmatprep.subr.bf16.mxu0 %v14561_v42 }
 0xf37   : > { %14131 = vmatprep.subr.bf16.mxu1 %v14561_v42 }
 0xf39   : > { %14145 = vmatpush3.bf16.msra.mxu0 %v14144_v13 }
 0xf3a   : > { %14133 = vmatpush3.bf16.msra.mxu1 %v14132_v14  ;;  %14146 = vmatprep.subr.bf16.mxu0 %v14561_v42  ;;  %v10456_v14 = vld [vmem:[%s16665_s8 + $0x2d0] sm:$0xff] }
 0xf3b   : > { %14134 = vmatprep.subr.bf16.mxu1 %v14561_v42  ;;  %v14189_v34 = vpack.c.bf16 %v10457_v19, %v10456_v14  ;;  %v10499_v14 = vld [vmem:[%s16665_s8 + $0x3c8] sm:$0xff] }
 0xf3d   : > { %14148 = vmatpush3.bf16.msra.mxu0 %v14147_v39  ;;  %v10467_v39 = vld [vmem:[%s16665_s8 + $0x310] sm:$0xff] }
 0xf3e   : > { %14136 = vmatpush3.bf16.msra.mxu1 %v14135_v33  ;;  %14149 = vmatprep.subr.bf16.mxu0 %v14561_v42  ;;  %v14201_v33 = vpack.c.bf16 %v10466_v7, %v10465_v31 }
 0xf3f   : > { %14152 = vmatprep.subr.bf16.mxu1 %v14561_v42 }
 0xf41   : > { %14151 = vmatpush3.bf16.msra.mxu0 %v14150_v46  ;;  %v10459_v46 = vld [vmem:[%s16665_s8 + $0x2e8] sm:$0xff] }
 0xf42   : > { %14167 = vmatprep.subr.bf16.mxu0 %v14561_v42 }
 0xfff   : > { %v8335_v49 = vpop.f32.mrb[212].mxu1 }
0x1000   : > { %v8339_v52 = vadd.f32 %v8335_v49, %v8181_v28  ;;  %v12860_v60 = vpop.f32.mrb[213].mxu1  ;;  %v14177_v28 = vpack.c.bf16 %v10448_v56, %v10447_v3  ;;  %v14204_v49 = vpack.c.bf16 %v10468_v40, %v10467_v39  ;;  %v10485_v3 = vld [vmem:[%s16664_s7 + $0x38] sm:$0xf]  ;;  %v10496_v39 = vld [vmem:[%s16664_s7 + $0x3c] sm:$0xf] }
0x1001   : > { %v10460_v60 = vld [vmem:[%s16665_s8 + $0x2f0] sm:$0xff] }
0x1003   : > { %v8493_v9 = vpop.f32.mrb[110].mxu0  ;;  %v8569_v2 = vpop.f32.mrb[214].mxu1 }
0x1004   : > { %v8497_v51 = vadd.f32 %v8493_v9, %v8339_v52  ;;  %12911 = vmatmul.mubr.msk.f32.vlgmr.msra.gmra.mrb[216].mxu1 %vm4638_vm2, %v8569_v2  ;;  %v12886_v5 = vpop.f32.mrb[111].mxu0  ;;  %v12893_v15 = vpop.f32.mrb[215].mxu1  ;;  %v14192_v52 = vpack.c.bf16 %v10459_v46, %v10458_v45  ;;  %v10461_v9 = vld [vmem:[%s16665_s8 + $0x2f8] sm:$0xff]  ;;  %v10469_v2 = vld [vmem:[%s16665_s8 + $0x320] sm:$0xff]  ;;  %v10500_v45 = vld [vmem:[%s16665_s8 + $0x3d0] sm:$0xff] }
0x1005   : > { %14154 = vmatpush3.bf16.msra.mxu1 %v16015_v8  ;;  %12943 = vmatprep.mubr.msk.f32.mxu1 %vm14562_vm4, %v14563_v26  ;;  %v14195_v25 = vpack.c.bf16 %v10461_v9, %v10460_v60  ;;  %v10471_v5 = vld [vmem:[%s16665_s8 + $0x330] sm:$0xff]  ;;  %v10472_v15 = vld [vmem:[%s16665_s8 + $0x338] sm:$0xff]  ;;  %v10502_v60 = vld [vmem:[%s16665_s8 + $0x3e0] sm:$0xff] }
0x1006   : > { %14155 = vmatprep.subr.bf16.mxu1 %v14561_v42  ;;  %v10501_v46 = vld [vmem:[%s16665_s8 + $0x3d8] sm:$0xff]  ;;  %v10503_v9 = vld [vmem:[%s16665_s8 + $0x3e8] sm:$0xff] }
0x1007   : > { %v8727_v12 = vpop.f32.mrb[112].mxu0 }
0x1008   : > { %12937 = vmatmul.mubr.msk.f32.vlgmr.msra.gmra.mrb[114].mxu0 %vm4638_vm2, %v8727_v12  ;;  %12944 = vmatmul.mubr.msk.f32.vlgmr.msra.gmra.mrb[218].mxu1 %vm7396_vm5, %v10430_v41  ;;  %v12919_v63 = vpop.f32.mrb[113].mxu0  ;;  %v14210_v41 = vpack.c.bf16 %v10472_v15, %v10471_v5 }
0x1009   : > { %14169 = vmatpush3.bf16.msra.mxu0 %v16015_v8  ;;  %12969 = vmatprep.mubr.msk.f32.mxu0 %vm14562_vm4, %v14563_v26  ;;  %v10477_v63 = vld [vmem:[%s16665_s8 + $0x348] sm:$0xff] }
0x100a   : > { %14157 = vmatpush3.bf16.msra.mxu1 %v14156_v23  ;;  %14170 = vmatprep.subr.bf16.mxu0 %v14561_v42  ;;  %v14216_v32 = vpack.c.bf16 %v10477_v63, %v10476_v47 }
0x100b   : > { %14158 = vmatprep.subr.bf16.mxu1 %v14561_v42  ;;  %12962 = vmatprep.mubr.msk.f32.mxu1 %vm14562_vm4, %v14563_v26 }
0x100c   : > { %12970 = vmatmul.mubr.msk.f32.vlgmr.msra.gmra.mrb[116].mxu0 %vm7396_vm5, %v10441_v16 }
0x100d   : > { %14172 = vmatpush3.bf16.msra.mxu0 %v14171_v30  ;;  %12988 = vmatprep.mubr.msk.f32.mxu0 %vm14562_vm4, %v14563_v26 }
0x100e   : > { %14160 = vmatpush3.bf16.msra.mxu1 %v14159_v43  ;;  %14173 = vmatprep.subr.bf16.mxu0 %v14561_v42 }
0x100f   : > { %14161 = vmatprep.subr.bf16.mxu1 %v14561_v42 }
0x1011   : > { %14175 = vmatpush3.bf16.msra.mxu0 %v14174_v22 }
0x1012   : > { %14163 = vmatpush3.bf16.msra.mxu1 %v14162_v50  ;;  %14176 = vmatprep.subr.bf16.mxu0 %v14561_v42  ;;  %v10478_v50 = vld [vmem:[%s16665_s8 + $0x350] sm:$0xff] }
0x1013   : > { %14164 = vmatprep.subr.bf16.mxu1 %v14561_v42  ;;  %v14219_v56 = vpack.c.bf16 %v10479_v57, %v10478_v50 }
0x1015   : > { %14178 = vmatpush3.bf16.msra.mxu0 %v14177_v28  ;;  %v10489_v28 = vld [vmem:[%s16665_s8 + $0x390] sm:$0xff] }
0x1016   : > { %14166 = vmatpush3.bf16.msra.mxu1 %v14165_v4  ;;  %14179 = vmatprep.subr.bf16.mxu0 %v14561_v42  ;;  %v14231_v4 = vpack.c.bf16 %v10488_v59, %v10487_v37 }
0x1017   : > { %14182 = vmatprep.subr.bf16.mxu1 %v14561_v42 }
0x1019   : > { %14181 = vmatpush3.bf16.msra.mxu0 %v14180_v62  ;;  %v10481_v62 = vld [vmem:[%s16665_s8 + $0x368] sm:$0xff] }
0x101a   : > { %14197 = vmatprep.subr.bf16.mxu0 %v14561_v42 }
0x10d7   : > { %v8651_v17 = vpop.f32.mrb[216].mxu1 }
0x10d8   : > { %v8655_v10 = vadd.f32 %v8651_v17, %v8497_v51  ;;  %v12912_v54 = vpop.f32.mrb[217].mxu1  ;;  %v14207_v51 = vpack.c.bf16 %v10470_v35, %v10469_v2  ;;  %v14234_v17 = vpack.c.bf16 %v10490_v61, %v10489_v28  ;;  %v14252_v2 = vpack.c.bf16 %v10503_v9, %v10502_v60 }
0x10d9   : > { %v10482_v54 = vld [vmem:[%s16665_s8 + $0x370] sm:$0xff] }
0x10db   : > { %v8809_v1 = vpop.f32.mrb[114].mxu0  ;;  %v8885_v6 = vpop.f32.mrb[218].mxu1 }
0x10dc   : > { %v8813_v55 = vadd.f32 %v8809_v1, %v8655_v10  ;;  %12963 = vmatmul.mubr.msk.f32.vlgmr.msra.gmra.mrb[220].mxu1 %vm4638_vm2, %v8885_v6  ;;  %v12938_v48 = vpop.f32.mrb[115].mxu0  ;;  %v12945_v21 = vpop.f32.mrb[219].mxu1  ;;  %v14222_v10 = vpack.c.bf16 %v10481_v62, %v10480_v58  ;;  %v10483_v1 = vld [vmem:[%s16665_s8 + $0x378] sm:$0xff] }
0x10dd   : > { %14184 = vmatpush3.bf16.msra.mxu1 %v16015_v8  ;;  %12995 = vmatprep.mubr.msk.f32.mxu1 %vm14562_vm4, %v14563_v26  ;;  %v14225_v6 = vpack.c.bf16 %v10483_v1, %v10482_v54  ;;  %v10493_v48 = vld [vmem:[%s16665_s8 + $0x3b0] sm:$0xff]  ;;  %v10494_v21 = vld [vmem:[%s16665_s8 + $0x3b8] sm:$0xff] }
0x10de   : > { %14185 = vmatprep.subr.bf16.mxu1 %v14561_v42 }
0x10df   : > { %v9043_v13 = vpop.f32.mrb[116].mxu0 }
0x10e0   : > { %12989 = vmatmul.mubr.msk.f32.vlgmr.msra.gmra.mrb[118].mxu0 %vm4638_vm2, %v9043_v13  ;;  %12996 = vmatmul.mubr.msk.f32.vlgmr.msra.gmra.mrb[222].mxu1 %vm7396_vm5, %v10452_v44  ;;  %v12971_v20 = vpop.f32.mrb[117].mxu0  ;;  %v14240_v44 = vpack.c.bf16 %v10494_v21, %v10493_v48  ;;  %v10498_v13 = vld [vmem:[%s16665_s8 + $0x3c0] sm:$0xff] }
0x10e1   : > { %14199 = vmatpush3.bf16.msra.mxu0 %v16015_v8  ;;  %13021 = vmatprep.mubr.msk.f32.mxu0 %vm14562_vm4, %v14563_v26  ;;  %v14246_v40 = vpack.c.bf16 %v10499_v14, %v10498_v13 }
0x10e2   : > { %14187 = vmatpush3.bf16.msra.mxu1 %v14186_v38  ;;  %14200 = vmatprep.subr.bf16.mxu0 %v14561_v42 }
0x10e3   : > { %14188 = vmatprep.subr.bf16.mxu1 %v14561_v42  ;;  %13014 = vmatprep.mubr.msk.f32.mxu1 %vm14562_vm4, %v14563_v26 }
0x10e4   : > { %13022 = vmatmul.mubr.msk.f32.vlgmr.msra.gmra.mrb[120].mxu0 %vm7396_vm5, %v10463_v27 }
0x10e5   : > { %14202 = vmatpush3.bf16.msra.mxu0 %v14201_v33  ;;  %13040 = vmatprep.mubr.msk.f32.mxu0 %vm14562_vm4, %v14563_v26 }
0x10e6   : > { %14190 = vmatpush3.bf16.msra.mxu1 %v14189_v34  ;;  %14203 = vmatprep.subr.bf16.mxu0 %v14561_v42 }
0x10e7   : > { %14191 = vmatprep.subr.bf16.mxu1 %v14561_v42 }
0x10e9   : > { %14205 = vmatpush3.bf16.msra.mxu0 %v14204_v49 }
0x10ea   : > { %14193 = vmatpush3.bf16.msra.mxu1 %v14192_v52  ;;  %14206 = vmatprep.subr.bf16.mxu0 %v14561_v42  ;;  %v14249_v52 = vpack.c.bf16 %v10501_v46, %v10500_v45 }
0x10eb   : > { %14194 = vmatprep.subr.bf16.mxu1 %v14561_v42 }
0x10ed   : > { %14208 = vmatpush3.bf16.msra.mxu0 %v14207_v51 }
0x10ee   : > { %14196 = vmatpush3.bf16.msra.mxu1 %v14195_v25  ;;  %14209 = vmatprep.subr.bf16.mxu0 %v14561_v42  ;;  %v10505_v25 = vld [vmem:[%s16665_s8 + $0x3f8] sm:$0xff] }
0x10ef   : > { %14212 = vmatprep.subr.bf16.mxu1 %v14561_v42 }
0x10f1   : > { %14211 = vmatpush3.bf16.msra.mxu0 %v14210_v41 }
0x10f2   : > { %14227 = vmatprep.subr.bf16.mxu0 %v14561_v42 }
0x11af   : > { %v8967_v23 = vpop.f32.mrb[220].mxu1 }
0x11b0   : > { %v8971_v53 = vadd.f32 %v8967_v23, %v8813_v55  ;;  %v12964_v0 = vpop.f32.mrb[221].mxu1  ;;  %v14237_v55 = vpack.c.bf16 %v10492_v29, %v10491_v18 }
0x11b3   : > { %v9125_v12 = vpop.f32.mrb[118].mxu0  ;;  %v9201_v24 = vpop.f32.mrb[222].mxu1 }
0x11b4   : > { %v9129_v16 = vadd.f32 %v9125_v12, %v8971_v53  ;;  %13015 = vmatmul.mubr.msk.f32.vlgmr.msra.gmra.mrb[224].mxu1 %vm4638_vm2, %v9201_v24  ;;  %v12990_v30 = vpop.f32.mrb[119].mxu0  ;;  %v12997_v43 = vpop.f32.mrb[223].mxu1  ;;  %v10507_v24 = vld [vmem:[%s16666_s9] ss:$0 sm:$0xff] }
0x11b5   : > { %14214 = vmatpush3.bf16.msra.mxu1 %v16015_v8  ;;  %13047 = vmatprep.mubr.msk.f32.mxu1 %vm14562_vm4, %v14563_v26 }
0x11b6   : > { %14215 = vmatprep.subr.bf16.mxu1 %v14561_v42 }
0x11b7   : > { %v9359_v22 = vpop.f32.mrb[120].mxu0 }
0x11b8   : > { %13041 = vmatmul.mubr.msk.f32.vlgmr.msra.gmra.mrb[122].mxu0 %vm4638_vm2, %v9359_v22  ;;  %13048 = vmatmul.mubr.msk.f32.vlgmr.msra.gmra.mrb[226].mxu1 %vm7396_vm5, %v10474_v11  ;;  %v13023_v36 = vpop.f32.mrb[121].mxu0 }
0x11b9   : > { %14229 = vmatpush3.bf16.msra.mxu0 %v16015_v8  ;;  %13073 = vmatprep.mubr.msk.f32.mxu0 %vm14562_vm4, %v14563_v26 }
0x11ba   : > { %14217 = vmatpush3.bf16.msra.mxu1 %v14216_v32  ;;  %14230 = vmatprep.subr.bf16.mxu0 %v14561_v42 }
0x11bb   : > { %14218 = vmatprep.subr.bf16.mxu1 %v14561_v42  ;;  %13066 = vmatprep.mubr.msk.f32.mxu1 %vm14562_vm4, %v14563_v26 }
0x11bc   : > { %13074 = vmatmul.mubr.msk.f32.vlgmr.msra.gmra.mrb[124].mxu0 %vm7396_vm5, %v10485_v3 }
0x11bd   : > { %14232 = vmatpush3.bf16.msra.mxu0 %v14231_v4  ;;  %13092 = vmatprep.mubr.msk.f32.mxu0 %vm14562_vm4, %v14563_v26 }
0x11be   : > { %14220 = vmatpush3.bf16.msra.mxu1 %v14219_v56  ;;  %14233 = vmatprep.subr.bf16.mxu0 %v14561_v42 }
0x11bf   : > { %14221 = vmatprep.subr.bf16.mxu1 %v14561_v42 }
0x11c1   : > { %14235 = vmatpush3.bf16.msra.mxu0 %v14234_v17 }
0x11c2   : > { %14223 = vmatpush3.bf16.msra.mxu1 %v14222_v10  ;;  %14236 = vmatprep.subr.bf16.mxu0 %v14561_v42 }
0x11c3   : > { %14224 = vmatprep.subr.bf16.mxu1 %v14561_v42 }
0x11c5   : > { %14238 = vmatpush3.bf16.msra.mxu0 %v14237_v55 }
0x11c6   : > { %14226 = vmatpush3.bf16.msra.mxu1 %v14225_v6  ;;  %14239 = vmatprep.subr.bf16.mxu0 %v14561_v42 }
0x11c7   : > { %14242 = vmatprep.subr.bf16.mxu1 %v14561_v42 }
0x11c9   : > { %14241 = vmatpush3.bf16.msra.mxu0 %v14240_v44 }
0x1287   : > { %v9283_v38 = vpop.f32.mrb[224].mxu1 }
0x1288   : > { %v9287_v31 = vadd.f32 %v9283_v38, %v9129_v16  ;;  %v13016_v7 = vpop.f32.mrb[225].mxu1 }
0x128b   : > { %v9441_v19 = vpop.f32.mrb[122].mxu0  ;;  %v9517_v20 = vpop.f32.mrb[226].mxu1 }
0x128c   : > { %v9445_v27 = vadd.f32 %v9441_v19, %v9287_v31  ;;  %13067 = vmatmul.mubr.msk.f32.vlgmr.msra.gmra.mrb[228].mxu1 %vm4638_vm2, %v9517_v20  ;;  %v13042_v33 = vpop.f32.mrb[123].mxu0  ;;  %v13049_v34 = vpop.f32.mrb[227].mxu1 }
0x128d   : > { %14244 = vmatpush3.bf16.msra.mxu1 %v16015_v8  ;;  %13099 = vmatprep.mubr.msk.f32.mxu1 %vm14562_vm4, %v14563_v26 }
0x128e   : > { %14245 = vmatprep.subr.bf16.mxu1 %v14561_v42 }
0x128f   : > { %v9675_v49 = vpop.f32.mrb[124].mxu0 }
0x1290   : > { %13093 = vmatmul.mubr.msk.f32.vlgmr.msra.gmra.mrb[126].mxu0 %vm4638_vm2, %v9675_v49  ;;  %13100 = vmatmul.mubr.msk.f32.vlgmr.msra.gmra.mrb[230].mxu1 %vm7396_vm5, %v10496_v39  ;;  %v13075_v8 = vpop.f32.mrb[125].mxu0 }
0x1291   : > { %14247 = vmatpush3.bf16.msra.mxu1 %v14246_v40  ;;  %13118 = vmatprep.mubr.msk.f32.mxu1 %vm14562_vm4, %v14563_v26  ;;  %v10504_v26 = vld [vmem:[%s16665_s8 + $0x3f0] sm:$0xff] }
0x1292   : > { %14248 = vmatprep.subr.bf16.mxu1 %v14561_v42  ;;  %v14255_v35 = vpack.c.bf16 %v10505_v25, %v10504_v26 }
0x1295   : > { %14250 = vmatpush3.bf16.msra.mxu1 %v14249_v52 }
0x1296   : > { %14251 = vmatprep.subr.bf16.mxu1 %v14561_v42 }
0x1299   : > { %14253 = vmatpush3.bf16.msra.mxu1 %v14252_v2 }
0x129a   : > { %14254 = vmatprep.subr.bf16.mxu1 %v14561_v42 }
0x129d   : > { %14256 = vmatpush3.bf16.msra.mxu1 %v14255_v35 }
0x135f   : > { %v9599_v51 = vpop.f32.mrb[228].mxu1 }
0x1360   : > { %v9603_v5 = vadd.f32 %v9599_v51, %v9445_v27  ;;  %v13068_v15 = vpop.f32.mrb[229].mxu1 }
0x1363   : > { %v9757_v41 = vpop.f32.mrb[126].mxu0  ;;  %v9833_v23 = vpop.f32.mrb[230].mxu1 }
0x1364   : > { %v9761_v53 = vadd.f32 %v9757_v41, %v9603_v5  ;;  %13119 = vmatmul.mubr.msk.f32.vlgmr.msra.gmra.mrb[232].mxu1 %vm4638_vm2, %v9833_v23  ;;  %v13101_v42 = vpop.f32.mrb[231].mxu1  ;;  %v13094_v0 = vpop.f32.mrb[127].mxu0 }
0x1437   : > { %v9915_v12 = vpop.f32.mrb[232].mxu1 }
0x1438   : > { %v9919_v47 = vadd.f32 %v9915_v12, %v9761_v53  ;;  %v13120_v63 = vpop.f32.mrb[233].mxu1 }
0x143a   : > { %v9927_v16 = vadd.f32 %v10507_v24, %v9919_v47 }
0x143c   : > { %v9928_v30 = vmax.f32 %v9927_v16, 0.0 }
0x143e   : > { %9930 = vst.msk [vmem:[%s367_s12] sm:$0xf] %vm9929_vm6, %v9928_v30 }
0x143f   : > { %14503 = shalt.err (!%p14500_p7)
}
0x1440   : > { %s14504_s26 = scalar_lea.hbm %s16615_s21, 64  ;;  %s14508_s11 = scalar_lea.hbm %s16667_s10, 128 }
0x1441   : > { %p14505_p8 = scmp.ne.s32.totalorder %s16615_s21, %s14504_s26  ;;  %p14509_p1 = scmp.lt.u32.totalorder %s16615_s21, %s16667_s10 }
0x1442   : > { %p14510_p0 = scmp.lt.u32.totalorder %s14508_s11, %s14504_s26  ;;  %p14512_p6 = scmp.lt.u32.totalorder %s14504_s26, %s16615_s21 }
0x1443   : > { %p14506_p11 = pnand %p14505_p8, %p16678_p9 }
0x1444   : > { %p14511_p5 = por %p14510_p0, %p14509_p1 }
0x1445   : > { %p14507_p13 = pneg %p14506_p11 }
0x1446   : > { %p14513_p10 = por %p14512_p6, %p14511_p5 }
0x1448   : > { %p14514_p12 = pnand %p14513_p10, %p14507_p13 }
0x144a   : > { %14517 = shalt.err (!%p14514_p12)
}
0x144b   : > { %14411 = dma.vmem_to_hbm [thread:$0]  (%p16678_p9), %s16617_s18, 64, %s16615_s21, %s9932_s28  }
0x144c PF: > { %p14423_p2 = scmp.ge.s32.totalorder %s14556_s16, 2  ;;  %s9957_s27 = sand.u32 1, %s14544_s13  }
0x144d   : > { %p16679_p3 = scmp.ne.s32.totalorder %s16672_s24, 0  ;;  %s9958_s25 = scalar_lea.sflag [#allocation4], %s9957_s27 }
0x144f   : > { %p14418_p4 = pnand %p14423_p2, %p16679_p3 }
0x1451   : > { %14539 = dma.done.wait (!%p14418_p4), %s9958_s25, 64  }
0x1452   : > { %14541 = vsyncadd (!%p14418_p4), %s9958_s25, 4294967232  ;;  %p21_p7 = scmp.ge.s32.totalorder %s14645_s19, 4   ;;  %s16680_s13 = smov %s14548_s14 }
0x1453   : > { %s16681_s14 = smov %s14552_s15  ;;  %s16682_s15 = smov %s14656_s22 }
0x1454   : > { %s16683_s16 = smov %s14645_s19  ;;  %23 = sbr.rel (!%p21_p7) target bundleno = 4 (0x4), region = 190 }
0x145b   :  { %9963 = vsyncpa [#allocation3], 1 }
0x145c   :  { %9965 = vsyncpa [#allocation3 + $0x1], 1 }
0x145d   :  { %9966 = vsyncpa [#allocation4], 1 }
0x145e   :  { %9968 = vsyncpa [#allocation4 + $0x1], 1 }

</bundles_post_ra>
